<compile_context>
chip_gen: v6e
topology: v6e:2x2x1
jax: 0.10.0
libtpu: 0.0.40
codegen_flags: <defaults>
</compile_context>

<pallas_src>
import functools

import jax
import jax.numpy as jnp
from jax import lax
from jax.experimental import pallas as pl
from jax.experimental.pallas import tpu as pltpu


def _round_up(n, m):
    return ((n + m - 1) // m) * m


def _fdnet_kernel(x_ref, w1_ref, w1l_ref, w1r_ref, w2_ref, w2l_ref, w2r_ref,
                  wfc_ref, o_ref, *, fdblock, F, W):
    f32 = jnp.float32
    x = x_ref[...]                      # [W, TB]   (batch on lanes)
    TB = x.shape[1]

    w1 = w1_ref[...]                    # [F, 3, 1]  conv1  (1 -> F, kernel (1,3))
    w1l = w1l_ref[...]                  # [F, 2, 1]  conv1L (1 -> F, kernel (1,2))
    w1r = w1r_ref[...]                  # [F, 2, 1]  conv1R
    w2 = w2_ref[...]                    # [F, F, 3]  conv2  (F -> F, kernel (1,3))
    w2l = w2l_ref[...]                  # [F, F, 2]  conv2L
    w2r = w2r_ref[...]                  # [F, F, 2]  conv2R
    wfc = wfc_ref[...]                  # [F, 2, 1]  fc1, (dif_f, dif2_f) interleave

    # ---- hoisted, weight-only broadcast views (reused by every fdblock iter) ----
    w1_k = [w1[:, k:k + 1, :] for k in range(3)]                         # [F,1,1]
    w1l_j = [w1l[:, j:j + 1, :] for j in range(2)]                       # [F,1,1]
    w1r_j = [w1r[:, j:j + 1, :] for j in range(2)]                       # [F,1,1]
    w2_kf = [[w2[:, f:f + 1, k:k + 1] for f in range(F)] for k in range(3)]
    w2l_jf = [[w2l[:, f:f + 1, j:j + 1] for f in range(F)] for j in range(2)]
    w2r_jf = [[w2r[:, f:f + 1, j:j + 1] for f in range(F)] for j in range(2)]
    wfc0 = wfc[:, 0:1, :]                                                # [F,1,1]
    wfc1 = wfc[:, 1:2, :]                                                # [F,1,1]

    # Edge blends depend only on the W (sublane) index: tiny (1, W, 1) f32
    # selectors broadcast on the fly (never materialized at [F, W, TB]).
    wpos = lax.broadcasted_iota(jnp.int32, (1, W, 1), 1)
    e_l = (wpos == 0).astype(f32)
    e_r = (wpos == W - 1).astype(f32)
    e_m = 1.0 - e_l - e_r

    def one_block(x):
        # ---- stage 1: 1 -> F conv along W (kernel-3 interior, kernel-2 edges) ----
        x3 = x[None, :, :]                                               # [1, W, TB]
        x_m1 = pltpu.roll(x, shift=1, axis=0)[None, :, :]                # x[w-1]
        x_p1 = pltpu.roll(x, shift=W - 1, axis=0)[None, :, :]            # x[w+1]
        mid = w1_k[0] * x_m1 + w1_k[1] * x3 + w1_k[2] * x_p1             # [F, W, TB]
        left = (w1l_j[0] * x[None, 0:1, :]
                + w1l_j[1] * x[None, 1:2, :])                            # [F, 1, TB]
        right = (w1r_j[0] * x[None, W - 2:W - 1, :]
                 + w1r_j[1] * x[None, W - 1:W, :])                       # [F, 1, TB]
        xdif = e_m * mid + e_l * left + e_r * right                      # [F, W, TB]

        # ---- stage 2: F -> F conv along W.  Leading-dim slices xdif[f] are
        # free; at F=4 VPU broadcast-FMAs beat a tiny MXU contraction.  For
        # large F (>= ~32) this should become one [F,F] @ [F, W*TB] MXU dot
        # per tap instead.
        mid2 = jnp.zeros((F, W, TB), f32)
        left2 = jnp.zeros((F, 1, TB), f32)
        right2 = jnp.zeros((F, 1, TB), f32)
        for f in range(F):
            xf = xdif[f]                                                 # [W, TB]
            xf3 = xf[None, :, :]
            xf_m1 = pltpu.roll(xf, shift=1, axis=0)[None, :, :]
            xf_p1 = pltpu.roll(xf, shift=W - 1, axis=0)[None, :, :]
            mid2 = mid2 + (w2_kf[0][f] * xf_m1 + w2_kf[1][f] * xf3
                           + w2_kf[2][f] * xf_p1)
            left2 = left2 + (w2l_jf[0][f] * xf[None, 0:1, :]
                             + w2l_jf[1][f] * xf[None, 1:2, :])
            right2 = right2 + (w2r_jf[0][f] * xf[None, W - 2:W - 1, :]
                               + w2r_jf[1][f] * xf[None, W - 1:W, :])
        xdif2 = e_m * mid2 + e_l * left2 + e_r * right2                  # [F, W, TB]

        # ---- fc1 over interleaved (dif_f, dif2_f) channels + residual ----
        dev = jnp.sum(wfc0 * xdif + wfc1 * xdif2, axis=0)                # [W, TB]
        return x + dev

    if fdblock <= 4:
        for _ in range(fdblock):                 # short fixed loop: unroll
            x = one_block(x)
    else:                                        # keep live ranges bounded
        x = lax.fori_loop(0, fdblock, lambda _, xc: one_block(xc), x)

    o_ref[...] = x


def fdnet_forward(x_in, params, *, inputLength, xLen, fdfilter, fdblock,
                  batch_tile=None):
    # The PyTorch module's residual add only broadcasts correctly when H == 1.
    assert inputLength == 1, "fdnet forward requires inputLength == 1"
    assert xLen >= 3, "xLen must be >= 3 (kernel-3 interior + 2 edge columns)"

    F, W = fdfilter, xLen
    w1p = params['conv1'].reshape(F, 3, 1).astype(jnp.float32)
    w1lp = params['conv1L'].reshape(F, 2, 1).astype(jnp.float32)
    w1rp = params['conv1R'].reshape(F, 2, 1).astype(jnp.float32)
    w2p = params['conv2'].reshape(F, F, 3).astype(jnp.float32)
    w2lp = params['conv2L'].reshape(F, F, 2).astype(jnp.float32)
    w2rp = params['conv2R'].reshape(F, F, 2).astype(jnp.float32)
    # fc1 is [1, 2F] with channels interleaved as (dif_f, dif2_f).
    wfcp = params['fc1'].reshape(F, 2, 1).astype(jnp.float32)

    x2d = x_in.reshape(-1, W).astype(jnp.float32)          # [B, W]
    B = x2d.shape[0]

    # Lane-dense transposed layout [W, B]; pad B to a multiple of the tile.
    if batch_tile is None:
        TB = min(512, _round_up(B, 128))
    else:
        TB = _round_up(batch_tile, 128)
    Bp = _round_up(B, TB)
    xt = jnp.pad(x2d, ((0, Bp - B), (0, 0))).T             # [W, Bp]

    kernel = functools.partial(_fdnet_kernel, fdblock=fdblock, F=F, W=W)
    const3 = lambda i: (0, 0, 0)
    out_t = pl.pallas_call(
        kernel,
        out_shape=jax.ShapeDtypeStruct((W, Bp), jnp.float32),
        grid=(Bp // TB,),
        in_specs=[
            pl.BlockSpec((W, TB), lambda i: (0, i)),       # x tile, batch on lanes
            pl.BlockSpec((F, 3, 1), const3),               # weights: resident blocks
            pl.BlockSpec((F, 2, 1), const3),
            pl.BlockSpec((F, 2, 1), const3),
            pl.BlockSpec((F, F, 3), const3),
            pl.BlockSpec((F, F, 2), const3),
            pl.BlockSpec((F, F, 2), const3),
            pl.BlockSpec((F, 2, 1), const3),
        ],
        out_specs=pl.BlockSpec((W, TB), lambda i: (0, i)),
        compiler_params=pltpu.CompilerParams(
            dimension_semantics=("parallel",),             # megacore batch sharding
            vmem_limit_bytes=32 * 1024 * 1024,             # safe on v5e/v6e/v7x
        ),
    )(xt, w1p, w1lp, w1rp, w2p, w2lp, w2rp, wfcp)

    out = out_t.T[:B]                                      # back to [B, W]
    # matches torch output shape after .squeeze(1): [B, inputLength, xLen]
    return out.reshape(B, inputLength, xLen)


# ----------------------------- pure-JAX reference -----------------------------
def fdnet_reference(x_in, params, *, inputLength, xLen, fdfilter, fdblock):
    def conv(inp, w):
        return lax.conv_general_dilated(inp, w, (1, 1), 'VALID',
                                        dimension_numbers=('NCHW', 'OIHW', 'NCHW'))

    bx = x_in.reshape(-1, 1, inputLength, xLen).astype(jnp.float32)
    for _ in range(fdblock):
        d = conv(bx, params['conv1'])
        dl = conv(bx[:, :, :, 0:2], params['conv1L'])
        dr = conv(bx[:, :, :, -2:], params['conv1R'])
        d = jnp.concatenate([dl, d, dr], axis=3)
        d2 = conv(d, params['conv2'])
        d2l = conv(d[:, :, :, 0:2], params['conv2L'])
        d2r = conv(d[:, :, :, -2:], params['conv2R'])
        d2 = jnp.concatenate([d2l, d2, d2r], axis=3)
        cat = jnp.concatenate([jnp.swapaxes(d, 2, 3), jnp.swapaxes(d2, 2, 3)], axis=3)
        cat = jnp.swapaxes(cat, 1, 2)
        cat = cat.reshape(-1, xLen, 2 * fdfilter)
        dev = cat @ params['fc1'].T                    # [M, xLen, 1]
        dev = jnp.swapaxes(dev, 1, 2)[:, None, :, :]   # [M, 1, 1, xLen]
        bx = bx + dev
    return jnp.squeeze(bx, axis=1)


def init_params(key, fdfilter, scale=0.3):
    ks = jax.random.split(key, 7)
    s = scale
    return {
        'conv1':  s * jax.random.normal(ks[0], (fdfilter, 1, 1, 3), jnp.float32),
        'conv1L': s * jax.random.normal(ks[1], (fdfilter, 1, 1, 2), jnp.float32),
        'conv1R': s * jax.random.normal(ks[2], (fdfilter, 1, 1, 2), jnp.float32),
        'conv2':  s * jax.random.normal(ks[3], (fdfilter, fdfilter, 1, 3), jnp.float32),
        'conv2L': s * jax.random.normal(ks[4], (fdfilter, fdfilter, 1, 2), jnp.float32),
        'conv2R': s * jax.random.normal(ks[5], (fdfilter, fdfilter, 1, 2), jnp.float32),
        'fc1':    s * jax.random.normal(ks[6], (1, 2 * fdfilter), jnp.float32),
    }


if __name__ == "__main__":
    key = jax.random.PRNGKey(0)
    #            B   inputLength xLen fdfilter fdblock  weight-scale
    configs = [(2,   1,          16,  4,       2,       0.3),    # module's small config
               (600, 1,          16,  4,       6,       0.15)]   # multi-tile grid + fori_loop path
    for (B, inputLength, xLen, fdfilter, fdblock, wscale) in configs:
        key, kx, kp = jax.random.split(key, 3)
        x = jax.random.normal(kx, (B, inputLength, xLen), jnp.float32)
        params = init_params(kp, fdfilter, scale=wscale)

        out = fdnet_forward(x, params, inputLength=inputLength, xLen=xLen,
                            fdfilter=fdfilter, fdblock=fdblock)
        out = jax.block_until_ready(out)

        ref = fdnet_reference(x, params, inputLength=inputLength, xLen=xLen,
                              fdfilter=fdfilter, fdblock=fdblock)
        assert out.shape == ref.shape, (out.shape, ref.shape)
        if not jnp.allclose(out, ref, atol=1e-4, rtol=1e-4):
            err = float(jnp.max(jnp.abs(out - ref)))
            raise AssertionError(
                f"mismatch (B={B}, fdblock={fdblock}): max abs err = {err}")

    print("KERNEL_OK")
</pallas_src>

<mosaic_0001>
module attributes {stable_mosaic.version = 11 : i64} {
  func.func @_fdnet_kernel(%arg0: i32, %arg1: memref<16x128xf32, #tpu.memory_space<vmem>>, %arg2: memref<4x3x1xf32, #tpu.memory_space<vmem>>, %arg3: memref<4x2x1xf32, #tpu.memory_space<vmem>>, %arg4: memref<4x2x1xf32, #tpu.memory_space<vmem>>, %arg5: memref<4x4x3xf32, #tpu.memory_space<vmem>>, %arg6: memref<4x4x2xf32, #tpu.memory_space<vmem>>, %arg7: memref<4x4x2xf32, #tpu.memory_space<vmem>>, %arg8: memref<4x2x1xf32, #tpu.memory_space<vmem>>, %arg9: memref<16x128xf32, #tpu.memory_space<vmem>>) attributes {dimension_semantics = [#tpu.dimension_semantics<parallel>], iteration_bounds = array<i64: 1>, scalar_prefetch = 0 : i64, scratch_operands = 0 : i64, tpu.core_type = #tpu.core_type<tc>, window_params = [{transform_indices = @transform_0, window_bounds = array<i64: 16, 128>}, {pipeline_mode = #tpu.pipeline_mode<synchronous>, transform_indices = @transform_1, window_bounds = array<i64: 4, 3, 1>}, {pipeline_mode = #tpu.pipeline_mode<synchronous>, transform_indices = @transform_2, window_bounds = array<i64: 4, 2, 1>}, {pipeline_mode = #tpu.pipeline_mode<synchronous>, transform_indices = @transform_3, window_bounds = array<i64: 4, 2, 1>}, {pipeline_mode = #tpu.pipeline_mode<synchronous>, transform_indices = @transform_4, window_bounds = array<i64: 4, 4, 3>}, {pipeline_mode = #tpu.pipeline_mode<synchronous>, transform_indices = @transform_5, window_bounds = array<i64: 4, 4, 2>}, {pipeline_mode = #tpu.pipeline_mode<synchronous>, transform_indices = @transform_6, window_bounds = array<i64: 4, 4, 2>}, {pipeline_mode = #tpu.pipeline_mode<synchronous>, transform_indices = @transform_7, window_bounds = array<i64: 4, 2, 1>}, {transform_indices = @transform_8, window_bounds = array<i64: 16, 128>}]} {
    %c0 = arith.constant 0 : index
    %c0_0 = arith.constant 0 : index
    %0 = vector.load %arg1[%c0, %c0_0] : memref<16x128xf32, #tpu.memory_space<vmem>>, vector<16x128xf32>
    %c0_1 = arith.constant 0 : index
    %c0_2 = arith.constant 0 : index
    %c0_3 = arith.constant 0 : index
    %1 = vector.load %arg2[%c0_1, %c0_2, %c0_3] : memref<4x3x1xf32, #tpu.memory_space<vmem>>, vector<4x3x1xf32>
    %c0_4 = arith.constant 0 : index
    %c0_5 = arith.constant 0 : index
    %c0_6 = arith.constant 0 : index
    %2 = vector.load %arg3[%c0_4, %c0_5, %c0_6] : memref<4x2x1xf32, #tpu.memory_space<vmem>>, vector<4x2x1xf32>
    %c0_7 = arith.constant 0 : index
    %c0_8 = arith.constant 0 : index
    %c0_9 = arith.constant 0 : index
    %3 = vector.load %arg4[%c0_7, %c0_8, %c0_9] : memref<4x2x1xf32, #tpu.memory_space<vmem>>, vector<4x2x1xf32>
    %c0_10 = arith.constant 0 : index
    %c0_11 = arith.constant 0 : index
    %c0_12 = arith.constant 0 : index
    %4 = vector.load %arg5[%c0_10, %c0_11, %c0_12] : memref<4x4x3xf32, #tpu.memory_space<vmem>>, vector<4x4x3xf32>
    %c0_13 = arith.constant 0 : index
    %c0_14 = arith.constant 0 : index
    %c0_15 = arith.constant 0 : index
    %5 = vector.load %arg6[%c0_13, %c0_14, %c0_15] : memref<4x4x2xf32, #tpu.memory_space<vmem>>, vector<4x4x2xf32>
    %c0_16 = arith.constant 0 : index
    %c0_17 = arith.constant 0 : index
    %c0_18 = arith.constant 0 : index
    %6 = vector.load %arg7[%c0_16, %c0_17, %c0_18] : memref<4x4x2xf32, #tpu.memory_space<vmem>>, vector<4x4x2xf32>
    %c0_19 = arith.constant 0 : index
    %c0_20 = arith.constant 0 : index
    %c0_21 = arith.constant 0 : index
    %7 = vector.load %arg8[%c0_19, %c0_20, %c0_21] : memref<4x2x1xf32, #tpu.memory_space<vmem>>, vector<4x2x1xf32>
    %8 = vector.extract_strided_slice %1 {offsets = [0, 0, 0], sizes = [4, 1, 1], strides = [1, 1, 1]} : vector<4x3x1xf32> to vector<4x1x1xf32>
    %9 = vector.extract_strided_slice %1 {offsets = [0, 1, 0], sizes = [4, 1, 1], strides = [1, 1, 1]} : vector<4x3x1xf32> to vector<4x1x1xf32>
    %10 = vector.extract_strided_slice %1 {offsets = [0, 2, 0], sizes = [4, 1, 1], strides = [1, 1, 1]} : vector<4x3x1xf32> to vector<4x1x1xf32>
    %11 = vector.extract_strided_slice %2 {offsets = [0, 0, 0], sizes = [4, 1, 1], strides = [1, 1, 1]} : vector<4x2x1xf32> to vector<4x1x1xf32>
    %12 = vector.extract_strided_slice %2 {offsets = [0, 1, 0], sizes = [4, 1, 1], strides = [1, 1, 1]} : vector<4x2x1xf32> to vector<4x1x1xf32>
    %13 = vector.extract_strided_slice %3 {offsets = [0, 0, 0], sizes = [4, 1, 1], strides = [1, 1, 1]} : vector<4x2x1xf32> to vector<4x1x1xf32>
    %14 = vector.extract_strided_slice %3 {offsets = [0, 1, 0], sizes = [4, 1, 1], strides = [1, 1, 1]} : vector<4x2x1xf32> to vector<4x1x1xf32>
    %15 = vector.extract_strided_slice %4 {offsets = [0, 0, 0], sizes = [4, 1, 1], strides = [1, 1, 1]} : vector<4x4x3xf32> to vector<4x1x1xf32>
    %16 = vector.extract_strided_slice %4 {offsets = [0, 1, 0], sizes = [4, 1, 1], strides = [1, 1, 1]} : vector<4x4x3xf32> to vector<4x1x1xf32>
    %17 = vector.extract_strided_slice %4 {offsets = [0, 2, 0], sizes = [4, 1, 1], strides = [1, 1, 1]} : vector<4x4x3xf32> to vector<4x1x1xf32>
    %18 = vector.extract_strided_slice %4 {offsets = [0, 3, 0], sizes = [4, 1, 1], strides = [1, 1, 1]} : vector<4x4x3xf32> to vector<4x1x1xf32>
    %19 = vector.extract_strided_slice %4 {offsets = [0, 0, 1], sizes = [4, 1, 1], strides = [1, 1, 1]} : vector<4x4x3xf32> to vector<4x1x1xf32>
    %20 = vector.extract_strided_slice %4 {offsets = [0, 1, 1], sizes = [4, 1, 1], strides = [1, 1, 1]} : vector<4x4x3xf32> to vector<4x1x1xf32>
    %21 = vector.extract_strided_slice %4 {offsets = [0, 2, 1], sizes = [4, 1, 1], strides = [1, 1, 1]} : vector<4x4x3xf32> to vector<4x1x1xf32>
    %22 = vector.extract_strided_slice %4 {offsets = [0, 3, 1], sizes = [4, 1, 1], strides = [1, 1, 1]} : vector<4x4x3xf32> to vector<4x1x1xf32>
    %23 = vector.extract_strided_slice %4 {offsets = [0, 0, 2], sizes = [4, 1, 1], strides = [1, 1, 1]} : vector<4x4x3xf32> to vector<4x1x1xf32>
    %24 = vector.extract_strided_slice %4 {offsets = [0, 1, 2], sizes = [4, 1, 1], strides = [1, 1, 1]} : vector<4x4x3xf32> to vector<4x1x1xf32>
    %25 = vector.extract_strided_slice %4 {offsets = [0, 2, 2], sizes = [4, 1, 1], strides = [1, 1, 1]} : vector<4x4x3xf32> to vector<4x1x1xf32>
    %26 = vector.extract_strided_slice %4 {offsets = [0, 3, 2], sizes = [4, 1, 1], strides = [1, 1, 1]} : vector<4x4x3xf32> to vector<4x1x1xf32>
    %27 = vector.extract_strided_slice %5 {offsets = [0, 0, 0], sizes = [4, 1, 1], strides = [1, 1, 1]} : vector<4x4x2xf32> to vector<4x1x1xf32>
    %28 = vector.extract_strided_slice %5 {offsets = [0, 1, 0], sizes = [4, 1, 1], strides = [1, 1, 1]} : vector<4x4x2xf32> to vector<4x1x1xf32>
    %29 = vector.extract_strided_slice %5 {offsets = [0, 2, 0], sizes = [4, 1, 1], strides = [1, 1, 1]} : vector<4x4x2xf32> to vector<4x1x1xf32>
    %30 = vector.extract_strided_slice %5 {offsets = [0, 3, 0], sizes = [4, 1, 1], strides = [1, 1, 1]} : vector<4x4x2xf32> to vector<4x1x1xf32>
    %31 = vector.extract_strided_slice %5 {offsets = [0, 0, 1], sizes = [4, 1, 1], strides = [1, 1, 1]} : vector<4x4x2xf32> to vector<4x1x1xf32>
    %32 = vector.extract_strided_slice %5 {offsets = [0, 1, 1], sizes = [4, 1, 1], strides = [1, 1, 1]} : vector<4x4x2xf32> to vector<4x1x1xf32>
    %33 = vector.extract_strided_slice %5 {offsets = [0, 2, 1], sizes = [4, 1, 1], strides = [1, 1, 1]} : vector<4x4x2xf32> to vector<4x1x1xf32>
    %34 = vector.extract_strided_slice %5 {offsets = [0, 3, 1], sizes = [4, 1, 1], strides = [1, 1, 1]} : vector<4x4x2xf32> to vector<4x1x1xf32>
    %35 = vector.extract_strided_slice %6 {offsets = [0, 0, 0], sizes = [4, 1, 1], strides = [1, 1, 1]} : vector<4x4x2xf32> to vector<4x1x1xf32>
    %36 = vector.extract_strided_slice %6 {offsets = [0, 1, 0], sizes = [4, 1, 1], strides = [1, 1, 1]} : vector<4x4x2xf32> to vector<4x1x1xf32>
    %37 = vector.extract_strided_slice %6 {offsets = [0, 2, 0], sizes = [4, 1, 1], strides = [1, 1, 1]} : vector<4x4x2xf32> to vector<4x1x1xf32>
    %38 = vector.extract_strided_slice %6 {offsets = [0, 3, 0], sizes = [4, 1, 1], strides = [1, 1, 1]} : vector<4x4x2xf32> to vector<4x1x1xf32>
    %39 = vector.extract_strided_slice %6 {offsets = [0, 0, 1], sizes = [4, 1, 1], strides = [1, 1, 1]} : vector<4x4x2xf32> to vector<4x1x1xf32>
    %40 = vector.extract_strided_slice %6 {offsets = [0, 1, 1], sizes = [4, 1, 1], strides = [1, 1, 1]} : vector<4x4x2xf32> to vector<4x1x1xf32>
    %41 = vector.extract_strided_slice %6 {offsets = [0, 2, 1], sizes = [4, 1, 1], strides = [1, 1, 1]} : vector<4x4x2xf32> to vector<4x1x1xf32>
    %42 = vector.extract_strided_slice %6 {offsets = [0, 3, 1], sizes = [4, 1, 1], strides = [1, 1, 1]} : vector<4x4x2xf32> to vector<4x1x1xf32>
    %43 = vector.extract_strided_slice %7 {offsets = [0, 0, 0], sizes = [4, 1, 1], strides = [1, 1, 1]} : vector<4x2x1xf32> to vector<4x1x1xf32>
    %44 = vector.extract_strided_slice %7 {offsets = [0, 1, 0], sizes = [4, 1, 1], strides = [1, 1, 1]} : vector<4x2x1xf32> to vector<4x1x1xf32>
    %45 = tpu.iota {dimensions = array<i32: 1>} : vector<1x16x1xi32>
    %c0_i32 = arith.constant 0 : i32
    %46 = vector.broadcast %c0_i32 : i32 to vector<1x16x1xi32>
    %47 = arith.cmpi eq, %45, %46 : vector<1x16x1xi32>
    %48 = arith.extui %47 : vector<1x16x1xi1> to vector<1x16x1xi32>
    %49 = arith.sitofp %48 : vector<1x16x1xi32> to vector<1x16x1xf32>
    %c15_i32 = arith.constant 15 : i32
    %50 = vector.broadcast %c15_i32 : i32 to vector<1x16x1xi32>
    %51 = arith.cmpi eq, %45, %50 : vector<1x16x1xi32>
    %52 = arith.extui %51 : vector<1x16x1xi1> to vector<1x16x1xi32>
    %53 = arith.sitofp %52 : vector<1x16x1xi32> to vector<1x16x1xf32>
    %cst = arith.constant 1.000000e+00 : f32
    %54 = vector.broadcast %cst : f32 to vector<1x16x1xf32>
    %55 = arith.subf %54, %49 : vector<1x16x1xf32>
    %56 = arith.subf %55, %53 : vector<1x16x1xf32>
    %57 = vector.shape_cast %0 : vector<16x128xf32> to vector<1x16x128xf32>
    %c1_i32 = arith.constant 1 : i32
    %58 = tpu.dynamic_rotate %0 by %c1_i32 dim 0 : vector<16x128xf32>, i32 -> vector<16x128xf32>
    %59 = vector.shape_cast %58 : vector<16x128xf32> to vector<1x16x128xf32>
    %c15_i32_22 = arith.constant 15 : i32
    %60 = tpu.dynamic_rotate %0 by %c15_i32_22 dim 0 : vector<16x128xf32>, i32 -> vector<16x128xf32>
    %61 = vector.shape_cast %60 : vector<16x128xf32> to vector<1x16x128xf32>
    %62 = vector.broadcast %8 : vector<4x1x1xf32> to vector<4x16x128xf32>
    %63 = vector.broadcast %59 : vector<1x16x128xf32> to vector<4x16x128xf32>
    %64 = arith.mulf %62, %63 : vector<4x16x128xf32>
    %65 = vector.broadcast %9 : vector<4x1x1xf32> to vector<4x16x128xf32>
    %66 = vector.broadcast %57 : vector<1x16x128xf32> to vector<4x16x128xf32>
    %67 = arith.mulf %65, %66 : vector<4x16x128xf32>
    %68 = arith.addf %64, %67 : vector<4x16x128xf32>
    %69 = vector.broadcast %10 : vector<4x1x1xf32> to vector<4x16x128xf32>
    %70 = vector.broadcast %61 : vector<1x16x128xf32> to vector<4x16x128xf32>
    %71 = arith.mulf %69, %70 : vector<4x16x128xf32>
    %72 = arith.addf %68, %71 : vector<4x16x128xf32>
    %73 = vector.extract_strided_slice %0 {offsets = [0, 0], sizes = [1, 128], strides = [1, 1]} : vector<16x128xf32> to vector<1x128xf32>
    %74 = vector.shape_cast %73 : vector<1x128xf32> to vector<1x1x128xf32>
    %75 = vector.broadcast %11 : vector<4x1x1xf32> to vector<4x1x128xf32>
    %76 = vector.broadcast %74 : vector<1x1x128xf32> to vector<4x1x128xf32>
    %77 = arith.mulf %75, %76 : vector<4x1x128xf32>
    %78 = vector.extract_strided_slice %0 {offsets = [1, 0], sizes = [1, 128], strides = [1, 1]} : vector<16x128xf32> to vector<1x128xf32>
    %79 = vector.shape_cast %78 : vector<1x128xf32> to vector<1x1x128xf32>
    %80 = vector.broadcast %12 : vector<4x1x1xf32> to vector<4x1x128xf32>
    %81 = vector.broadcast %79 : vector<1x1x128xf32> to vector<4x1x128xf32>
    %82 = arith.mulf %80, %81 : vector<4x1x128xf32>
    %83 = arith.addf %77, %82 : vector<4x1x128xf32>
    %84 = vector.extract_strided_slice %0 {offsets = [14, 0], sizes = [1, 128], strides = [1, 1]} : vector<16x128xf32> to vector<1x128xf32>
    %85 = vector.shape_cast %84 : vector<1x128xf32> to vector<1x1x128xf32>
    %86 = vector.broadcast %13 : vector<4x1x1xf32> to vector<4x1x128xf32>
    %87 = vector.broadcast %85 : vector<1x1x128xf32> to vector<4x1x128xf32>
    %88 = arith.mulf %86, %87 : vector<4x1x128xf32>
    %89 = vector.extract_strided_slice %0 {offsets = [15, 0], sizes = [1, 128], strides = [1, 1]} : vector<16x128xf32> to vector<1x128xf32>
    %90 = vector.shape_cast %89 : vector<1x128xf32> to vector<1x1x128xf32>
    %91 = vector.broadcast %14 : vector<4x1x1xf32> to vector<4x1x128xf32>
    %92 = vector.broadcast %90 : vector<1x1x128xf32> to vector<4x1x128xf32>
    %93 = arith.mulf %91, %92 : vector<4x1x128xf32>
    %94 = arith.addf %88, %93 : vector<4x1x128xf32>
    %95 = vector.broadcast %56 : vector<1x16x1xf32> to vector<4x16x128xf32>
    %96 = arith.mulf %95, %72 : vector<4x16x128xf32>
    %97 = vector.broadcast %49 : vector<1x16x1xf32> to vector<4x16x128xf32>
    %98 = vector.broadcast %83 : vector<4x1x128xf32> to vector<4x16x128xf32>
    %99 = arith.mulf %97, %98 : vector<4x16x128xf32>
    %100 = arith.addf %96, %99 : vector<4x16x128xf32>
    %101 = vector.broadcast %53 : vector<1x16x1xf32> to vector<4x16x128xf32>
    %102 = vector.broadcast %94 : vector<4x1x128xf32> to vector<4x16x128xf32>
    %103 = arith.mulf %101, %102 : vector<4x16x128xf32>
    %104 = arith.addf %100, %103 : vector<4x16x128xf32>
    %cst_23 = arith.constant 0.000000e+00 : f32
    %105 = vector.broadcast %cst_23 : f32 to vector<4x16x128xf32>
    %cst_24 = arith.constant 0.000000e+00 : f32
    %106 = vector.broadcast %cst_24 : f32 to vector<4x1x128xf32>
    %cst_25 = arith.constant 0.000000e+00 : f32
    %107 = vector.broadcast %cst_25 : f32 to vector<4x1x128xf32>
    %108 = vector.extract_strided_slice %104 {offsets = [0, 0, 0], sizes = [1, 16, 128], strides = [1, 1, 1]} : vector<4x16x128xf32> to vector<1x16x128xf32>
    %109 = vector.shape_cast %108 : vector<1x16x128xf32> to vector<16x128xf32>
    %110 = vector.shape_cast %109 : vector<16x128xf32> to vector<1x16x128xf32>
    %c1_i32_26 = arith.constant 1 : i32
    %111 = tpu.dynamic_rotate %109 by %c1_i32_26 dim 0 : vector<16x128xf32>, i32 -> vector<16x128xf32>
    %112 = vector.shape_cast %111 : vector<16x128xf32> to vector<1x16x128xf32>
    %c15_i32_27 = arith.constant 15 : i32
    %113 = tpu.dynamic_rotate %109 by %c15_i32_27 dim 0 : vector<16x128xf32>, i32 -> vector<16x128xf32>
    %114 = vector.shape_cast %113 : vector<16x128xf32> to vector<1x16x128xf32>
    %115 = vector.broadcast %15 : vector<4x1x1xf32> to vector<4x16x128xf32>
    %116 = vector.broadcast %112 : vector<1x16x128xf32> to vector<4x16x128xf32>
    %117 = arith.mulf %115, %116 : vector<4x16x128xf32>
    %118 = vector.broadcast %19 : vector<4x1x1xf32> to vector<4x16x128xf32>
    %119 = vector.broadcast %110 : vector<1x16x128xf32> to vector<4x16x128xf32>
    %120 = arith.mulf %118, %119 : vector<4x16x128xf32>
    %121 = arith.addf %117, %120 : vector<4x16x128xf32>
    %122 = vector.broadcast %23 : vector<4x1x1xf32> to vector<4x16x128xf32>
    %123 = vector.broadcast %114 : vector<1x16x128xf32> to vector<4x16x128xf32>
    %124 = arith.mulf %122, %123 : vector<4x16x128xf32>
    %125 = arith.addf %121, %124 : vector<4x16x128xf32>
    %126 = arith.addf %105, %125 : vector<4x16x128xf32>
    %127 = vector.extract_strided_slice %109 {offsets = [0, 0], sizes = [1, 128], strides = [1, 1]} : vector<16x128xf32> to vector<1x128xf32>
    %128 = vector.shape_cast %127 : vector<1x128xf32> to vector<1x1x128xf32>
    %129 = vector.broadcast %27 : vector<4x1x1xf32> to vector<4x1x128xf32>
    %130 = vector.broadcast %128 : vector<1x1x128xf32> to vector<4x1x128xf32>
    %131 = arith.mulf %129, %130 : vector<4x1x128xf32>
    %132 = vector.extract_strided_slice %109 {offsets = [1, 0], sizes = [1, 128], strides = [1, 1]} : vector<16x128xf32> to vector<1x128xf32>
    %133 = vector.shape_cast %132 : vector<1x128xf32> to vector<1x1x128xf32>
    %134 = vector.broadcast %31 : vector<4x1x1xf32> to vector<4x1x128xf32>
    %135 = vector.broadcast %133 : vector<1x1x128xf32> to vector<4x1x128xf32>
    %136 = arith.mulf %134, %135 : vector<4x1x128xf32>
    %137 = arith.addf %131, %136 : vector<4x1x128xf32>
    %138 = arith.addf %106, %137 : vector<4x1x128xf32>
    %139 = vector.extract_strided_slice %109 {offsets = [14, 0], sizes = [1, 128], strides = [1, 1]} : vector<16x128xf32> to vector<1x128xf32>
    %140 = vector.shape_cast %139 : vector<1x128xf32> to vector<1x1x128xf32>
    %141 = vector.broadcast %35 : vector<4x1x1xf32> to vector<4x1x128xf32>
    %142 = vector.broadcast %140 : vector<1x1x128xf32> to vector<4x1x128xf32>
    %143 = arith.mulf %141, %142 : vector<4x1x128xf32>
    %144 = vector.extract_strided_slice %109 {offsets = [15, 0], sizes = [1, 128], strides = [1, 1]} : vector<16x128xf32> to vector<1x128xf32>
    %145 = vector.shape_cast %144 : vector<1x128xf32> to vector<1x1x128xf32>
    %146 = vector.broadcast %39 : vector<4x1x1xf32> to vector<4x1x128xf32>
    %147 = vector.broadcast %145 : vector<1x1x128xf32> to vector<4x1x128xf32>
    %148 = arith.mulf %146, %147 : vector<4x1x128xf32>
    %149 = arith.addf %143, %148 : vector<4x1x128xf32>
    %150 = arith.addf %107, %149 : vector<4x1x128xf32>
    %151 = vector.extract_strided_slice %104 {offsets = [1, 0, 0], sizes = [1, 16, 128], strides = [1, 1, 1]} : vector<4x16x128xf32> to vector<1x16x128xf32>
    %152 = vector.shape_cast %151 : vector<1x16x128xf32> to vector<16x128xf32>
    %153 = vector.shape_cast %152 : vector<16x128xf32> to vector<1x16x128xf32>
    %c1_i32_28 = arith.constant 1 : i32
    %154 = tpu.dynamic_rotate %152 by %c1_i32_28 dim 0 : vector<16x128xf32>, i32 -> vector<16x128xf32>
    %155 = vector.shape_cast %154 : vector<16x128xf32> to vector<1x16x128xf32>
    %c15_i32_29 = arith.constant 15 : i32
    %156 = tpu.dynamic_rotate %152 by %c15_i32_29 dim 0 : vector<16x128xf32>, i32 -> vector<16x128xf32>
    %157 = vector.shape_cast %156 : vector<16x128xf32> to vector<1x16x128xf32>
    %158 = vector.broadcast %16 : vector<4x1x1xf32> to vector<4x16x128xf32>
    %159 = vector.broadcast %155 : vector<1x16x128xf32> to vector<4x16x128xf32>
    %160 = arith.mulf %158, %159 : vector<4x16x128xf32>
    %161 = vector.broadcast %20 : vector<4x1x1xf32> to vector<4x16x128xf32>
    %162 = vector.broadcast %153 : vector<1x16x128xf32> to vector<4x16x128xf32>
    %163 = arith.mulf %161, %162 : vector<4x16x128xf32>
    %164 = arith.addf %160, %163 : vector<4x16x128xf32>
    %165 = vector.broadcast %24 : vector<4x1x1xf32> to vector<4x16x128xf32>
    %166 = vector.broadcast %157 : vector<1x16x128xf32> to vector<4x16x128xf32>
    %167 = arith.mulf %165, %166 : vector<4x16x128xf32>
    %168 = arith.addf %164, %167 : vector<4x16x128xf32>
    %169 = arith.addf %126, %168 : vector<4x16x128xf32>
    %170 = vector.extract_strided_slice %152 {offsets = [0, 0], sizes = [1, 128], strides = [1, 1]} : vector<16x128xf32> to vector<1x128xf32>
    %171 = vector.shape_cast %170 : vector<1x128xf32> to vector<1x1x128xf32>
    %172 = vector.broadcast %28 : vector<4x1x1xf32> to vector<4x1x128xf32>
    %173 = vector.broadcast %171 : vector<1x1x128xf32> to vector<4x1x128xf32>
    %174 = arith.mulf %172, %173 : vector<4x1x128xf32>
    %175 = vector.extract_strided_slice %152 {offsets = [1, 0], sizes = [1, 128], strides = [1, 1]} : vector<16x128xf32> to vector<1x128xf32>
    %176 = vector.shape_cast %175 : vector<1x128xf32> to vector<1x1x128xf32>
    %177 = vector.broadcast %32 : vector<4x1x1xf32> to vector<4x1x128xf32>
    %178 = vector.broadcast %176 : vector<1x1x128xf32> to vector<4x1x128xf32>
    %179 = arith.mulf %177, %178 : vector<4x1x128xf32>
    %180 = arith.addf %174, %179 : vector<4x1x128xf32>
    %181 = arith.addf %138, %180 : vector<4x1x128xf32>
    %182 = vector.extract_strided_slice %152 {offsets = [14, 0], sizes = [1, 128], strides = [1, 1]} : vector<16x128xf32> to vector<1x128xf32>
    %183 = vector.shape_cast %182 : vector<1x128xf32> to vector<1x1x128xf32>
    %184 = vector.broadcast %36 : vector<4x1x1xf32> to vector<4x1x128xf32>
    %185 = vector.broadcast %183 : vector<1x1x128xf32> to vector<4x1x128xf32>
    %186 = arith.mulf %184, %185 : vector<4x1x128xf32>
    %187 = vector.extract_strided_slice %152 {offsets = [15, 0], sizes = [1, 128], strides = [1, 1]} : vector<16x128xf32> to vector<1x128xf32>
    %188 = vector.shape_cast %187 : vector<1x128xf32> to vector<1x1x128xf32>
    %189 = vector.broadcast %40 : vector<4x1x1xf32> to vector<4x1x128xf32>
    %190 = vector.broadcast %188 : vector<1x1x128xf32> to vector<4x1x128xf32>
    %191 = arith.mulf %189, %190 : vector<4x1x128xf32>
    %192 = arith.addf %186, %191 : vector<4x1x128xf32>
    %193 = arith.addf %150, %192 : vector<4x1x128xf32>
    %194 = vector.extract_strided_slice %104 {offsets = [2, 0, 0], sizes = [1, 16, 128], strides = [1, 1, 1]} : vector<4x16x128xf32> to vector<1x16x128xf32>
    %195 = vector.shape_cast %194 : vector<1x16x128xf32> to vector<16x128xf32>
    %196 = vector.shape_cast %195 : vector<16x128xf32> to vector<1x16x128xf32>
    %c1_i32_30 = arith.constant 1 : i32
    %197 = tpu.dynamic_rotate %195 by %c1_i32_30 dim 0 : vector<16x128xf32>, i32 -> vector<16x128xf32>
    %198 = vector.shape_cast %197 : vector<16x128xf32> to vector<1x16x128xf32>
    %c15_i32_31 = arith.constant 15 : i32
    %199 = tpu.dynamic_rotate %195 by %c15_i32_31 dim 0 : vector<16x128xf32>, i32 -> vector<16x128xf32>
    %200 = vector.shape_cast %199 : vector<16x128xf32> to vector<1x16x128xf32>
    %201 = vector.broadcast %17 : vector<4x1x1xf32> to vector<4x16x128xf32>
    %202 = vector.broadcast %198 : vector<1x16x128xf32> to vector<4x16x128xf32>
    %203 = arith.mulf %201, %202 : vector<4x16x128xf32>
    %204 = vector.broadcast %21 : vector<4x1x1xf32> to vector<4x16x128xf32>
    %205 = vector.broadcast %196 : vector<1x16x128xf32> to vector<4x16x128xf32>
    %206 = arith.mulf %204, %205 : vector<4x16x128xf32>
    %207 = arith.addf %203, %206 : vector<4x16x128xf32>
    %208 = vector.broadcast %25 : vector<4x1x1xf32> to vector<4x16x128xf32>
    %209 = vector.broadcast %200 : vector<1x16x128xf32> to vector<4x16x128xf32>
    %210 = arith.mulf %208, %209 : vector<4x16x128xf32>
    %211 = arith.addf %207, %210 : vector<4x16x128xf32>
    %212 = arith.addf %169, %211 : vector<4x16x128xf32>
    %213 = vector.extract_strided_slice %195 {offsets = [0, 0], sizes = [1, 128], strides = [1, 1]} : vector<16x128xf32> to vector<1x128xf32>
    %214 = vector.shape_cast %213 : vector<1x128xf32> to vector<1x1x128xf32>
    %215 = vector.broadcast %29 : vector<4x1x1xf32> to vector<4x1x128xf32>
    %216 = vector.broadcast %214 : vector<1x1x128xf32> to vector<4x1x128xf32>
    %217 = arith.mulf %215, %216 : vector<4x1x128xf32>
    %218 = vector.extract_strided_slice %195 {offsets = [1, 0], sizes = [1, 128], strides = [1, 1]} : vector<16x128xf32> to vector<1x128xf32>
    %219 = vector.shape_cast %218 : vector<1x128xf32> to vector<1x1x128xf32>
    %220 = vector.broadcast %33 : vector<4x1x1xf32> to vector<4x1x128xf32>
    %221 = vector.broadcast %219 : vector<1x1x128xf32> to vector<4x1x128xf32>
    %222 = arith.mulf %220, %221 : vector<4x1x128xf32>
    %223 = arith.addf %217, %222 : vector<4x1x128xf32>
    %224 = arith.addf %181, %223 : vector<4x1x128xf32>
    %225 = vector.extract_strided_slice %195 {offsets = [14, 0], sizes = [1, 128], strides = [1, 1]} : vector<16x128xf32> to vector<1x128xf32>
    %226 = vector.shape_cast %225 : vector<1x128xf32> to vector<1x1x128xf32>
    %227 = vector.broadcast %37 : vector<4x1x1xf32> to vector<4x1x128xf32>
    %228 = vector.broadcast %226 : vector<1x1x128xf32> to vector<4x1x128xf32>
    %229 = arith.mulf %227, %228 : vector<4x1x128xf32>
    %230 = vector.extract_strided_slice %195 {offsets = [15, 0], sizes = [1, 128], strides = [1, 1]} : vector<16x128xf32> to vector<1x128xf32>
    %231 = vector.shape_cast %230 : vector<1x128xf32> to vector<1x1x128xf32>
    %232 = vector.broadcast %41 : vector<4x1x1xf32> to vector<4x1x128xf32>
    %233 = vector.broadcast %231 : vector<1x1x128xf32> to vector<4x1x128xf32>
    %234 = arith.mulf %232, %233 : vector<4x1x128xf32>
    %235 = arith.addf %229, %234 : vector<4x1x128xf32>
    %236 = arith.addf %193, %235 : vector<4x1x128xf32>
    %237 = vector.extract_strided_slice %104 {offsets = [3, 0, 0], sizes = [1, 16, 128], strides = [1, 1, 1]} : vector<4x16x128xf32> to vector<1x16x128xf32>
    %238 = vector.shape_cast %237 : vector<1x16x128xf32> to vector<16x128xf32>
    %239 = vector.shape_cast %238 : vector<16x128xf32> to vector<1x16x128xf32>
    %c1_i32_32 = arith.constant 1 : i32
    %240 = tpu.dynamic_rotate %238 by %c1_i32_32 dim 0 : vector<16x128xf32>, i32 -> vector<16x128xf32>
    %241 = vector.shape_cast %240 : vector<16x128xf32> to vector<1x16x128xf32>
    %c15_i32_33 = arith.constant 15 : i32
    %242 = tpu.dynamic_rotate %238 by %c15_i32_33 dim 0 : vector<16x128xf32>, i32 -> vector<16x128xf32>
    %243 = vector.shape_cast %242 : vector<16x128xf32> to vector<1x16x128xf32>
    %244 = vector.broadcast %18 : vector<4x1x1xf32> to vector<4x16x128xf32>
    %245 = vector.broadcast %241 : vector<1x16x128xf32> to vector<4x16x128xf32>
    %246 = arith.mulf %244, %245 : vector<4x16x128xf32>
    %247 = vector.broadcast %22 : vector<4x1x1xf32> to vector<4x16x128xf32>
    %248 = vector.broadcast %239 : vector<1x16x128xf32> to vector<4x16x128xf32>
    %249 = arith.mulf %247, %248 : vector<4x16x128xf32>
    %250 = arith.addf %246, %249 : vector<4x16x128xf32>
    %251 = vector.broadcast %26 : vector<4x1x1xf32> to vector<4x16x128xf32>
    %252 = vector.broadcast %243 : vector<1x16x128xf32> to vector<4x16x128xf32>
    %253 = arith.mulf %251, %252 : vector<4x16x128xf32>
    %254 = arith.addf %250, %253 : vector<4x16x128xf32>
    %255 = arith.addf %212, %254 : vector<4x16x128xf32>
    %256 = vector.extract_strided_slice %238 {offsets = [0, 0], sizes = [1, 128], strides = [1, 1]} : vector<16x128xf32> to vector<1x128xf32>
    %257 = vector.shape_cast %256 : vector<1x128xf32> to vector<1x1x128xf32>
    %258 = vector.broadcast %30 : vector<4x1x1xf32> to vector<4x1x128xf32>
    %259 = vector.broadcast %257 : vector<1x1x128xf32> to vector<4x1x128xf32>
    %260 = arith.mulf %258, %259 : vector<4x1x128xf32>
    %261 = vector.extract_strided_slice %238 {offsets = [1, 0], sizes = [1, 128], strides = [1, 1]} : vector<16x128xf32> to vector<1x128xf32>
    %262 = vector.shape_cast %261 : vector<1x128xf32> to vector<1x1x128xf32>
    %263 = vector.broadcast %34 : vector<4x1x1xf32> to vector<4x1x128xf32>
    %264 = vector.broadcast %262 : vector<1x1x128xf32> to vector<4x1x128xf32>
    %265 = arith.mulf %263, %264 : vector<4x1x128xf32>
    %266 = arith.addf %260, %265 : vector<4x1x128xf32>
    %267 = arith.addf %224, %266 : vector<4x1x128xf32>
    %268 = vector.extract_strided_slice %238 {offsets = [14, 0], sizes = [1, 128], strides = [1, 1]} : vector<16x128xf32> to vector<1x128xf32>
    %269 = vector.shape_cast %268 : vector<1x128xf32> to vector<1x1x128xf32>
    %270 = vector.broadcast %38 : vector<4x1x1xf32> to vector<4x1x128xf32>
    %271 = vector.broadcast %269 : vector<1x1x128xf32> to vector<4x1x128xf32>
    %272 = arith.mulf %270, %271 : vector<4x1x128xf32>
    %273 = vector.extract_strided_slice %238 {offsets = [15, 0], sizes = [1, 128], strides = [1, 1]} : vector<16x128xf32> to vector<1x128xf32>
    %274 = vector.shape_cast %273 : vector<1x128xf32> to vector<1x1x128xf32>
    %275 = vector.broadcast %42 : vector<4x1x1xf32> to vector<4x1x128xf32>
    %276 = vector.broadcast %274 : vector<1x1x128xf32> to vector<4x1x128xf32>
    %277 = arith.mulf %275, %276 : vector<4x1x128xf32>
    %278 = arith.addf %272, %277 : vector<4x1x128xf32>
    %279 = arith.addf %236, %278 : vector<4x1x128xf32>
    %280 = vector.broadcast %56 : vector<1x16x1xf32> to vector<4x16x128xf32>
    %281 = arith.mulf %280, %255 : vector<4x16x128xf32>
    %282 = vector.broadcast %49 : vector<1x16x1xf32> to vector<4x16x128xf32>
    %283 = vector.broadcast %267 : vector<4x1x128xf32> to vector<4x16x128xf32>
    %284 = arith.mulf %282, %283 : vector<4x16x128xf32>
    %285 = arith.addf %281, %284 : vector<4x16x128xf32>
    %286 = vector.broadcast %53 : vector<1x16x1xf32> to vector<4x16x128xf32>
    %287 = vector.broadcast %279 : vector<4x1x128xf32> to vector<4x16x128xf32>
    %288 = arith.mulf %286, %287 : vector<4x16x128xf32>
    %289 = arith.addf %285, %288 : vector<4x16x128xf32>
    %290 = vector.broadcast %43 : vector<4x1x1xf32> to vector<4x16x128xf32>
    %291 = arith.mulf %290, %104 : vector<4x16x128xf32>
    %292 = vector.broadcast %44 : vector<4x1x1xf32> to vector<4x16x128xf32>
    %293 = arith.mulf %292, %289 : vector<4x16x128xf32>
    %294 = arith.addf %291, %293 : vector<4x16x128xf32>
    %cst_34 = arith.constant dense<0.000000e+00> : vector<16x128xf32>
    %295 = vector.multi_reduction <add>, %294, %cst_34 [0] : vector<4x16x128xf32> to vector<16x128xf32>
    %296 = arith.addf %0, %295 : vector<16x128xf32>
    %297 = vector.shape_cast %296 : vector<16x128xf32> to vector<1x16x128xf32>
    %c1_i32_35 = arith.constant 1 : i32
    %298 = tpu.dynamic_rotate %296 by %c1_i32_35 dim 0 : vector<16x128xf32>, i32 -> vector<16x128xf32>
    %299 = vector.shape_cast %298 : vector<16x128xf32> to vector<1x16x128xf32>
    %c15_i32_36 = arith.constant 15 : i32
    %300 = tpu.dynamic_rotate %296 by %c15_i32_36 dim 0 : vector<16x128xf32>, i32 -> vector<16x128xf32>
    %301 = vector.shape_cast %300 : vector<16x128xf32> to vector<1x16x128xf32>
    %302 = vector.broadcast %8 : vector<4x1x1xf32> to vector<4x16x128xf32>
    %303 = vector.broadcast %299 : vector<1x16x128xf32> to vector<4x16x128xf32>
    %304 = arith.mulf %302, %303 : vector<4x16x128xf32>
    %305 = vector.broadcast %9 : vector<4x1x1xf32> to vector<4x16x128xf32>
    %306 = vector.broadcast %297 : vector<1x16x128xf32> to vector<4x16x128xf32>
    %307 = arith.mulf %305, %306 : vector<4x16x128xf32>
    %308 = arith.addf %304, %307 : vector<4x16x128xf32>
    %309 = vector.broadcast %10 : vector<4x1x1xf32> to vector<4x16x128xf32>
    %310 = vector.broadcast %301 : vector<1x16x128xf32> to vector<4x16x128xf32>
    %311 = arith.mulf %309, %310 : vector<4x16x128xf32>
    %312 = arith.addf %308, %311 : vector<4x16x128xf32>
    %313 = vector.extract_strided_slice %296 {offsets = [0, 0], sizes = [1, 128], strides = [1, 1]} : vector<16x128xf32> to vector<1x128xf32>
    %314 = vector.shape_cast %313 : vector<1x128xf32> to vector<1x1x128xf32>
    %315 = vector.broadcast %11 : vector<4x1x1xf32> to vector<4x1x128xf32>
    %316 = vector.broadcast %314 : vector<1x1x128xf32> to vector<4x1x128xf32>
    %317 = arith.mulf %315, %316 : vector<4x1x128xf32>
    %318 = vector.extract_strided_slice %296 {offsets = [1, 0], sizes = [1, 128], strides = [1, 1]} : vector<16x128xf32> to vector<1x128xf32>
    %319 = vector.shape_cast %318 : vector<1x128xf32> to vector<1x1x128xf32>
    %320 = vector.broadcast %12 : vector<4x1x1xf32> to vector<4x1x128xf32>
    %321 = vector.broadcast %319 : vector<1x1x128xf32> to vector<4x1x128xf32>
    %322 = arith.mulf %320, %321 : vector<4x1x128xf32>
    %323 = arith.addf %317, %322 : vector<4x1x128xf32>
    %324 = vector.extract_strided_slice %296 {offsets = [14, 0], sizes = [1, 128], strides = [1, 1]} : vector<16x128xf32> to vector<1x128xf32>
    %325 = vector.shape_cast %324 : vector<1x128xf32> to vector<1x1x128xf32>
    %326 = vector.broadcast %13 : vector<4x1x1xf32> to vector<4x1x128xf32>
    %327 = vector.broadcast %325 : vector<1x1x128xf32> to vector<4x1x128xf32>
    %328 = arith.mulf %326, %327 : vector<4x1x128xf32>
    %329 = vector.extract_strided_slice %296 {offsets = [15, 0], sizes = [1, 128], strides = [1, 1]} : vector<16x128xf32> to vector<1x128xf32>
    %330 = vector.shape_cast %329 : vector<1x128xf32> to vector<1x1x128xf32>
    %331 = vector.broadcast %14 : vector<4x1x1xf32> to vector<4x1x128xf32>
    %332 = vector.broadcast %330 : vector<1x1x128xf32> to vector<4x1x128xf32>
    %333 = arith.mulf %331, %332 : vector<4x1x128xf32>
    %334 = arith.addf %328, %333 : vector<4x1x128xf32>
    %335 = vector.broadcast %56 : vector<1x16x1xf32> to vector<4x16x128xf32>
    %336 = arith.mulf %335, %312 : vector<4x16x128xf32>
    %337 = vector.broadcast %49 : vector<1x16x1xf32> to vector<4x16x128xf32>
    %338 = vector.broadcast %323 : vector<4x1x128xf32> to vector<4x16x128xf32>
    %339 = arith.mulf %337, %338 : vector<4x16x128xf32>
    %340 = arith.addf %336, %339 : vector<4x16x128xf32>
    %341 = vector.broadcast %53 : vector<1x16x1xf32> to vector<4x16x128xf32>
    %342 = vector.broadcast %334 : vector<4x1x128xf32> to vector<4x16x128xf32>
    %343 = arith.mulf %341, %342 : vector<4x16x128xf32>
    %344 = arith.addf %340, %343 : vector<4x16x128xf32>
    %cst_37 = arith.constant 0.000000e+00 : f32
    %345 = vector.broadcast %cst_37 : f32 to vector<4x16x128xf32>
    %cst_38 = arith.constant 0.000000e+00 : f32
    %346 = vector.broadcast %cst_38 : f32 to vector<4x1x128xf32>
    %cst_39 = arith.constant 0.000000e+00 : f32
    %347 = vector.broadcast %cst_39 : f32 to vector<4x1x128xf32>
    %348 = vector.extract_strided_slice %344 {offsets = [0, 0, 0], sizes = [1, 16, 128], strides = [1, 1, 1]} : vector<4x16x128xf32> to vector<1x16x128xf32>
    %349 = vector.shape_cast %348 : vector<1x16x128xf32> to vector<16x128xf32>
    %350 = vector.shape_cast %349 : vector<16x128xf32> to vector<1x16x128xf32>
    %c1_i32_40 = arith.constant 1 : i32
    %351 = tpu.dynamic_rotate %349 by %c1_i32_40 dim 0 : vector<16x128xf32>, i32 -> vector<16x128xf32>
    %352 = vector.shape_cast %351 : vector<16x128xf32> to vector<1x16x128xf32>
    %c15_i32_41 = arith.constant 15 : i32
    %353 = tpu.dynamic_rotate %349 by %c15_i32_41 dim 0 : vector<16x128xf32>, i32 -> vector<16x128xf32>
    %354 = vector.shape_cast %353 : vector<16x128xf32> to vector<1x16x128xf32>
    %355 = vector.broadcast %15 : vector<4x1x1xf32> to vector<4x16x128xf32>
    %356 = vector.broadcast %352 : vector<1x16x128xf32> to vector<4x16x128xf32>
    %357 = arith.mulf %355, %356 : vector<4x16x128xf32>
    %358 = vector.broadcast %19 : vector<4x1x1xf32> to vector<4x16x128xf32>
    %359 = vector.broadcast %350 : vector<1x16x128xf32> to vector<4x16x128xf32>
    %360 = arith.mulf %358, %359 : vector<4x16x128xf32>
    %361 = arith.addf %357, %360 : vector<4x16x128xf32>
    %362 = vector.broadcast %23 : vector<4x1x1xf32> to vector<4x16x128xf32>
    %363 = vector.broadcast %354 : vector<1x16x128xf32> to vector<4x16x128xf32>
    %364 = arith.mulf %362, %363 : vector<4x16x128xf32>
    %365 = arith.addf %361, %364 : vector<4x16x128xf32>
    %366 = arith.addf %345, %365 : vector<4x16x128xf32>
    %367 = vector.extract_strided_slice %349 {offsets = [0, 0], sizes = [1, 128], strides = [1, 1]} : vector<16x128xf32> to vector<1x128xf32>
    %368 = vector.shape_cast %367 : vector<1x128xf32> to vector<1x1x128xf32>
    %369 = vector.broadcast %27 : vector<4x1x1xf32> to vector<4x1x128xf32>
    %370 = vector.broadcast %368 : vector<1x1x128xf32> to vector<4x1x128xf32>
    %371 = arith.mulf %369, %370 : vector<4x1x128xf32>
    %372 = vector.extract_strided_slice %349 {offsets = [1, 0], sizes = [1, 128], strides = [1, 1]} : vector<16x128xf32> to vector<1x128xf32>
    %373 = vector.shape_cast %372 : vector<1x128xf32> to vector<1x1x128xf32>
    %374 = vector.broadcast %31 : vector<4x1x1xf32> to vector<4x1x128xf32>
    %375 = vector.broadcast %373 : vector<1x1x128xf32> to vector<4x1x128xf32>
    %376 = arith.mulf %374, %375 : vector<4x1x128xf32>
    %377 = arith.addf %371, %376 : vector<4x1x128xf32>
    %378 = arith.addf %346, %377 : vector<4x1x128xf32>
    %379 = vector.extract_strided_slice %349 {offsets = [14, 0], sizes = [1, 128], strides = [1, 1]} : vector<16x128xf32> to vector<1x128xf32>
    %380 = vector.shape_cast %379 : vector<1x128xf32> to vector<1x1x128xf32>
    %381 = vector.broadcast %35 : vector<4x1x1xf32> to vector<4x1x128xf32>
    %382 = vector.broadcast %380 : vector<1x1x128xf32> to vector<4x1x128xf32>
    %383 = arith.mulf %381, %382 : vector<4x1x128xf32>
    %384 = vector.extract_strided_slice %349 {offsets = [15, 0], sizes = [1, 128], strides = [1, 1]} : vector<16x128xf32> to vector<1x128xf32>
    %385 = vector.shape_cast %384 : vector<1x128xf32> to vector<1x1x128xf32>
    %386 = vector.broadcast %39 : vector<4x1x1xf32> to vector<4x1x128xf32>
    %387 = vector.broadcast %385 : vector<1x1x128xf32> to vector<4x1x128xf32>
    %388 = arith.mulf %386, %387 : vector<4x1x128xf32>
    %389 = arith.addf %383, %388 : vector<4x1x128xf32>
    %390 = arith.addf %347, %389 : vector<4x1x128xf32>
    %391 = vector.extract_strided_slice %344 {offsets = [1, 0, 0], sizes = [1, 16, 128], strides = [1, 1, 1]} : vector<4x16x128xf32> to vector<1x16x128xf32>
    %392 = vector.shape_cast %391 : vector<1x16x128xf32> to vector<16x128xf32>
    %393 = vector.shape_cast %392 : vector<16x128xf32> to vector<1x16x128xf32>
    %c1_i32_42 = arith.constant 1 : i32
    %394 = tpu.dynamic_rotate %392 by %c1_i32_42 dim 0 : vector<16x128xf32>, i32 -> vector<16x128xf32>
    %395 = vector.shape_cast %394 : vector<16x128xf32> to vector<1x16x128xf32>
    %c15_i32_43 = arith.constant 15 : i32
    %396 = tpu.dynamic_rotate %392 by %c15_i32_43 dim 0 : vector<16x128xf32>, i32 -> vector<16x128xf32>
    %397 = vector.shape_cast %396 : vector<16x128xf32> to vector<1x16x128xf32>
    %398 = vector.broadcast %16 : vector<4x1x1xf32> to vector<4x16x128xf32>
    %399 = vector.broadcast %395 : vector<1x16x128xf32> to vector<4x16x128xf32>
    %400 = arith.mulf %398, %399 : vector<4x16x128xf32>
    %401 = vector.broadcast %20 : vector<4x1x1xf32> to vector<4x16x128xf32>
    %402 = vector.broadcast %393 : vector<1x16x128xf32> to vector<4x16x128xf32>
    %403 = arith.mulf %401, %402 : vector<4x16x128xf32>
    %404 = arith.addf %400, %403 : vector<4x16x128xf32>
    %405 = vector.broadcast %24 : vector<4x1x1xf32> to vector<4x16x128xf32>
    %406 = vector.broadcast %397 : vector<1x16x128xf32> to vector<4x16x128xf32>
    %407 = arith.mulf %405, %406 : vector<4x16x128xf32>
    %408 = arith.addf %404, %407 : vector<4x16x128xf32>
    %409 = arith.addf %366, %408 : vector<4x16x128xf32>
    %410 = vector.extract_strided_slice %392 {offsets = [0, 0], sizes = [1, 128], strides = [1, 1]} : vector<16x128xf32> to vector<1x128xf32>
    %411 = vector.shape_cast %410 : vector<1x128xf32> to vector<1x1x128xf32>
    %412 = vector.broadcast %28 : vector<4x1x1xf32> to vector<4x1x128xf32>
    %413 = vector.broadcast %411 : vector<1x1x128xf32> to vector<4x1x128xf32>
    %414 = arith.mulf %412, %413 : vector<4x1x128xf32>
    %415 = vector.extract_strided_slice %392 {offsets = [1, 0], sizes = [1, 128], strides = [1, 1]} : vector<16x128xf32> to vector<1x128xf32>
    %416 = vector.shape_cast %415 : vector<1x128xf32> to vector<1x1x128xf32>
    %417 = vector.broadcast %32 : vector<4x1x1xf32> to vector<4x1x128xf32>
    %418 = vector.broadcast %416 : vector<1x1x128xf32> to vector<4x1x128xf32>
    %419 = arith.mulf %417, %418 : vector<4x1x128xf32>
    %420 = arith.addf %414, %419 : vector<4x1x128xf32>
    %421 = arith.addf %378, %420 : vector<4x1x128xf32>
    %422 = vector.extract_strided_slice %392 {offsets = [14, 0], sizes = [1, 128], strides = [1, 1]} : vector<16x128xf32> to vector<1x128xf32>
    %423 = vector.shape_cast %422 : vector<1x128xf32> to vector<1x1x128xf32>
    %424 = vector.broadcast %36 : vector<4x1x1xf32> to vector<4x1x128xf32>
    %425 = vector.broadcast %423 : vector<1x1x128xf32> to vector<4x1x128xf32>
    %426 = arith.mulf %424, %425 : vector<4x1x128xf32>
    %427 = vector.extract_strided_slice %392 {offsets = [15, 0], sizes = [1, 128], strides = [1, 1]} : vector<16x128xf32> to vector<1x128xf32>
    %428 = vector.shape_cast %427 : vector<1x128xf32> to vector<1x1x128xf32>
    %429 = vector.broadcast %40 : vector<4x1x1xf32> to vector<4x1x128xf32>
    %430 = vector.broadcast %428 : vector<1x1x128xf32> to vector<4x1x128xf32>
    %431 = arith.mulf %429, %430 : vector<4x1x128xf32>
    %432 = arith.addf %426, %431 : vector<4x1x128xf32>
    %433 = arith.addf %390, %432 : vector<4x1x128xf32>
    %434 = vector.extract_strided_slice %344 {offsets = [2, 0, 0], sizes = [1, 16, 128], strides = [1, 1, 1]} : vector<4x16x128xf32> to vector<1x16x128xf32>
    %435 = vector.shape_cast %434 : vector<1x16x128xf32> to vector<16x128xf32>
    %436 = vector.shape_cast %435 : vector<16x128xf32> to vector<1x16x128xf32>
    %c1_i32_44 = arith.constant 1 : i32
    %437 = tpu.dynamic_rotate %435 by %c1_i32_44 dim 0 : vector<16x128xf32>, i32 -> vector<16x128xf32>
    %438 = vector.shape_cast %437 : vector<16x128xf32> to vector<1x16x128xf32>
    %c15_i32_45 = arith.constant 15 : i32
    %439 = tpu.dynamic_rotate %435 by %c15_i32_45 dim 0 : vector<16x128xf32>, i32 -> vector<16x128xf32>
    %440 = vector.shape_cast %439 : vector<16x128xf32> to vector<1x16x128xf32>
    %441 = vector.broadcast %17 : vector<4x1x1xf32> to vector<4x16x128xf32>
    %442 = vector.broadcast %438 : vector<1x16x128xf32> to vector<4x16x128xf32>
    %443 = arith.mulf %441, %442 : vector<4x16x128xf32>
    %444 = vector.broadcast %21 : vector<4x1x1xf32> to vector<4x16x128xf32>
    %445 = vector.broadcast %436 : vector<1x16x128xf32> to vector<4x16x128xf32>
    %446 = arith.mulf %444, %445 : vector<4x16x128xf32>
    %447 = arith.addf %443, %446 : vector<4x16x128xf32>
    %448 = vector.broadcast %25 : vector<4x1x1xf32> to vector<4x16x128xf32>
    %449 = vector.broadcast %440 : vector<1x16x128xf32> to vector<4x16x128xf32>
    %450 = arith.mulf %448, %449 : vector<4x16x128xf32>
    %451 = arith.addf %447, %450 : vector<4x16x128xf32>
    %452 = arith.addf %409, %451 : vector<4x16x128xf32>
    %453 = vector.extract_strided_slice %435 {offsets = [0, 0], sizes = [1, 128], strides = [1, 1]} : vector<16x128xf32> to vector<1x128xf32>
    %454 = vector.shape_cast %453 : vector<1x128xf32> to vector<1x1x128xf32>
    %455 = vector.broadcast %29 : vector<4x1x1xf32> to vector<4x1x128xf32>
    %456 = vector.broadcast %454 : vector<1x1x128xf32> to vector<4x1x128xf32>
    %457 = arith.mulf %455, %456 : vector<4x1x128xf32>
    %458 = vector.extract_strided_slice %435 {offsets = [1, 0], sizes = [1, 128], strides = [1, 1]} : vector<16x128xf32> to vector<1x128xf32>
    %459 = vector.shape_cast %458 : vector<1x128xf32> to vector<1x1x128xf32>
    %460 = vector.broadcast %33 : vector<4x1x1xf32> to vector<4x1x128xf32>
    %461 = vector.broadcast %459 : vector<1x1x128xf32> to vector<4x1x128xf32>
    %462 = arith.mulf %460, %461 : vector<4x1x128xf32>
    %463 = arith.addf %457, %462 : vector<4x1x128xf32>
    %464 = arith.addf %421, %463 : vector<4x1x128xf32>
    %465 = vector.extract_strided_slice %435 {offsets = [14, 0], sizes = [1, 128], strides = [1, 1]} : vector<16x128xf32> to vector<1x128xf32>
    %466 = vector.shape_cast %465 : vector<1x128xf32> to vector<1x1x128xf32>
    %467 = vector.broadcast %37 : vector<4x1x1xf32> to vector<4x1x128xf32>
    %468 = vector.broadcast %466 : vector<1x1x128xf32> to vector<4x1x128xf32>
    %469 = arith.mulf %467, %468 : vector<4x1x128xf32>
    %470 = vector.extract_strided_slice %435 {offsets = [15, 0], sizes = [1, 128], strides = [1, 1]} : vector<16x128xf32> to vector<1x128xf32>
    %471 = vector.shape_cast %470 : vector<1x128xf32> to vector<1x1x128xf32>
    %472 = vector.broadcast %41 : vector<4x1x1xf32> to vector<4x1x128xf32>
    %473 = vector.broadcast %471 : vector<1x1x128xf32> to vector<4x1x128xf32>
    %474 = arith.mulf %472, %473 : vector<4x1x128xf32>
    %475 = arith.addf %469, %474 : vector<4x1x128xf32>
    %476 = arith.addf %433, %475 : vector<4x1x128xf32>
    %477 = vector.extract_strided_slice %344 {offsets = [3, 0, 0], sizes = [1, 16, 128], strides = [1, 1, 1]} : vector<4x16x128xf32> to vector<1x16x128xf32>
    %478 = vector.shape_cast %477 : vector<1x16x128xf32> to vector<16x128xf32>
    %479 = vector.shape_cast %478 : vector<16x128xf32> to vector<1x16x128xf32>
    %c1_i32_46 = arith.constant 1 : i32
    %480 = tpu.dynamic_rotate %478 by %c1_i32_46 dim 0 : vector<16x128xf32>, i32 -> vector<16x128xf32>
    %481 = vector.shape_cast %480 : vector<16x128xf32> to vector<1x16x128xf32>
    %c15_i32_47 = arith.constant 15 : i32
    %482 = tpu.dynamic_rotate %478 by %c15_i32_47 dim 0 : vector<16x128xf32>, i32 -> vector<16x128xf32>
    %483 = vector.shape_cast %482 : vector<16x128xf32> to vector<1x16x128xf32>
    %484 = vector.broadcast %18 : vector<4x1x1xf32> to vector<4x16x128xf32>
    %485 = vector.broadcast %481 : vector<1x16x128xf32> to vector<4x16x128xf32>
    %486 = arith.mulf %484, %485 : vector<4x16x128xf32>
    %487 = vector.broadcast %22 : vector<4x1x1xf32> to vector<4x16x128xf32>
    %488 = vector.broadcast %479 : vector<1x16x128xf32> to vector<4x16x128xf32>
    %489 = arith.mulf %487, %488 : vector<4x16x128xf32>
    %490 = arith.addf %486, %489 : vector<4x16x128xf32>
    %491 = vector.broadcast %26 : vector<4x1x1xf32> to vector<4x16x128xf32>
    %492 = vector.broadcast %483 : vector<1x16x128xf32> to vector<4x16x128xf32>
    %493 = arith.mulf %491, %492 : vector<4x16x128xf32>
    %494 = arith.addf %490, %493 : vector<4x16x128xf32>
    %495 = arith.addf %452, %494 : vector<4x16x128xf32>
    %496 = vector.extract_strided_slice %478 {offsets = [0, 0], sizes = [1, 128], strides = [1, 1]} : vector<16x128xf32> to vector<1x128xf32>
    %497 = vector.shape_cast %496 : vector<1x128xf32> to vector<1x1x128xf32>
    %498 = vector.broadcast %30 : vector<4x1x1xf32> to vector<4x1x128xf32>
    %499 = vector.broadcast %497 : vector<1x1x128xf32> to vector<4x1x128xf32>
    %500 = arith.mulf %498, %499 : vector<4x1x128xf32>
    %501 = vector.extract_strided_slice %478 {offsets = [1, 0], sizes = [1, 128], strides = [1, 1]} : vector<16x128xf32> to vector<1x128xf32>
    %502 = vector.shape_cast %501 : vector<1x128xf32> to vector<1x1x128xf32>
    %503 = vector.broadcast %34 : vector<4x1x1xf32> to vector<4x1x128xf32>
    %504 = vector.broadcast %502 : vector<1x1x128xf32> to vector<4x1x128xf32>
    %505 = arith.mulf %503, %504 : vector<4x1x128xf32>
    %506 = arith.addf %500, %505 : vector<4x1x128xf32>
    %507 = arith.addf %464, %506 : vector<4x1x128xf32>
    %508 = vector.extract_strided_slice %478 {offsets = [14, 0], sizes = [1, 128], strides = [1, 1]} : vector<16x128xf32> to vector<1x128xf32>
    %509 = vector.shape_cast %508 : vector<1x128xf32> to vector<1x1x128xf32>
    %510 = vector.broadcast %38 : vector<4x1x1xf32> to vector<4x1x128xf32>
    %511 = vector.broadcast %509 : vector<1x1x128xf32> to vector<4x1x128xf32>
    %512 = arith.mulf %510, %511 : vector<4x1x128xf32>
    %513 = vector.extract_strided_slice %478 {offsets = [15, 0], sizes = [1, 128], strides = [1, 1]} : vector<16x128xf32> to vector<1x128xf32>
    %514 = vector.shape_cast %513 : vector<1x128xf32> to vector<1x1x128xf32>
    %515 = vector.broadcast %42 : vector<4x1x1xf32> to vector<4x1x128xf32>
    %516 = vector.broadcast %514 : vector<1x1x128xf32> to vector<4x1x128xf32>
    %517 = arith.mulf %515, %516 : vector<4x1x128xf32>
    %518 = arith.addf %512, %517 : vector<4x1x128xf32>
    %519 = arith.addf %476, %518 : vector<4x1x128xf32>
    %520 = vector.broadcast %56 : vector<1x16x1xf32> to vector<4x16x128xf32>
    %521 = arith.mulf %520, %495 : vector<4x16x128xf32>
    %522 = vector.broadcast %49 : vector<1x16x1xf32> to vector<4x16x128xf32>
    %523 = vector.broadcast %507 : vector<4x1x128xf32> to vector<4x16x128xf32>
    %524 = arith.mulf %522, %523 : vector<4x16x128xf32>
    %525 = arith.addf %521, %524 : vector<4x16x128xf32>
    %526 = vector.broadcast %53 : vector<1x16x1xf32> to vector<4x16x128xf32>
    %527 = vector.broadcast %519 : vector<4x1x128xf32> to vector<4x16x128xf32>
    %528 = arith.mulf %526, %527 : vector<4x16x128xf32>
    %529 = arith.addf %525, %528 : vector<4x16x128xf32>
    %530 = vector.broadcast %43 : vector<4x1x1xf32> to vector<4x16x128xf32>
    %531 = arith.mulf %530, %344 : vector<4x16x128xf32>
    %532 = vector.broadcast %44 : vector<4x1x1xf32> to vector<4x16x128xf32>
    %533 = arith.mulf %532, %529 : vector<4x16x128xf32>
    %534 = arith.addf %531, %533 : vector<4x16x128xf32>
    %cst_48 = arith.constant dense<0.000000e+00> : vector<16x128xf32>
    %535 = vector.multi_reduction <add>, %534, %cst_48 [0] : vector<4x16x128xf32> to vector<16x128xf32>
    %536 = arith.addf %296, %535 : vector<16x128xf32>
    %c0_49 = arith.constant 0 : index
    %c0_50 = arith.constant 0 : index
    %537 = vector.load %arg9[%c0_49, %c0_50] : memref<16x128xf32, #tpu.memory_space<vmem>>, vector<16x128xf32>
    tpu.vector_store %arg9[%c0_49, %c0_50], %536 {strides = array<i32>} : memref<16x128xf32, #tpu.memory_space<vmem>>, vector<16x128xf32>,
    return
  }
  func.func @transform_0(%arg0: i32) -> (i32, i32) {
    %c0_i32 = arith.constant 0 : i32
    %c0_i32_0 = arith.constant 0 : i32
    return %c0_i32, %arg0 : i32, i32
  }
  func.func @transform_1(%arg0: i32) -> (i32, i32, i32) {
    %c0_i32 = arith.constant 0 : i32
    %c0_i32_0 = arith.constant 0 : i32
    %c0_i32_1 = arith.constant 0 : i32
    %c0_i32_2 = arith.constant 0 : i32
    return %c0_i32, %c0_i32_0, %c0_i32_1 : i32, i32, i32
  }
  func.func @transform_2(%arg0: i32) -> (i32, i32, i32) {
    %c0_i32 = arith.constant 0 : i32
    %c0_i32_0 = arith.constant 0 : i32
    %c0_i32_1 = arith.constant 0 : i32
    %c0_i32_2 = arith.constant 0 : i32
    return %c0_i32, %c0_i32_0, %c0_i32_1 : i32, i32, i32
  }
  func.func @transform_3(%arg0: i32) -> (i32, i32, i32) {
    %c0_i32 = arith.constant 0 : i32
    %c0_i32_0 = arith.constant 0 : i32
    %c0_i32_1 = arith.constant 0 : i32
    %c0_i32_2 = arith.constant 0 : i32
    return %c0_i32, %c0_i32_0, %c0_i32_1 : i32, i32, i32
  }
  func.func @transform_4(%arg0: i32) -> (i32, i32, i32) {
    %c0_i32 = arith.constant 0 : i32
    %c0_i32_0 = arith.constant 0 : i32
    %c0_i32_1 = arith.constant 0 : i32
    %c0_i32_2 = arith.constant 0 : i32
    return %c0_i32, %c0_i32_0, %c0_i32_1 : i32, i32, i32
  }
  func.func @transform_5(%arg0: i32) -> (i32, i32, i32) {
    %c0_i32 = arith.constant 0 : i32
    %c0_i32_0 = arith.constant 0 : i32
    %c0_i32_1 = arith.constant 0 : i32
    %c0_i32_2 = arith.constant 0 : i32
    return %c0_i32, %c0_i32_0, %c0_i32_1 : i32, i32, i32
  }
  func.func @transform_6(%arg0: i32) -> (i32, i32, i32) {
    %c0_i32 = arith.constant 0 : i32
    %c0_i32_0 = arith.constant 0 : i32
    %c0_i32_1 = arith.constant 0 : i32
    %c0_i32_2 = arith.constant 0 : i32
    return %c0_i32, %c0_i32_0, %c0_i32_1 : i32, i32, i32
  }
  func.func @transform_7(%arg0: i32) -> (i32, i32, i32) {
    %c0_i32 = arith.constant 0 : i32
    %c0_i32_0 = arith.constant 0 : i32
    %c0_i32_1 = arith.constant 0 : i32
    %c0_i32_2 = arith.constant 0 : i32
    return %c0_i32, %c0_i32_0, %c0_i32_1 : i32, i32, i32
  }
  func.func @transform_8(%arg0: i32) -> (i32, i32) {
    %c0_i32 = arith.constant 0 : i32
    %c0_i32_0 = arith.constant 0 : i32
    return %c0_i32, %arg0 : i32, i32
  }
}

</mosaic_0001>

<bundles_post_ra>
// kernel: tpu_custom_call.1
= control target key start
LH: loop header
LB: loop body
LE: loop exit
PB: predicated region body
PF: predicated region fallthrough
CT: control target
= control target key end

     0   :  { %s2150_s9 = smov 127   ;;  %v2151_v4 = vmov 0   ;;  %s2152_s14 = smov 126   ;;  %s4145_s0 = inlined_call_operand.vmem [shape: f32[16,128], index: 0, kind: input, shape index: {}]   ;;  %s4146_s1 = inlined_call_operand.vmem [shape: f32[4,3,1], index: 1, kind: input, shape index: {}]   ;;  %s4147_s2 = inlined_call_operand.vmem [shape: f32[4,2,1], index: 2, kind: input, shape index: {}]   ;;  %s4148_s3 = inlined_call_operand.vmem [shape: f32[4,2,1], index: 3, kind: input, shape index: {}]   ;;  %s4149_s4 = inlined_call_operand.vmem [shape: f32[4,4,3], index: 4, kind: input, shape index: {}]   ;;  %s4150_s5 = inlined_call_operand.vmem [shape: f32[4,4,2], index: 5, kind: input, shape index: {}]   ;;  %s4151_s6 = inlined_call_operand.vmem [shape: f32[4,4,2], index: 6, kind: input, shape index: {}]   ;;  %s4152_s7 = inlined_call_operand.vmem [shape: f32[4,2,1], index: 7, kind: input, shape index: {}]   ;;  %s4153_s8 = inlined_call_operand.hbm [shape: f32[16,128], index: 8, kind: output, shape index: {}]  }
   0x1   :  { %v2206_v0 = vld [vmem:[%s4149_s4 + $0x8] sm:$0xf]  ;;  %v2211_v1 = vld [vmem:[%s4149_s4] sm:$0xf]  ;;  %v2220_v2 = vld [vmem:[%s4149_s4 + $0xc] sm:$0xf]  ;;  %2116 = vset.pattern.permute.xlu1 %v2151_v4  ;;  %2115 = vset.pattern.permute.xlu0 %v2151_v4 }
   0x2   :  { %368 = vrot.lane.b32.xlu1 %v2206_v0, %s2150_s9  ;;  %364 = vrot.lane.b32.xlu0 %v2211_v1, %s2150_s9  ;;  %v2225_v3 = vld [vmem:[%s4149_s4 + $0x4] sm:$0xf]  ;;  %v32_v5 = vld [vmem:[%s4146_s1] sm:$0x7] }
   0x3   :  { %v33_v6 = vld [vmem:[%s4146_s1 + $0x4] sm:$0x7]  ;;  %v34_v7 = vld [vmem:[%s4146_s1 + $0x8] sm:$0x7]  ;;  %1971 = vpush %v32_v5  ;;  %v35_v8 = vld [vmem:[%s4146_s1 + $0xc] sm:$0x7] }
   0x4   :  { %v113_v9 = vrot.slane %v32_v5, 1  ;;  %1973 = vpush %v33_v6  ;;  %v114_v10 = vrot.slane %v33_v6, 1 }
   0x6   :  { %370 = vrot.lane.b32.xlu1 %v2220_v2, %s2150_s9  ;;  %366 = vrot.lane.b32.xlu0 %v2225_v3, %s2150_s9 }
   0xa   :  { %402 = vrot.lane.b32.xlu1 %v2225_v3, %s2152_s14  ;;  %400 = vrot.lane.b32.xlu0 %v2211_v1, %s2152_s14 }
   0xb   :  { %13 = vsyncpa [#allocation3], 0  ;;  %v2254_v11 = vrot.slane %v2225_v3, 1  ;;  %v2257_v12 = vrot.slane %v2211_v1, 1  ;;  %1975 = vpush %v34_v7  ;;  %v115_v13 = vrot.slane %v34_v7, 1  ;;  %v116_v14 = vrot.slane %v35_v8, 1 }
   0xc   :  { %1977 = vpush %v35_v8  ;;  %v145_v15 = vrot.slane %v32_v5, 2  ;;  %v146_v16 = vrot.slane %v33_v6, 2  ;;  %v2264_v17 = vrot.slane %v2220_v2, 1  ;;  %v2267_v18 = vrot.slane %v2206_v0, 1  ;;  %v37_v29 = vld [vmem:[%s4147_s2 + $0x2] sm:$0x3] }
   0xd   :  { %1979 = vpush %v113_v9  ;;  %v147_v19 = vrot.slane %v34_v7, 2  ;;  %v148_v20 = vrot.slane %v35_v8, 2  ;;  %v2286_v21 = vrot.slane %v2225_v3, 2  ;;  %v2289_v22 = vrot.slane %v2211_v1, 2  ;;  %v36_v30 = vld [vmem:[%s4147_s2] sm:$0x3] }
   0xe   :  { %406 = vrot.lane.b32.xlu1 %v2220_v2, %s2152_s14  ;;  %404 = vrot.lane.b32.xlu0 %v2206_v0, %s2152_s14  ;;  %1981 = vpush %v114_v10  ;;  %v2296_v23 = vrot.slane %v2220_v2, 2  ;;  %v2299_v24 = vrot.slane %v2206_v0, 2  ;;  %v2314_v25 = vrot.slane %v2225_v3, 3  ;;  %v2317_v26 = vrot.slane %v2211_v1, 3  ;;  %v41_v31 = vld [vmem:[%s4148_s3 + $0x2] sm:$0x3] }
   0xf   :  { %1983 = vpush %v115_v13  ;;  %v2324_v27 = vrot.slane %v2220_v2, 3  ;;  %v2327_v28 = vrot.slane %v2206_v0, 3  ;;  %v38_v32 = vld [vmem:[%s4147_s2 + $0x4] sm:$0x3]  ;;  %v39_v33 = vld [vmem:[%s4147_s2 + $0x6] sm:$0x3]  ;;  %v60_v6 = vlaneseq }
  0x10   :  { %1985 = vpush %v116_v14  ;;  %v40_v34 = vld [vmem:[%s4148_s3] sm:$0x3]  ;;  %v43_v35 = vld [vmem:[%s4148_s3 + $0x6] sm:$0x3]  ;;  %v42_v36 = vld [vmem:[%s4148_s3 + $0x4] sm:$0x3] }
  0x11   :  { %1987 = vpush %v145_v15  ;;  %v49_v37 = vld [vmem:[%s4150_s5 + $0x4] sm:$0xf]  ;;  %v48_v38 = vld [vmem:[%s4150_s5] sm:$0xf]  ;;  %v2153_v40 = vmov 1   ;;  %v2443_v10 = vld [vmem:[%s4145_s0 + $0x8] sm:$0xff] }
  0x12   :  { %590 = vrot.lane.b32.xlu1 %v2254_v11, %s2150_s9  ;;  %588 = vrot.lane.b32.xlu0 %v2257_v12, %s2150_s9  ;;  %1989 = vpush %v146_v16  ;;  %v52_v39 = vld [vmem:[%s4151_s6] sm:$0xf]  ;;  %v54_v41 = vld [vmem:[%s4151_s6 + $0x8] sm:$0xf]  ;;  %v80_v15 = vrot.slane %v2443_v10, 7 }
  0x13   :  { %1991 = vpush %v147_v19  ;;  %v50_v42 = vld [vmem:[%s4150_s5 + $0x8] sm:$0xf]  ;;  %v53_v43 = vld [vmem:[%s4151_s6 + $0x4] sm:$0xf]  ;;  %v55_v44 = vld [vmem:[%s4151_s6 + $0xc] sm:$0xf] }
  0x14   :  { %1993 = vpush %v148_v20  ;;  %v51_v45 = vld [vmem:[%s4150_s5 + $0xc] sm:$0xf]  ;;  %v2438_v9 = vld [vmem:[%s4145_s0] sm:$0xff] }
  0x15   :  { %1995 = vpush %v2211_v1  ;;  %v79_v14 = vrot.slane %v2438_v9, 7 }
  0x16   :  { %594 = vrot.lane.b32.xlu1 %v2264_v17, %s2150_s9  ;;  %592 = vrot.lane.b32.xlu0 %v2267_v18, %s2150_s9  ;;  %1997 = vpush %v2225_v3 }
  0x17   :  { %1999 = vpush %v2206_v0 }
  0x18   :  { %2001 = vpush %v2220_v2 }
  0x1a   :  { %626 = vrot.lane.b32.xlu1 %v2254_v11, %s2152_s14  ;;  %624 = vrot.lane.b32.xlu0 %v2257_v12, %s2152_s14 }
  0x1e   :  { %630 = vrot.lane.b32.xlu1 %v2264_v17, %s2152_s14  ;;  %628 = vrot.lane.b32.xlu0 %v2267_v18, %s2152_s14 }
  0x22   :  { %766 = vrot.lane.b32.xlu1 %v2286_v21, %s2150_s9  ;;  %764 = vrot.lane.b32.xlu0 %v2289_v22, %s2150_s9 }
  0x26   :  { %770 = vrot.lane.b32.xlu1 %v2296_v23, %s2150_s9  ;;  %768 = vrot.lane.b32.xlu0 %v2299_v24, %s2150_s9 }
  0x2a   :  { %802 = vrot.lane.b32.xlu1 %v2286_v21, %s2152_s14  ;;  %800 = vrot.lane.b32.xlu0 %v2289_v22, %s2152_s14 }
  0x2e   :  { %806 = vrot.lane.b32.xlu1 %v2296_v23, %s2152_s14  ;;  %804 = vrot.lane.b32.xlu0 %v2299_v24, %s2152_s14 }
  0x32   :  { %944 = vrot.lane.b32.xlu1 %v2314_v25, %s2150_s9  ;;  %942 = vrot.lane.b32.xlu0 %v2317_v26, %s2150_s9 }
  0x34   :  { %s2397_s5 = spop %1971 }
  0x35   :  { %s2399_s6 = spop %1973 }
  0x36   :  { %948 = vrot.lane.b32.xlu1 %v2324_v27, %s2150_s9  ;;  %946 = vrot.lane.b32.xlu0 %v2327_v28, %s2150_s9 }
  0x3a   :  { %980 = vrot.lane.b32.xlu1 %v2314_v25, %s2152_s14  ;;  %978 = vrot.lane.b32.xlu0 %v2317_v26, %s2152_s14 }
  0x3c   :  { %s2401_s27 = spop %1975 }
  0x3d   :  { %s2403_s28 = spop %1977 }
  0x3e   :  { %984 = vrot.lane.b32.xlu1 %v2324_v27, %s2152_s14  ;;  %982 = vrot.lane.b32.xlu0 %v2327_v28, %s2152_s14  ;;  %s2405_s29 = spop %1979 }
  0x3f   :  { %s2407_s30 = spop %1981 }
  0x40   :  { %s2411_s9 = spop %1983 }
  0x41   :  { %s2415_s10 = spop %1985 }
  0x42   :  { %184 = vperm.xlu0 %2115, %v37_v29   ;;  %179 = vperm.xlu1 %2116, %v36_v30   ;;  %s2417_s11 = spop %1987 }
  0x43   :  { %s2419_s12 = spop %1989 }
  0x44   :  { %s2421_s13 = spop %1991 }
  0x45   :  { %s2423_s14 = spop %1993 }
  0x46   :  { %224 = vperm.xlu0 %2115, %v41_v31   ;;  %189 = vperm.xlu1 %2116, %v38_v32   ;;  %s2425_s4 = spop %1995  ;;  %v2493_v31 = vstv %s2407_s30 }
  0x47   :  { %s2427_s15 = spop %1997  ;;  %4369 = vst [vmem:[#allocation11_spill] sm:$0xff] %v2493_v31 }
  0x48   :  { %s2431_s2 = spop %1999 }
  0x49   :  { %s2447_s19 = spop %2001 }
  0x4a   :  { %194 = vperm.xlu0 %2115, %v39_v33   ;;  %219 = vperm.xlu1 %2116, %v40_v34  }
  0x4e   :  { %234 = vperm.xlu0 %2115, %v43_v35   ;;  %229 = vperm.xlu1 %2116, %v42_v36   ;;  %v56_v36 = vld [vmem:[%s4152_s7] sm:$0x3] }
  0x52   :  { %451 = vperm.xlu0 %2115, %v49_v37   ;;  %446 = vperm.xlu1 %2116, %v48_v38  }
  0x56   :  { %501 = vperm.xlu0 %2115, %v52_v39   ;;  %2117 = vset.pattern.permute.xlu1 %v2153_v40 }
  0x57   :  { %469 = vperm.xlu1 %2117, %v48_v38  }
  0x5a   :  { %511 = vperm.xlu0 %2115, %v54_v41  }
  0x5b   :  { %2118 = vset.pattern.permute.xlu1 %v2151_v4 }
  0x5c   :  { %456 = vperm.xlu1 %2118, %v50_v42  }
  0x5e   :  { %2124 = vset.pattern.permute.xlu0 %v2153_v40 }
  0x5f   :  { %473 = vperm.xlu0 %2124, %v49_v37  }
  0x60   :  { %2119 = vset.pattern.permute.xlu1 %v2153_v40 }
  0x61   :  { %477 = vperm.xlu1 %2119, %v50_v42  }
  0x63   :  { %531 = vperm.xlu0 %2124, %v53_v43  }
  0x65   :  { %2120 = vset.pattern.permute.xlu1 %v2151_v4 }
  0x66   :  { %506 = vperm.xlu1 %2120, %v53_v43  }
  0x67   :  { %539 = vperm.xlu0 %2124, %v55_v44  }
  0x6a   :  { %2121 = vset.pattern.permute.xlu1 %v2153_v40 }
  0x6b   :  { %527 = vperm.xlu1 %2121, %v52_v39   ;;  %v2507_v39 = vstv %s2403_s28 }
  0x6c   :  { %4371 = vst [vmem:[#allocation13_spill] sm:$0xff] %v2507_v39 }
  0x6f   :  { %2122 = vset.pattern.permute.xlu1 %v2151_v4 }
  0x70   :  { %461 = vperm.xlu1 %2122, %v51_v45  }
  0x74   :  { %v369_v46 = vpop.permute.xlu1 %368  ;;  %v365_v47 = vpop.permute.xlu0 %364  ;;  %2123 = vset.pattern.permute.xlu1 %v2153_v40 }
  0x75   :  { %481 = vperm.xlu1 %2123, %v51_v45   ;;  %2003 = vpush %v365_v47  ;;  %v2521_v45 = vstv %s2411_s9 }
  0x76   :  { %4372 = vst [vmem:[#allocation14_spill] sm:$0xff] %v2521_v45 }
  0x78   :  { %v371_v48 = vpop.permute.xlu1 %370  ;;  %v367_v49 = vpop.permute.xlu0 %366 }
  0x79   :  { %535 = vperm.xlu1 %2123, %v54_v41   ;;  %2005 = vpush %v367_v49  ;;  %v57_v41 = vld [vmem:[%s4152_s7 + $0x2] sm:$0x3]  ;;  %v132_v49 = vmul.f32 %v2493_v31, %v2443_v10 }
  0x7a   :  { %2007 = vpush %v369_v46  ;;  %v58_v46 = vld [vmem:[%s4152_s7 + $0x4] sm:$0x3] }
  0x7b   :  { %2009 = vpush %v371_v48  ;;  %v131_v48 = vmul.f32 %v2493_v31, %v2438_v9 }
  0x7c   :  { %v403_v50 = vpop.permute.xlu1 %402  ;;  %v401_v51 = vpop.permute.xlu0 %400 }
  0x7d   :  { %2125 = vset.pattern.permute.xlu1 %v2151_v4  ;;  %2011 = vpush %v401_v51  ;;  %v1184_v51 = vrot.slane %v56_v36, 1 }
  0x7e   :  { %2013 = vpush %v403_v50  ;;  %516 = vperm.xlu1 %2125, %v55_v44   ;;  %v59_v50 = vld [vmem:[%s4152_s7 + $0x6] sm:$0x3] }
  0x80   :  { %v407_v52 = vpop.permute.xlu1 %406  ;;  %v405_v53 = vpop.permute.xlu0 %404 }
  0x81   :  { %2015 = vpush %v405_v53 }
  0x82   :  { %2017 = vpush %v407_v52 }
  0x83   :  { %2019 = vpush %v2257_v12 }
  0x84   :  { %v591_v54 = vpop.permute.xlu1 %590  ;;  %v589_v55 = vpop.permute.xlu0 %588  ;;  %2021 = vpush %v2254_v11  ;;  %v2445_v11 = vshrl.u32 %v60_v6, 7 }
  0x85   :  { %2023 = vpush %v2267_v18  ;;  %v85_v18 = vrot.slane %v2443_v10, 1 }
  0x86   :  { %2025 = vpush %v2264_v17  ;;  %4363 = vst [vmem:[#allocation5_spill] sm:$0xff] %v2445_v11  ;;  %v62_v16 = vadd.s32 8, %v2445_v11  ;;  %vm81_vm0 = vcmp.lt.s32.totalorder %v2445_v11, 1  ;;  %v84_v17 = vrot.slane %v2438_v9, 1  ;;  %vm63_vm1 = vcmp.eq.s32.totalorder %v2445_v11, 0 }
  0x87   :  { %2027 = vpush %v589_v55  ;;  %vm86_vm2 = vcmp.lt.s32.totalorder %v2445_v11, 7  ;;  %v1185_v55 = vrot.slane %v57_v41, 1 }
  0x88   :  { %2029 = vpush %v591_v54  ;;  %v595_v56 = vpop.permute.xlu1 %594  ;;  %v593_v57 = vpop.permute.xlu0 %592  ;;  %vm70_vm3 = vcmp.eq.s32.totalorder %v62_v16, 15  ;;  %v2487_v29 = vsel %vm86_vm2, %v84_v17, %v85_v18  ;;  %v2499_v33 = vsel %vm86_vm2, %v85_v18, %v84_v17  ;;  %v2541_v54 = vstv %s2415_s10 }
  0x89   :  { %2031 = vpush %v593_v57  ;;  %4373 = vst [vmem:[#allocation15_spill] sm:$0xff] %v2541_v54  ;;  %v133_v57 = vmul.f32 %v2521_v45, %v2438_v9 }
  0x8a   :  { %2033 = vpush %v595_v56 }
  0x8c   :  { %v627_v58 = vpop.permute.xlu1 %626  ;;  %v625_v59 = vpop.permute.xlu0 %624 }
  0x8d   :  { %2035 = vpush %v625_v59  ;;  %v1186_v59 = vrot.slane %v58_v46, 1 }
  0x8e   :  { %2037 = vpush %v627_v58  ;;  %v2548_v58 = vstv %s2417_s11 }
  0x8f   :  { %4374 = vst [vmem:[#allocation16_spill] sm:$0xff] %v2548_v58  ;;  %v162_v6 = vmul.f32 %v2548_v58, %v2499_v33 }
  0x90   :  { %v631_v60 = vpop.permute.xlu1 %630  ;;  %v629_v61 = vpop.permute.xlu0 %628 }
  0x91   :  { %2039 = vpush %v629_v61  ;;  %v2553_v61 = vstv %s2419_s12 }
  0x92   :  { %2041 = vpush %v631_v60  ;;  %4375 = vst [vmem:[#allocation17_spill] sm:$0xff] %v2553_v61 }
  0x93   :  { %2043 = vpush %v2289_v22  ;;  %v2466_v22 = vstv %s2397_s5 }
  0x94   :  { %v767_v62 = vpop.permute.xlu1 %766  ;;  %v765_v63 = vpop.permute.xlu0 %764  ;;  %2045 = vpush %v2286_v21  ;;  %v83_v21 = vsel %vm81_vm0, %v80_v15, %v79_v14  ;;  %4364 = vst [vmem:[#allocation6_spill] sm:$0xff] %v2466_v22 }
  0x95   :  { %2047 = vpush %v2299_v24  ;;  %v2471_v24 = vstv %s2399_s6  ;;  %v105_v30 = vmul.f32 %v2466_v22, %v83_v21  ;;  %v111_v52 = vmul.f32 %v2507_v39, %v83_v21 }
  0x96   :  { %2049 = vpush %v2296_v23  ;;  %v82_v23 = vsel %vm81_vm0, %v79_v14, %v80_v15  ;;  %4365 = vst [vmem:[#allocation7_spill] sm:$0xff] %v2471_v24  ;;  %v107_v38 = vmul.f32 %v2471_v24, %v83_v21 }
  0x97   :  { %2051 = vpush %v765_v63  ;;  %v106_v37 = vmul.f32 %v2466_v22, %v82_v23  ;;  %v108_v42 = vmul.f32 %v2471_v24, %v82_v23  ;;  %v112_v53 = vmul.f32 %v2507_v39, %v82_v23  ;;  %v1187_v63 = vrot.slane %v59_v50, 1 }
  0x98   :  { %2053 = vpush %v767_v62  ;;  %v771_v0 = vpop.permute.xlu1 %770  ;;  %v769_v1 = vpop.permute.xlu0 %768  ;;  %v2556_v62 = vstv %s2421_s13 }
  0x99   :  { %2055 = vpush %v769_v1  ;;  %4376 = vst [vmem:[#allocation18_spill] sm:$0xff] %v2556_v62  ;;  %v140_v1 = vadd.f32 %v132_v49, %v108_v42  ;;  %v165_v14 = vmul.f32 %v2556_v62, %v2487_v29  ;;  %v166_v18 = vmul.f32 %v2556_v62, %v2499_v33 }
  0x9a   :  { %2057 = vpush %v771_v0  ;;  %v139_v0 = vadd.f32 %v131_v48, %v107_v38 }
  0x9c   :  { %v803_v2 = vpop.permute.xlu1 %802  ;;  %v801_v3 = vpop.permute.xlu0 %800 }
  0x9d   :  { %2059 = vpush %v801_v3  ;;  %v135_v3 = vmul.f32 %v2541_v54, %v2438_v9 }
  0x9e   :  { %2061 = vpush %v803_v2  ;;  %v134_v2 = vmul.f32 %v2521_v45, %v2443_v10 }
  0x9f   :  { %v143_v17 = vadd.f32 %v135_v3, %v111_v52 }
  0xa0   :  { %v807_v4 = vpop.permute.xlu1 %806  ;;  %v805_v5 = vpop.permute.xlu0 %804 }
  0xa1   :  { %2063 = vpush %v805_v5  ;;  %v161_v5 = vmul.f32 %v2548_v58, %v2487_v29 }
  0xa2   :  { %2065 = vpush %v807_v4  ;;  %v136_v4 = vmul.f32 %v2541_v54, %v2443_v10 }
  0xa3   :  { %2067 = vpush %v2317_v26  ;;  %v2479_v26 = vstv %s2401_s27 }
  0xa4   :  { %v945_v7 = vpop.permute.xlu1 %944  ;;  %v943_v8 = vpop.permute.xlu0 %942  ;;  %2069 = vpush %v2314_v25  ;;  %v2474_v25 = vstv %s2405_s29  ;;  %4367 = vst [vmem:[#allocation9_spill] sm:$0xff] %v2479_v26  ;;  %v109_v43 = vmul.f32 %v2479_v26, %v83_v21  ;;  %v110_v47 = vmul.f32 %v2479_v26, %v82_v23 }
  0xa5   :  { %2071 = vpush %v2327_v28  ;;  %4366 = vst [vmem:[#allocation8_spill] sm:$0xff] %v2474_v25  ;;  %v129_v40 = vmul.f32 %v2474_v25, %v2438_v9  ;;  %v130_v44 = vmul.f32 %v2474_v25, %v2443_v10 }
  0xa6   :  { %2073 = vpush %v2324_v27  ;;  %s2449_s20 = spop %2003  ;;  %v2154_v27 = vmov 0.0   ;;  %v142_v16 = vadd.f32 %v134_v2, %v110_v47 }
  0xa7   :  { %2075 = vpush %v943_v8  ;;  %v2483_v28 = vsel %vm63_vm1, 1.0, %v2154_v27  ;;  %v2495_v32 = vsel %vm70_vm3, 1.0, %v2154_v27  ;;  %v137_v56 = vadd.f32 %v129_v40, %v105_v30  ;;  %v138_v60 = vadd.f32 %v130_v44, %v106_v37 }
  0xa8   :  { %2077 = vpush %v945_v7  ;;  %v949_v12 = vpop.permute.xlu1 %948  ;;  %v947_v13 = vpop.permute.xlu0 %946  ;;  %4368 = vst [vmem:[#allocation10_spill] sm:$0xff] %v2483_v28  ;;  %v2571_v7 = vstv %s2423_s14  ;;  %v141_v8 = vadd.f32 %v133_v57, %v109_v43  ;;  %v2582_v15 = vsub.f32 1.0, %v2483_v28  ;;  %v2591_v21 = vsub.f32 1.0, %v2495_v32 }
  0xa9   :  { %2079 = vpush %v947_v13  ;;  %4370 = vst [vmem:[#allocation12_spill] sm:$0xff] %v2495_v32  ;;  %v164_v13 = vmul.f32 %v2553_v61, %v2499_v33  ;;  %v169_v23 = vadd.f32 %v161_v5, %v137_v56  ;;  %v170_v27 = vadd.f32 %v162_v6, %v138_v60 }
  0xaa   :  { %2081 = vpush %v949_v12  ;;  %s2455_s21 = spop %2005  ;;  %4377 = vst [vmem:[#allocation19_spill] sm:$0xff] %v2571_v7  ;;  %v163_v12 = vmul.f32 %v2553_v61, %v2487_v29  ;;  %v174_v42 = vadd.f32 %v166_v18, %v142_v16 }
  0xab   :  { %s2461_s1 = spop %2007  ;;  %4378 = vst [vmem:[#allocation20_spill] sm:$0xff] %v2582_v15  ;;  %4379 = vst [vmem:[#allocation21_spill] sm:$0xff] %v2591_v21  ;;  %v2616_v44 = vmul.f32 %v169_v23, %v2582_v15 }
  0xac   :  { %v981_v19 = vpop.permute.xlu1 %980  ;;  %v979_v20 = vpop.permute.xlu0 %978  ;;  %s2476_s22 = spop %2009  ;;  %v171_v30 = vadd.f32 %v163_v12, %v139_v0  ;;  %v2642_v60 = vmul.f32 %v174_v42, %v2591_v21  ;;  %v2648_v0 = vstv %s2427_s15  ;;  %v2663_v12 = vstv %s2449_s20 }
  0xad   :  { %2083 = vpush %v979_v20  ;;  %v144_v20 = vadd.f32 %v136_v4, %v112_v53  ;;  %4386 = vst [vmem:[#allocation28_spill] sm:$0xff] %v2648_v0  ;;  %v2673_v16 = vstv %s2461_s1 }
  0xae   :  { %2085 = vpush %v981_v19  ;;  %s2489_s23 = spop %2011  ;;  %v167_v19 = vmul.f32 %v2571_v7, %v2487_v29  ;;  %4389 = vst [vmem:[#allocation31_spill] sm:$0xff] %v2663_v12 }
  0xaf   :  { %s2511_s26 = spop %2013  ;;  %4392 = vst [vmem:[#allocation34_spill] sm:$0xff] %v2673_v16 }
  0xb0   :  { %v985_v34 = vpop.permute.xlu1 %984  ;;  %v983_v35 = vpop.permute.xlu0 %982  ;;  %v175_v43 = vadd.f32 %v167_v19, %v143_v17  ;;  %v2676_v17 = vstv %s2476_s22 }
  0xb1   :  { %2087 = vpush %v983_v35  ;;  %v173_v35 = vadd.f32 %v165_v14, %v141_v8  ;;  %v2660_v8 = vstv %s2447_s19  ;;  %4393 = vst [vmem:[#allocation35_spill] sm:$0xff] %v2676_v17 }
  0xb2   :  { %2089 = vpush %v985_v34  ;;  %s2526_s29 = spop %2015  ;;  %v172_v34 = vadd.f32 %v164_v13, %v140_v1  ;;  %v2651_v1 = vstv %s2431_s2  ;;  %4388 = vst [vmem:[#allocation30_spill] sm:$0xff] %v2660_v8  ;;  %v2666_v13 = vstv %s2455_s21 }
  0xb3   :  { %2091 = vpush %v56_v36  ;;  %s2536_s16 = spop %2017  ;;  %v168_v36 = vmul.f32 %v2571_v7, %v2499_v33  ;;  %v2613_v33 = vsub.s32 0, %v2445_v11  ;;  %4387 = vst [vmem:[#allocation29_spill] sm:$0xff] %v2651_v1 }
  0xb4   :  { %2093 = vpush %v57_v41  ;;  %s2543_s17 = spop %2019  ;;  %v2608_v41 = vrot.slane %v2443_v10, 6  ;;  %v262_v10 = vmul.f32 %v171_v30, %v2582_v15  ;;  %v263_v49 = vmul.f32 %v172_v34, %v2591_v21  ;;  %4390 = vst [vmem:[#allocation32_spill] sm:$0xff] %v2666_v13  ;;  %v2700_v42 = vstv %s2536_s16 }
  0xb5   :  { %2095 = vpush %v58_v46  ;;  %s2550_s7 = spop %2021  ;;  %4382 = vst [vmem:[#allocation24_spill] sm:$0xff] %v2613_v33  ;;  %v2619_v46 = vmul.f32 %v170_v27, %v2591_v21 }
  0xb6   :  { %2097 = vpush %v59_v50  ;;  %s2558_s10 = spop %2023  ;;  %v2626_v50 = vmul.f32 %v173_v35, %v2582_v15  ;;  %v2689_v35 = vstv %s2511_s26  ;;  %4398 = vst [vmem:[#allocation40_spill] sm:$0xff] %v2700_v42 }
  0xb7   :  { %2099 = vpush %v1184_v51  ;;  %s2573_s11 = spop %2025  ;;  %v176_v51 = vadd.f32 %v168_v36, %v144_v20  ;;  %v2682_v20 = vstv %s2489_s23  ;;  %4396 = vst [vmem:[#allocation38_spill] sm:$0xff] %v2689_v35  ;;  %v2692_v36 = vstv %s2526_s29 }
  0xb8   :  { %2101 = vpush %v1185_v55  ;;  %s2584_s12 = spop %2027  ;;  %v2633_v55 = vstv %s2425_s4  ;;  %4394 = vst [vmem:[#allocation36_spill] sm:$0xff] %v2682_v20 }
  0xb9   :  { %2103 = vpush %v1186_v59  ;;  %s2593_s13 = spop %2029  ;;  %4385 = vst [vmem:[#allocation27_spill] sm:$0xff] %v2633_v55  ;;  %v2657_v6 = vmul.f32 %v176_v51, %v2591_v21  ;;  %v2704_v51 = vstv %s2543_s17 }
  0xba   :  { %2105 = vpush %v1187_v63  ;;  %s2597_s14 = spop %2031  ;;  %v2645_v63 = vmul.f32 %v175_v43, %v2582_v15  ;;  %4397 = vst [vmem:[#allocation39_spill] sm:$0xff] %v2692_v36 }
  0xbb   :  { %s2610_s18 = spop %2033  ;;  %4399 = vst [vmem:[#allocation41_spill] sm:$0xff] %v2704_v51 }
  0xbd   :  { %v2599_v37 = vpop.permute.xlu0 %184  ;;  %v2601_v38 = vpop.permute.xlu1 %179 }
  0xbe   :  { %4380 = vst [vmem:[#allocation22_spill] sm:$0xff] %v2599_v37  ;;  %4381 = vst [vmem:[#allocation23_spill] sm:$0xff] %v2601_v38  ;;  %v198_v29 = vmul.f32 %v2599_v37, %v2438_v9  ;;  %v197_v40 = vmul.f32 %v2601_v38, %v2438_v9  ;;  %s2621_s3 = spop %2035 }
  0xbf   :  { %s2635_s24 = spop %2037 }
  0xc0   :  { %v206_v47 = vrot.slane %v198_v29, 1  ;;  %v205_v48 = vrot.slane %v197_v40, 1 }
  0xc1   :  { %v2628_v52 = vpop.permute.xlu0 %224  ;;  %v2630_v53 = vpop.permute.xlu1 %189 }
  0xc2   :  { %4383 = vst [vmem:[#allocation25_spill] sm:$0xff] %v2628_v52  ;;  %4384 = vst [vmem:[#allocation26_spill] sm:$0xff] %v2630_v53  ;;  %v214_v56 = vadd.f32 %v206_v47, %v198_v29  ;;  %v241_v57 = vmul.f32 %v2608_v41, %v2628_v52  ;;  %v199_v59 = vmul.f32 %v2630_v53, %v2438_v9  ;;  %s2653_s4 = spop %2039  ;;  %v2742_v53 = vstv %s2635_s24 }
  0xc3   :  { %v213_v3 = vadd.f32 %v205_v48, %v197_v40  ;;  %s2668_s15 = spop %2041  ;;  %4410 = vst [vmem:[#allocation52_spill] sm:$0xff] %v2742_v53  ;;  %v2745_v37 = vstv %s2653_s4 }
  0xc4   :  { %v275_v2 = vrot.slane %v214_v56, %v2613_v33  ;;  %v249_v4 = vrot.slane %v241_v57, 1  ;;  %v207_v5 = vrot.slane %v199_v59, 1  ;;  %s2679_s2 = spop %2043  ;;  %v2707_v56 = vstv %s2550_s7  ;;  %4411 = vst [vmem:[#allocation53_spill] sm:$0xff] %v2745_v37 }
  0xc5   :  { %v2670_v14 = vpop.permute.xlu1 %219  ;;  %v2684_v30 = vpop.permute.xlu0 %194  ;;  %v271_v29 = vrot.slane %v213_v3, %v2613_v33  ;;  %s2697_s19 = spop %2045  ;;  %4400 = vst [vmem:[#allocation42_spill] sm:$0xff] %v2707_v56  ;;  %v2720_v3 = vstv %s2584_s12 }
  0xc6   :  { %4391 = vst [vmem:[#allocation33_spill] sm:$0xff] %v2670_v14  ;;  %v286_v18 = vmul.f32 %v2483_v28, %v275_v2  ;;  %v287_v19 = vmul.f32 0.0, %v275_v2  ;;  %v257_v23 = vadd.f32 %v249_v4, %v241_v57  ;;  %v215_v27 = vadd.f32 %v207_v5, %v199_v59  ;;  %4395 = vst [vmem:[#allocation37_spill] sm:$0xff] %v2684_v30  ;;  %s2715_s20 = spop %2047 }
  0xc7   :  { %v240_v34 = vmul.f32 %v2608_v41, %v2670_v14  ;;  %v200_v40 = vmul.f32 %v2684_v30, %v2438_v9  ;;  %v2710_v57 = vstv %s2558_s10  ;;  %v2713_v59 = vstv %s2573_s11  ;;  %4403 = vst [vmem:[#allocation45_spill] sm:$0xff] %v2720_v3  ;;  %s2050_s21 = spop %2049 }
  0xc8   :  { %v294_v43 = vadd.f32 %v286_v18, %v262_v10  ;;  %v295_v47 = vadd.f32 %v287_v19, %v263_v49  ;;  %v307_v48 = vrot.slane %v257_v23, %v2613_v33  ;;  %4401 = vst [vmem:[#allocation43_spill] sm:$0xff] %v2710_v57  ;;  %4402 = vst [vmem:[#allocation44_spill] sm:$0xff] %v2713_v59  ;;  %v2723_v4 = vstv %s2593_s13  ;;  %s2052_s1 = spop %2051 }
  0xc9   :  { %v279_v49 = vrot.slane %v215_v27, %v2613_v33  ;;  %v248_v2 = vrot.slane %v240_v34, 1  ;;  %4404 = vst [vmem:[#allocation46_spill] sm:$0xff] %v2723_v4  ;;  %v284_v5 = vmul.f32 %v2483_v28, %v271_v29  ;;  %v208_v18 = vrot.slane %v200_v40, 1  ;;  %v2733_v14 = vpop.permute.xlu0 %234  ;;  %s2054_s22 = spop %2053 }
  0xca   :  { %v318_v9 = vmul.f32 0.0, %v307_v48  ;;  %v319_v10 = vmul.f32 %v2495_v32, %v307_v48  ;;  %v2727_v19 = vstv %s2597_s14  ;;  %v285_v23 = vmul.f32 0.0, %v271_v29  ;;  %4407 = vst [vmem:[#allocation49_spill] sm:$0xff] %v2733_v14  ;;  %s2056_s23 = spop %2055 }
  0xcb   :  { %4405 = vst [vmem:[#allocation47_spill] sm:$0xff] %v2727_v19  ;;  %v2736_v27 = vstv %s2610_s18  ;;  %v2739_v30 = vstv %s2621_s3  ;;  %v288_v38 = vmul.f32 %v2483_v28, %v279_v49  ;;  %v2749_v29 = vstv %s2668_s15  ;;  %s2058_s25 = spop %2057 }
  0xcc   :  { %v2729_v52 = vadd.f32 %v318_v9, %v294_v43  ;;  %v2731_v48 = vadd.f32 %v319_v10, %v295_v47  ;;  %4408 = vst [vmem:[#allocation50_spill] sm:$0xff] %v2736_v27  ;;  %4409 = vst [vmem:[#allocation51_spill] sm:$0xff] %v2739_v30  ;;  %v256_v43 = vadd.f32 %v248_v2, %v240_v34  ;;  %v2752_v47 = vstv %s2679_s2  ;;  %v2765_v34 = vpop.permute.xlu1 %229 }
  0xcd   :  { %4412 = vst [vmem:[#allocation54_spill] sm:$0xff] %v2749_v29  ;;  %4413 = vst [vmem:[#allocation55_spill] sm:$0xff] %v2752_v47  ;;  %v292_v9 = vadd.f32 %v284_v5, %v2616_v44  ;;  %v289_v10 = vmul.f32 0.0, %v279_v49  ;;  %v216_v7 = vadd.f32 %v208_v18, %v200_v40  ;;  %v243_v62 = vmul.f32 %v2608_v41, %v2733_v14 }
  0xce   :  { %4406 = vst [vmem:[#allocation48_spill] sm:$0xff] %v2731_v48  ;;  %v293_v61 = vadd.f32 %v285_v23, %v2619_v46  ;;  %v2759_v58 = vrot.slane %v2729_v52, 7  ;;  %v557_v54 = vrot.slane %v2731_v48, 7  ;;  %v2763_v45 = vstv %s2697_s19  ;;  %4416 = vst [vmem:[#allocation58_spill] sm:$0xff] %v2765_v34  ;;  %s2060_s26 = spop %2059 }
  0xcf   :  { %4415 = vst [vmem:[#allocation57_spill] sm:$0xff] %v2763_v45  ;;  %v560_v2 = vrot.slane %v2729_v52, 1  ;;  %v561_v44 = vrot.slane %v2731_v48, 1  ;;  %v2770_v40 = vstv %s2715_s20  ;;  %v2772_v49 = vstv %s2050_s21  ;;  %s2062_s5 = spop %2061 }
  0xd0   :  { %4414 = vst [vmem:[#allocation56_spill] sm:$0xff] %v2759_v58  ;;  %4417 = vst [vmem:[#allocation59_spill] sm:$0xff] %v2770_v40  ;;  %v296_v5 = vadd.f32 %v288_v38, %v2626_v50  ;;  %v303_v46 = vrot.slane %v256_v43, %v2613_v33  ;;  %v2776_v18 = vstv %s2052_s1  ;;  %v2778_v23 = vstv %s2054_s22 }
  0xd1   :  { %4418 = vst [vmem:[#allocation60_spill] sm:$0xff] %v2772_v49  ;;  %4419 = vst [vmem:[#allocation61_spill] sm:$0xff] %v2776_v18  ;;  %v297_v14 = vadd.f32 %v289_v10, %v2642_v60  ;;  %v283_v39 = vrot.slane %v216_v7, %v2613_v33  ;;  %v251_v26 = vrot.slane %v243_v62, 1  ;;  %v242_v24 = vmul.f32 %v2608_v41, %v2765_v34 }
  0xd2   :  { %4420 = vst [vmem:[#allocation62_spill] sm:$0xff] %v2778_v23  ;;  %v2787_v22 = vsel %vm81_vm0, %v557_v54, %v2759_v58  ;;  %v612_v38 = vmul.f32 %v2727_v19, %v2729_v52  ;;  %v613_v50 = vmul.f32 %v2727_v19, %v2731_v48  ;;  %v614_v60 = vmul.f32 %v2736_v27, %v2729_v52  ;;  %s2064_s6 = spop %2063 }
  0xd3   :  { %v2798_v7 = vsel %vm81_vm0, %v2759_v58, %v557_v54  ;;  %v562_v41 = vsel %vm86_vm2, %v560_v2, %v561_v44  ;;  %v584_v43 = vmul.f32 %v2710_v57, %v2787_v22  ;;  %v615_v10 = vmul.f32 %v2736_v27, %v2731_v48  ;;  %s2066_s27 = spop %2065 }
  0xd4   :  { %v563_v19 = vsel %vm86_vm2, %v561_v44, %v560_v2  ;;  %v585_v34 = vmul.f32 %v2710_v57, %v2798_v7  ;;  %v316_v31 = vmul.f32 0.0, %v303_v46  ;;  %v317_v25 = vmul.f32 %v2495_v32, %v303_v46  ;;  %s3077_s28 = spop %2067 }
  0xd5   :  { %v2812_v54 = vmul.f32 %v2739_v30, %v562_v41  ;;  %v2815_v21 = vmul.f32 %v2739_v30, %v563_v19  ;;  %v586_v15 = vmul.f32 %v2713_v59, %v2787_v22  ;;  %v250_v42 = vrot.slane %v242_v24, 1  ;;  %s3089_s29 = spop %2069 }
  0xd6   :  { %v587_v27 = vmul.f32 %v2713_v59, %v2798_v7  ;;  %v2821_v2 = vadd.f32 %v316_v31, %v292_v9  ;;  %v2823_v44 = vadd.f32 %v317_v25, %v293_v61  ;;  %v259_v57 = vadd.f32 %v251_v26, %v243_v62  ;;  %s3107_s30 = spop %2071 }
  0xd7   :  { %v620_v36 = vadd.f32 %v612_v38, %v584_v43  ;;  %v2826_v46 = vmul.f32 %v2742_v53, %v562_v41  ;;  %v648_v17 = vmul.f32 %v2745_v37, %v562_v41  ;;  %v258_v30 = vadd.f32 %v250_v42, %v242_v24  ;;  %s2074_s9 = spop %2073 }
  0xd8   :  { %v621_v8 = vadd.f32 %v613_v50, %v585_v34  ;;  %v649_v16 = vmul.f32 %v2745_v37, %v563_v19  ;;  %v332_v1 = vrot.slane %v2821_v2, 7  ;;  %v2832_v23 = vrot.slane %v2823_v44, 7  ;;  %s2076_s16 = spop %2075 }
  0xd9   :  { %v2835_v31 = vmul.f32 %v2742_v53, %v563_v19  ;;  %v290_v25 = vmul.f32 %v2483_v28, %v283_v39  ;;  %v291_v26 = vmul.f32 0.0, %v283_v39  ;;  %v311_v61 = vrot.slane %v258_v30, %v2613_v33  ;;  %s2078_s17 = spop %2077 }
  0xda   :  { %4421 = vst [vmem:[#allocation63_spill] sm:$0xff] %v2832_v23  ;;  %v622_v62 = vadd.f32 %v614_v60, %v586_v15  ;;  %v623_v9 = vadd.f32 %v615_v10, %v587_v27  ;;  %v650_v24 = vmul.f32 %v2749_v29, %v562_v41  ;;  %v315_v42 = vrot.slane %v259_v57, %v2613_v33  ;;  %s2080_s7 = spop %2079 }
  0xdb   :  { %v2841_v34 = vadd.f32 %v648_v17, %v620_v36  ;;  %v651_v38 = vmul.f32 %v2749_v29, %v563_v19  ;;  %v320_v50 = vmul.f32 0.0, %v311_v61  ;;  %v321_v43 = vmul.f32 %v2495_v32, %v311_v61  ;;  %v2888_v61 = vpop.permute.xlu1 %446  ;;  %s2082_s10 = spop %2081 }
  0xdc   :  { %v2845_v37 = vadd.f32 %v649_v16, %v621_v8  ;;  %v2850_v39 = vsel %vm81_vm0, %v2832_v23, %v332_v1  ;;  %v2853_v15 = vrot.slane %v2821_v2, 1  ;;  %v337_v30 = vrot.slane %v2823_v44, 1  ;;  %4431 = vst [vmem:[#allocation73_spill] sm:$0xff] %v2888_v61 }
  0xdd   :  { %v298_v17 = vadd.f32 %v290_v25, %v2645_v63  ;;  %v299_v36 = vadd.f32 %v291_v26, %v2657_v6  ;;  %v2858_v57 = vadd.f32 %v320_v50, %v296_v5  ;;  %v2860_v19 = vadd.f32 %v321_v43, %v297_v14  ;;  %v2871_v63 = vpop.permute.xlu0 %451 }
  0xde   :  { %4422 = vst [vmem:[#allocation64_spill] sm:$0xff] %v2845_v37  ;;  %4423 = vst [vmem:[#allocation65_spill] sm:$0xff] %v2853_v15  ;;  %v2862_v8 = vadd.f32 %v650_v24, %v622_v62  ;;  %v2864_v16 = vadd.f32 %v651_v38, %v623_v9  ;;  %v322_v27 = vmul.f32 0.0, %v315_v42  ;;  %v323_v60 = vmul.f32 %v2495_v32, %v315_v42  ;;  %s2084_s11 = spop %2083 }
  0xdf   :  { %4424 = vst [vmem:[#allocation66_spill] sm:$0xff] %v2858_v57  ;;  %4425 = vst [vmem:[#allocation67_spill] sm:$0xff] %v2860_v19  ;;  %v2868_v41 = vrot.slane %v2858_v57, 7  ;;  %v733_v10 = vrot.slane %v2860_v19, 7  ;;  %v2876_v6 = vsel %vm81_vm0, %v332_v1, %v2832_v23  ;;  %v356_v14 = vmul.f32 %v2633_v55, %v2850_v39  ;;  %s2086_s12 = spop %2085 }
  0xe0   :  { %4426 = vst [vmem:[#allocation68_spill] sm:$0xff] %v2862_v8  ;;  %4427 = vst [vmem:[#allocation69_spill] sm:$0xff] %v2864_v16  ;;  %v2880_v5 = vstv %s2056_s23  ;;  %v2882_v25 = vstv %s2058_s25  ;;  %v2886_v26 = vmul.f32 %v2759_v58, %v2871_v63  ;;  %v2893_v62 = vsel %vm86_vm2, %v2853_v15, %v337_v30 }
  0xe1   :  { %4428 = vst [vmem:[#allocation70_spill] sm:$0xff] %v2880_v5  ;;  %4429 = vst [vmem:[#allocation71_spill] sm:$0xff] %v2882_v25  ;;  %v2897_v1 = vmul.f32 %v2871_v63, %v2821_v2  ;;  %v2901_v9 = vmul.f32 %v2759_v58, %v2888_v61  ;;  %v2906_v24 = vsel %vm86_vm2, %v337_v30, %v2853_v15  ;;  %v2951_v28 = vrot.slane %v2858_v57, 6 }
  0xe2   :  { %4430 = vst [vmem:[#allocation72_spill] sm:$0xff] %v2886_v26  ;;  %v384_v42 = vmul.f32 %v2663_v12, %v2821_v2  ;;  %v2910_v38 = vadd.f32 %v322_v27, %v298_v17  ;;  %v2912_v50 = vadd.f32 %v323_v60, %v299_v36  ;;  %v2916_v43 = vmul.f32 %v2888_v61, %v2821_v2  ;;  %s2088_s13 = spop %2087 }
  0xe3   :  { %4432 = vst [vmem:[#allocation74_spill] sm:$0xff] %v2897_v1  ;;  %4433 = vst [vmem:[#allocation75_spill] sm:$0xff] %v2901_v9  ;;  %v357_v29 = vmul.f32 %v2633_v55, %v2876_v6  ;;  %v2923_v53 = vsel %vm81_vm0, %v733_v10, %v2868_v41  ;;  %v385_v30 = vmul.f32 %v2663_v12, %v2823_v44  ;;  %v736_v12 = vrot.slane %v2858_v57, 1  ;;  %s2090_s14 = spop %2089 }
  0xe4   :  { %4434 = vst [vmem:[#allocation76_spill] sm:$0xff] %v2910_v38  ;;  %4435 = vst [vmem:[#allocation77_spill] sm:$0xff] %v2912_v50  ;;  %v392_v59 = vadd.f32 %v384_v42, %v356_v14  ;;  %v420_v17 = vmul.f32 %v2682_v20, %v2893_v62  ;;  %v2932_v36 = vsel %vm81_vm0, %v2868_v41, %v733_v10  ;;  %v737_v10 = vrot.slane %v2860_v19, 1  ;;  %s2092_s18 = spop %2091 }
  0xe5   :  { %4436 = vst [vmem:[#allocation78_spill] sm:$0xff] %v2916_v43  ;;  %v421_v27 = vmul.f32 %v2682_v20, %v2906_v24  ;;  %v580_v60 = vmul.f32 %v2704_v51, %v2787_v22  ;;  %v581_v55 = vmul.f32 %v2704_v51, %v2798_v7  ;;  %v788_v14 = vmul.f32 %v2880_v5, %v2858_v57  ;;  %s2094_s3 = spop %2093 }
  0xe6   :  { %v789_v42 = vmul.f32 %v2880_v5, %v2860_v19  ;;  %v790_v32 = vmul.f32 %v2882_v25, %v2858_v57  ;;  %v791_v20 = vmul.f32 %v2882_v25, %v2860_v19  ;;  %4437 = vst [vmem:[#allocation79_spill] sm:$0xff] %v2951_v28  ;;  %v756_v51 = vmul.f32 %v2752_v47, %v2923_v53  ;;  %s2096_s24 = spop %2095 }
  0xe7   :  { %v393_v33 = vadd.f32 %v385_v30, %v357_v29  ;;  %v428_v26 = vadd.f32 %v420_v17, %v392_v59  ;;  %v608_v5 = vmul.f32 %v2720_v3, %v2729_v52  ;;  %v757_v1 = vmul.f32 %v2752_v47, %v2932_v36  ;;  %s3410_s4 = spop %2097 }
  0xe8   :  { %v760_v9 = vmul.f32 %v2770_v40, %v2923_v53  ;;  %v761_v25 = vmul.f32 %v2770_v40, %v2932_v36  ;;  %v762_v43 = vmul.f32 %v2772_v49, %v2923_v53  ;;  %v784_v23 = vmul.f32 %v2776_v18, %v2858_v57  ;;  %s2100_s15 = spop %2099 }
  0xe9   :  { %v609_v59 = vmul.f32 %v2720_v3, %v2731_v48  ;;  %v2971_v29 = vsel %vm86_vm2, %v736_v12, %v737_v10  ;;  %v785_v30 = vmul.f32 %v2776_v18, %v2860_v19  ;;  %v2975_v17 = vstv %s2060_s26  ;;  %s2102_s2 = spop %2101 }
  0xea   :  { %4438 = vst [vmem:[#allocation80_spill] sm:$0xff] %v2975_v17  ;;  %v763_v40 = vmul.f32 %v2772_v49, %v2932_v36  ;;  %v616_v47 = vadd.f32 %v608_v5, %v580_v60  ;;  %v2981_v58 = vsel %vm86_vm2, %v737_v10, %v736_v12  ;;  %v792_v16 = vadd.f32 %v784_v23, %v756_v51  ;;  %s2104_s19 = spop %2103 }
  0xeb   :  { %v2985_v3 = vmul.f32 %v2951_v28, %v2871_v63  ;;  %v617_v8 = vadd.f32 %v609_v59, %v581_v55  ;;  %v793_v37 = vadd.f32 %v785_v30, %v757_v1  ;;  %v358_v18 = vmul.f32 %v2648_v0, %v2850_v39  ;;  %s2106_s20 = spop %2105 }
  0xec   :  { %v2991_v50 = vmul.f32 %v2951_v28, %v2888_v61  ;;  %v429_v49 = vadd.f32 %v421_v27, %v393_v33  ;;  %v820_v5 = vmul.f32 %v2975_v17, %v2971_v29  ;;  %v359_v12 = vmul.f32 %v2648_v0, %v2876_v6 }
  0xed   :  { %v2997_v51 = vadd.f32 %v788_v14, %v760_v9  ;;  %v821_v55 = vmul.f32 %v2975_v17, %v2981_v58  ;;  %v386_v23 = vmul.f32 %v2666_v13, %v2821_v2  ;;  %v582_v1 = vmul.f32 %v2707_v56, %v2787_v22 }
  0xee   :  { %v652_v60 = vadd.f32 %v2812_v54, %v616_v47  ;;  %v828_v33 = vadd.f32 %v820_v5, %v792_v16  ;;  %v387_v27 = vmul.f32 %v2666_v13, %v2823_v44  ;;  %v583_v10 = vmul.f32 %v2707_v56, %v2798_v7 }
  0xef   :  { %v653_v9 = vadd.f32 %v2815_v21, %v617_v8  ;;  %v829_v14 = vadd.f32 %v821_v55, %v793_v37  ;;  %v394_v59 = vadd.f32 %v386_v23, %v358_v18  ;;  %v610_v30 = vmul.f32 %v2723_v4, %v2729_v52 }
  0xf0   :  { %v3013_v17 = vadd.f32 %v789_v42, %v761_v25  ;;  %v660_v0 = vadd.f32 %v652_v60, %v428_v26  ;;  %v395_v22 = vadd.f32 %v387_v27, %v359_v12  ;;  %v611_v47 = vmul.f32 %v2723_v4, %v2731_v48  ;;  %v4439_v42 = vld [vmem:[#allocation62_spill] sm:$0xff] }
  0xf1   :  { %v3017_v54 = vadd.f32 %v790_v32, %v762_v43  ;;  %v661_v16 = vadd.f32 %v653_v9, %v429_v49  ;;  %v422_v7 = vmul.f32 %v2689_v35, %v2893_v62  ;;  %v618_v5 = vadd.f32 %v610_v30, %v582_v1  ;;  %v4442_v27 = vld [vmem:[#allocation34_spill] sm:$0xff] }
  0xf2   :  { %v3021_v21 = vadd.f32 %v791_v20, %v763_v40  ;;  %v3023_v37 = vadd.f32 %v828_v33, %v660_v0  ;;  %v423_v18 = vmul.f32 %v2689_v35, %v2906_v24  ;;  %v619_v8 = vadd.f32 %v611_v47, %v583_v10  ;;  %v4441_v0 = vld [vmem:[#allocation29_spill] sm:$0xff]  ;;  %v3060_v47 = vpop.permute.xlu0 %501 }
  0xf3   :  { %v3027_v25 = vadd.f32 %v829_v14, %v661_v16  ;;  %v430_v26 = vadd.f32 %v422_v7, %v394_v59  ;;  %v758_v32 = vmul.f32 %v2763_v45, %v2923_v53  ;;  %v759_v49 = vmul.f32 %v2763_v45, %v2932_v36  ;;  %v3054_v14 = vpop.permute.xlu1 %469  ;;  %v4444_v59 = vld [vmem:[#allocation30_spill] sm:$0xff]  ;;  %4445 = vst [vmem:[#allocation83_spill] sm:$0xff] %v3060_v47 }
  0xf4   :  { %v431_v43 = vadd.f32 %v423_v18, %v395_v22  ;;  %v786_v20 = vmul.f32 %v4439_v42, %v2858_v57  ;;  %v3035_v40 = vstv %s2062_s5  ;;  %v360_v12 = vmul.f32 %v4441_v0, %v2850_v39  ;;  %4443 = vst [vmem:[#allocation82_spill] sm:$0xff] %v3054_v14 }
  0xf5   :  { %4440 = vst [vmem:[#allocation81_spill] sm:$0xff] %v3035_v40  ;;  %v654_v55 = vadd.f32 %v2826_v46, %v618_v5  ;;  %v787_v23 = vmul.f32 %v4439_v42, %v2860_v19  ;;  %v822_v53 = vmul.f32 %v3035_v40, %v2971_v29  ;;  %v3045_v1 = vrot.slane %v2823_v44, 6 }
  0xf6   :  { %v655_v36 = vadd.f32 %v2835_v31, %v619_v8  ;;  %v823_v60 = vmul.f32 %v3035_v40, %v2981_v58  ;;  %v361_v33 = vmul.f32 %v4441_v0, %v2876_v6  ;;  %v388_v46 = vmul.f32 %v4442_v27, %v2821_v2 }
  0xf7   :  { %v794_v10 = vadd.f32 %v786_v20, %v758_v32  ;;  %v795_v9 = vadd.f32 %v787_v23, %v759_v49  ;;  %v362_v30 = vmul.f32 %v4444_v59, %v2850_v39  ;;  %v363_v31 = vmul.f32 %v4444_v59, %v2876_v6  ;;  %v4447_v39 = vld [vmem:[#allocation35_spill] sm:$0xff] }
  0xf8   :  { %v662_v22 = vadd.f32 %v654_v55, %v430_v26  ;;  %v3063_v16 = vrot.slane %v2731_v48, 5  ;;  %v389_v7 = vmul.f32 %v4442_v27, %v2823_v44  ;;  %v396_v5 = vadd.f32 %v388_v46, %v360_v12  ;;  %v4448_v12 = vld [vmem:[#allocation39_spill] sm:$0xff] }
  0xf9   :  { %v3069_v18 = vmul.f32 %v3045_v1, %v3060_v47  ;;  %v3071_v8 = vstv %s2064_s6  ;;  %v390_v6 = vmul.f32 %v4447_v39, %v2821_v2  ;;  %v391_v26 = vmul.f32 %v4447_v39, %v2823_v44 }
  0xfa   :  { %4446 = vst [vmem:[#allocation84_spill] sm:$0xff] %v3071_v8  ;;  %v3081_v32 = vmul.f32 %v3054_v14, %v2853_v15  ;;  %v3085_v49 = vmul.f32 %v3054_v14, %v2729_v52  ;;  %v397_v20 = vadd.f32 %v389_v7, %v361_v33  ;;  %v424_v55 = vmul.f32 %v4448_v12, %v2893_v62 }
  0xfb   :  { %v663_v23 = vadd.f32 %v655_v36, %v431_v43  ;;  %v830_v46 = vadd.f32 %v822_v53, %v794_v10  ;;  %v398_v40 = vadd.f32 %v390_v6, %v362_v30  ;;  %v399_v42 = vadd.f32 %v391_v26, %v363_v31  ;;  %v4449_v53 = vld [vmem:[#allocation40_spill] sm:$0xff]  ;;  %v3118_v26 = vpop.permute.xlu0 %511 }
  0xfc   :  { %v831_v45 = vadd.f32 %v823_v60, %v795_v9  ;;  %v425_v56 = vmul.f32 %v4448_v12, %v2906_v24  ;;  %v432_v4 = vadd.f32 %v424_v55, %v396_v5  ;;  %v824_v35 = vmul.f32 %v3071_v8, %v2971_v29  ;;  %4451 = vst [vmem:[#allocation86_spill] sm:$0xff] %v3118_v26  ;;  %v4454_v55 = vld [vmem:[#allocation64_spill] sm:$0xff] }
  0xfd   :  { %v3097_v33 = vmul.f32 %v3063_v16, %v3060_v47  ;;  %v3101_v43 = vmul.f32 %v2868_v41, %v3054_v14  ;;  %v426_v36 = vmul.f32 %v4449_v53, %v2893_v62  ;;  %v427_v60 = vmul.f32 %v4449_v53, %v2906_v24 }
  0xfe   :  { %v433_v10 = vadd.f32 %v425_v56, %v397_v20  ;;  %v825_v9 = vmul.f32 %v3071_v8, %v2981_v58  ;;  %v832_v30 = vadd.f32 %v824_v35, %v2997_v51  ;;  %v3112_v31 = vstv %s2066_s27  ;;  %v4452_v51 = vld [vmem:[#allocation77_spill] sm:$0xff] }
  0xff   :  { %4450 = vst [vmem:[#allocation85_spill] sm:$0xff] %v3112_v31  ;;  %v434_v7 = vadd.f32 %v426_v36, %v398_v40  ;;  %v435_v5 = vadd.f32 %v427_v60, %v399_v42  ;;  %v826_v6 = vmul.f32 %v3112_v31, %v2971_v29  ;;  %v827_v62 = vmul.f32 %v3112_v31, %v2981_v58 }
 0x100   :  { %v3120_v24 = vadd.f32 %v830_v46, %v662_v22  ;;  %v664_v56 = vadd.f32 %v2841_v34, %v432_v4  ;;  %v910_v35 = vrot.slane %v2910_v38, 7  ;;  %v911_v20 = vrot.slane %v4452_v51, 7  ;;  %v3130_v22 = vpop.permute.xlu1 %456 }
 0x101   :  { %v3125_v40 = vadd.f32 %v831_v45, %v663_v23  ;;  %v833_v42 = vadd.f32 %v825_v9, %v3013_v17  ;;  %v834_v29 = vadd.f32 %v826_v6, %v3017_v54  ;;  %v835_v58 = vadd.f32 %v827_v62, %v3021_v21  ;;  %4453 = vst [vmem:[#allocation87_spill] sm:$0xff] %v3130_v22  ;;  %v4457_v17 = vld [vmem:[#allocation68_spill] sm:$0xff]  ;;  %v4458_v23 = vld [vmem:[#allocation69_spill] sm:$0xff] }
 0x102   :  { %v665_v46 = vadd.f32 %v4454_v55, %v433_v10  ;;  %v3133_v4 = vadd.f32 %v832_v30, %v664_v56  ;;  %v3137_v34 = vmul.f32 %v3045_v1, %v3118_v26  ;;  %v3141_v45 = vmul.f32 %v3063_v16, %v3118_v26 }
 0x103   :  { %v666_v54 = vadd.f32 %v4457_v17, %v434_v7  ;;  %v667_v36 = vadd.f32 %v4458_v23, %v435_v5  ;;  %v3146_v21 = vstv %s3077_s28  ;;  %v3148_v60 = vstv %s2076_s16  ;;  %v3174_v23 = vpop.permute.xlu0 %473 }
 0x104   :  { %4455 = vst [vmem:[#allocation64_spill] sm:$0xff] %v3137_v34  ;;  %4456 = vst [vmem:[#allocation88_spill] sm:$0xff] %v3141_v45  ;;  %v912_v10 = vsel %vm81_vm0, %v910_v35, %v911_v20  ;;  %v913_v9 = vsel %vm81_vm0, %v911_v20, %v910_v35  ;;  %v3155_v30 = vstv %s3089_s29  ;;  %v3158_v6 = vstv %s3107_s30 }
 0x105   :  { %4459 = vst [vmem:[#allocation68_spill] sm:$0xff] %v3146_v21  ;;  %4460 = vst [vmem:[#allocation69_spill] sm:$0xff] %v3148_v60  ;;  %v3160_v62 = vadd.f32 %v833_v42, %v665_v46  ;;  %v3162_v7 = vadd.f32 %v834_v29, %v666_v54  ;;  %v3164_v5 = vadd.f32 %v835_v58, %v667_v36  ;;  %v3166_v56 = vstv %s2074_s9  ;;  %v3181_v54 = vpop.permute.xlu1 %477 }
 0x106   :  { %4461 = vst [vmem:[#allocation89_spill] sm:$0xff] %v3155_v30  ;;  %4462 = vst [vmem:[#allocation90_spill] sm:$0xff] %v3158_v6  ;;  %v934_v55 = vmul.f32 %v3146_v21, %v913_v9  ;;  %v935_v17 = vmul.f32 %v3146_v21, %v912_v10  ;;  %v962_v35 = vmul.f32 %v3148_v60, %v2910_v38  ;;  %v3172_v20 = vstv %s2078_s17 }
 0x107   :  { %4463 = vst [vmem:[#allocation91_spill] sm:$0xff] %v3164_v5  ;;  %4464 = vst [vmem:[#allocation92_spill] sm:$0xff] %v3166_v56  ;;  %v936_v42 = vmul.f32 %v3155_v30, %v913_v9  ;;  %v937_v29 = vmul.f32 %v3155_v30, %v912_v10  ;;  %v938_v58 = vmul.f32 %v3158_v6, %v913_v9  ;;  %v915_v39 = vrot.slane %v4452_v51, 1  ;;  %v3216_v13 = vpop.permute.xlu0 %531 }
 0x108   :  { %4465 = vst [vmem:[#allocation93_spill] sm:$0xff] %v3172_v20  ;;  %4466 = vst [vmem:[#allocation94_spill] sm:$0xff] %v3174_v23  ;;  %v963_v46 = vmul.f32 %v3148_v60, %v4452_v51  ;;  %v939_v36 = vmul.f32 %v3158_v6, %v912_v10  ;;  %v940_v21 = vmul.f32 %v3166_v56, %v913_v9  ;;  %v4469_v60 = vld [vmem:[#allocation56_spill] sm:$0xff]  ;;  %v3202_v9 = vstv %s2080_s7 }
 0x109   :  { %4467 = vst [vmem:[#allocation95_spill] sm:$0xff] %v3181_v54  ;;  %v941_v31 = vmul.f32 %v3166_v56, %v912_v10  ;;  %v3188_v8 = vmul.f32 %v3130_v22, %v2821_v2  ;;  %v964_v30 = vmul.f32 %v3172_v20, %v2910_v38  ;;  %v965_v53 = vmul.f32 %v3172_v20, %v4452_v51  ;;  %v3230_v26 = vpop.permute.xlu1 %506 }
 0x10a   :  { %v3196_v12 = vmul.f32 %v4469_v60, %v3130_v22  ;;  %v3200_v6 = vmul.f32 %v2951_v28, %v3130_v22  ;;  %v970_v10 = vadd.f32 %v962_v35, %v934_v55  ;;  %4472 = vst [vmem:[#allocation99_spill] sm:$0xff] %v3202_v9  ;;  %v914_v56 = vrot.slane %v2910_v38, 1  ;;  %4474 = vst [vmem:[#allocation101_spill] sm:$0xff] %v3216_v13  ;;  %v4482_v28 = vld [vmem:[#allocation63_spill] sm:$0xff] }
 0x10b   :  { %4468 = vst [vmem:[#allocation96_spill] sm:$0xff] %v3188_v8  ;;  %v971_v27 = vadd.f32 %v963_v46, %v935_v17  ;;  %v3208_v20 = vmul.f32 %v3174_v23, %v2853_v15  ;;  %v3212_v59 = vmul.f32 %v3174_v23, %v2729_v52  ;;  %v3214_v0 = vstv %s2082_s10  ;;  %4477 = vst [vmem:[#allocation104_spill] sm:$0xff] %v3230_v26 }
 0x10c   :  { %4470 = vst [vmem:[#allocation97_spill] sm:$0xff] %v3196_v12  ;;  %4471 = vst [vmem:[#allocation98_spill] sm:$0xff] %v3200_v6  ;;  %v916_v55 = vsel %vm86_vm2, %v914_v56, %v915_v39  ;;  %v917_v35 = vsel %vm86_vm2, %v915_v39, %v914_v56  ;;  %v3222_v17 = vstv %s2084_s11  ;;  %v3224_v46 = vstv %s2086_s12 }
 0x10d   :  { %4473 = vst [vmem:[#allocation100_spill] sm:$0xff] %v3214_v0  ;;  %4475 = vst [vmem:[#allocation102_spill] sm:$0xff] %v3222_v17  ;;  %v972_v57 = vadd.f32 %v964_v30, %v936_v42  ;;  %v973_v22 = vadd.f32 %v965_v53, %v937_v29  ;;  %v966_v34 = vmul.f32 %v3202_v9, %v2910_v38  ;;  %v3237_v56 = vrot.slane %v2731_v48, 6 }
 0x10e   :  { %4476 = vst [vmem:[#allocation103_spill] sm:$0xff] %v3224_v46  ;;  %v967_v8 = vmul.f32 %v3202_v9, %v4452_v51  ;;  %v968_v6 = vmul.f32 %v3214_v0, %v2910_v38  ;;  %v969_v39 = vmul.f32 %v3214_v0, %v4452_v51  ;;  %v3239_v11 = vstv %s2088_s13 }
 0x10f   :  { %4478 = vst [vmem:[#allocation105_spill] sm:$0xff] %v3239_v11  ;;  %v998_v53 = vmul.f32 %v3222_v17, %v916_v55  ;;  %v999_v30 = vmul.f32 %v3222_v17, %v917_v35  ;;  %v1000_v42 = vmul.f32 %v3224_v46, %v916_v55  ;;  %v1001_v29 = vmul.f32 %v3224_v46, %v917_v35 }
 0x110   :  { %v3247_v9 = vmul.f32 %v2868_v41, %v3174_v23  ;;  %v3251_v0 = vmul.f32 %v3181_v54, %v2853_v15  ;;  %v3255_v48 = vmul.f32 %v3181_v54, %v2729_v52  ;;  %v3259_v45 = vmul.f32 %v2868_v41, %v3181_v54  ;;  %v3274_v54 = vpop.permute.xlu0 %539 }
 0x111   :  { %v974_v17 = vadd.f32 %v966_v34, %v938_v58  ;;  %v975_v12 = vadd.f32 %v967_v8, %v939_v36  ;;  %v3263_v46 = vmul.f32 %v3216_v13, %v4482_v28  ;;  %v1002_v60 = vmul.f32 %v3239_v11, %v916_v55  ;;  %4483 = vst [vmem:[#allocation63_spill] sm:$0xff] %v3274_v54 }
 0x112   :  { %4479 = vst [vmem:[#allocation106_spill] sm:$0xff] %v3251_v0  ;;  %4480 = vst [vmem:[#allocation107_spill] sm:$0xff] %v3255_v48  ;;  %v976_v5 = vadd.f32 %v968_v6, %v940_v21  ;;  %v977_v15 = vadd.f32 %v969_v39, %v941_v31  ;;  %v3268_v0 = vmul.f32 %v3237_v56, %v3216_v13  ;;  %v3281_v21 = vrot.slane %v2860_v19, 5 }
 0x113   :  { %4481 = vst [vmem:[#allocation108_spill] sm:$0xff] %v3259_v45  ;;  %v3272_v48 = vmul.f32 %v3045_v1, %v3230_v26  ;;  %v1006_v8 = vadd.f32 %v998_v53, %v970_v10  ;;  %v1007_v34 = vadd.f32 %v999_v30, %v971_v27  ;;  %v1008_v58 = vadd.f32 %v1000_v42, %v972_v57  ;;  %v3276_v45 = vpop.permute.xlu1 %527 }
 0x114   :  { %v1009_v36 = vadd.f32 %v1001_v29, %v973_v22  ;;  %4484 = vst [vmem:[#allocation109_spill] sm:$0xff] %v3276_v45  ;;  %v703_v31 = vmul.f32 %v3063_v16, %v3230_v26  ;;  %v3284_v6 = vrot.slane %v4452_v51, 4  ;;  %v1003_v39 = vmul.f32 %v3239_v11, %v917_v35 }
 0x115   :  { %v3289_v10 = vmul.f32 %v3274_v54, %v4482_v28  ;;  %v3293_v57 = vmul.f32 %v3237_v56, %v3274_v54  ;;  %v1010_v27 = vadd.f32 %v1002_v60, %v974_v17  ;;  %v3295_v22 = vstv %s2090_s14 }
 0x116   :  { %4487 = vst [vmem:[#allocation112_spill] sm:$0xff] %v3295_v22  ;;  %v3299_v53 = vmul.f32 %v3281_v21, %v3274_v54  ;;  %v3303_v30 = vmul.f32 %v3284_v6, %v3274_v54  ;;  %v3305_v42 = vstv %s2092_s18  ;;  %v544_v29 = vmul.f32 %v3276_v45, %v4482_v28 }
 0x117   :  { %4485 = vst [vmem:[#allocation110_spill] sm:$0xff] %v3289_v10  ;;  %4486 = vst [vmem:[#allocation111_spill] sm:$0xff] %v3293_v57  ;;  %v3310_v11 = vadd.f32 %v1006_v8, %v3023_v37  ;;  %v3313_v60 = vadd.f32 %v1007_v34, %v3027_v25  ;;  %v3316_v17 = vadd.f32 %v1008_v58, %v3120_v24  ;;  %v4494_v8 = vld [vmem:[#allocation75_spill] sm:$0xff] }
 0x118   :  { %4488 = vst [vmem:[#allocation113_spill] sm:$0xff] %v3299_v53  ;;  %4489 = vst [vmem:[#allocation114_spill] sm:$0xff] %v3303_v30  ;;  %v3319_v53 = vadd.f32 %v1009_v36, %v3125_v40  ;;  %v1011_v57 = vadd.f32 %v1003_v39, %v975_v12  ;;  %v1004_v54 = vmul.f32 %v3295_v22, %v916_v55  ;;  %v3336_v40 = vpop.permute.xlu1 %461  ;;  %v4493_v12 = vld [vmem:[#allocation78_spill] sm:$0xff]  ;;  %v3347_v36 = vrot.slane %v2860_v19, 4  ;;  %v4497_v19 = vld [vmem:[#allocation72_spill] sm:$0xff] }
 0x119   :  { %4490 = vst [vmem:[#allocation115_spill] sm:$0xff] %v3305_v42  ;;  %v1005_v30 = vmul.f32 %v3295_v22, %v917_v35  ;;  %v708_v10 = vmul.f32 %v3237_v56, %v3276_v45  ;;  %v3326_v37 = vadd.f32 %v1010_v27, %v3133_v4  ;;  %v3330_v25 = vmul.f32 %v3305_v42, %v2821_v2 }
 0x11a   :  { %v3334_v24 = vmul.f32 %v3305_v42, %v2823_v44  ;;  %v491_v55 = vadd.f32 %v3081_v32, %v4493_v12  ;;  %v548_v35 = vadd.f32 %v544_v29, %v3069_v18  ;;  %v679_v34 = vadd.f32 %v3085_v49, %v4494_v8 }
 0x11b   :  { %4491 = vst [vmem:[#allocation116_spill] sm:$0xff] %v3330_v25  ;;  %v712_v4 = vadd.f32 %v708_v10, %v3097_v33  ;;  %v857_v58 = vadd.f32 %v3101_v43, %v2991_v50  ;;  %v886_v44 = vmul.f32 %v3281_v21, %v3276_v45  ;;  %v3352_v39 = vrot.slane %v2910_v38, 5  ;;  %v4496_v25 = vld [vmem:[#allocation74_spill] sm:$0xff] }
 0x11c   :  { %4492 = vst [vmem:[#allocation117_spill] sm:$0xff] %v3334_v24  ;;  %v3355_v18 = vrot.slane %v2910_v38, 6  ;;  %v687_v32 = vrot.slane %v679_v34, 1  ;;  %v3358_v33 = vrot.slane %v4452_v51, 3  ;;  %v880_v50 = vmul.f32 %v3347_v36, %v3060_v47  ;;  %v3375_v42 = vpop.permute.xlu1 %481 }
 0x11d   :  { %v720_v49 = vrot.slane %v712_v4, 1  ;;  %v865_v27 = vrot.slane %v857_v58, 2  ;;  %v1025_v43 = vmul.f32 %v3352_v39, %v2888_v61  ;;  %v1064_v29 = vmul.f32 %v3284_v6, %v3276_v45 }
 0x11e   :  { %v1031_v10 = vmul.f32 %v3355_v18, %v3054_v14  ;;  %v3369_v12 = vadd.f32 %v1011_v57, %v3160_v62  ;;  %v3371_v8 = vstv %s2094_s3  ;;  %v695_v34 = vadd.f32 %v687_v32, %v491_v55 }
 0x11f   :  { %4495 = vst [vmem:[#allocation78_spill] sm:$0xff] %v3371_v8  ;;  %v1058_v4 = vmul.f32 %v3358_v33, %v3060_v47  ;;  %v1012_v58 = vadd.f32 %v1004_v54, %v976_v5  ;;  %v728_v22 = vadd.f32 %v720_v49, %v548_v35  ;;  %v890_v61 = vadd.f32 %v886_v44, %v880_v50 }
 0x120   :  { %v1035_v51 = vadd.f32 %v1031_v10, %v1025_v43  ;;  %v1013_v38 = vadd.f32 %v1005_v30, %v977_v15  ;;  %v873_v14 = vadd.f32 %v865_v27, %v695_v34  ;;  %v492_v45 = vadd.f32 %v3208_v20, %v4496_v25  ;;  %v3396_v44 = vpop.permute.xlu1 %535  ;;  %v4499_v27 = vld [vmem:[#allocation24_spill] sm:$0xff] }
 0x121   :  { %v1068_v24 = vadd.f32 %v1064_v29, %v1058_v4  ;;  %v898_v62 = vrot.slane %v890_v61, 2  ;;  %v680_v55 = vadd.f32 %v3212_v59, %v4497_v19  ;;  %v713_v32 = vadd.f32 %v3268_v0, %v703_v31 }
 0x122   :  { %v1043_v57 = vrot.slane %v1035_v51, 3  ;;  %v858_v54 = vadd.f32 %v3247_v9, %v2985_v3  ;;  %v881_v15 = vmul.f32 %v3347_v36, %v3230_v26  ;;  %v887_v30 = vmul.f32 %v3281_v21, %v3216_v13 }
 0x123   :  { %v1076_v5 = vrot.slane %v1068_v24, 3  ;;  %v906_v35 = vadd.f32 %v898_v62, %v728_v22  ;;  %v688_v61 = vrot.slane %v680_v55, 1  ;;  %v721_v51 = vrot.slane %v713_v32, 1  ;;  %v4502_v55 = vld [vmem:[#allocation20_spill] sm:$0xff] }
 0x124   :  { %v1051_v20 = vadd.f32 %v1043_v57, %v873_v14  ;;  %v549_v19 = vadd.f32 %v3263_v46, %v3272_v48  ;;  %v891_v59 = vadd.f32 %v887_v30, %v881_v15  ;;  %v1026_v0 = vmul.f32 %v3352_v39, %v2871_v63  ;;  %v4505_v30 = vld [vmem:[#allocation65_spill] sm:$0xff] }
 0x125   :  { %v1032_v3 = vmul.f32 %v3355_v18, %v3174_v23  ;;  %v3394_v9 = vstv %s2096_s24  ;;  %v1084_v31 = vadd.f32 %v1076_v5, %v906_v35  ;;  %v696_v25 = vadd.f32 %v688_v61, %v492_v45  ;;  %v4500_v45 = vld [vmem:[#allocation91_spill] sm:$0xff]  ;;  %v4503_v5 = vld [vmem:[#allocation21_spill] sm:$0xff]  ;;  %v4506_v61 = vld [vmem:[#allocation10_spill] sm:$0xff] }
 0x126   :  { %4498 = vst [vmem:[#allocation75_spill] sm:$0xff] %v3394_v9  ;;  %v866_v24 = vrot.slane %v858_v54, 2  ;;  %v729_v14 = vadd.f32 %v721_v51, %v549_v19  ;;  %v1059_v49 = vmul.f32 %v3358_v33, %v3230_v26  ;;  %v1065_v48 = vmul.f32 %v3284_v6, %v3216_v13  ;;  %v4504_v54 = vld [vmem:[#allocation79_spill] sm:$0xff]  ;;  %v4520_v26 = vld [vmem:[#allocation64_spill] sm:$0xff] }
 0x127   :  { %v1036_v22 = vadd.f32 %v1032_v3, %v1026_v0  ;;  %v3403_v46 = vadd.f32 %v1012_v58, %v3162_v7  ;;  %v1099_v50 = vrot.slane %v1051_v20, %v4499_v27  ;;  %v1131_v43 = vrot.slane %v1084_v31, %v4499_v27  ;;  %v4501_v7 = vld [vmem:[#allocation56_spill] sm:$0xff]  ;;  %v3434_v3 = vpop.permute.xlu1 %516 }
 0x128   :  { %v874_v10 = vadd.f32 %v866_v24, %v696_v25  ;;  %v3408_v29 = vadd.f32 %v1013_v38, %v4500_v45  ;;  %v899_v34 = vrot.slane %v891_v59, 2  ;;  %v1069_v62 = vadd.f32 %v1065_v48, %v1059_v49  ;;  %v4507_v0 = vld [vmem:[#allocation12_spill] sm:$0xff]  ;;  %4508 = vst [vmem:[#allocation74_spill] sm:$0xff] %v3434_v3 }
 0x129   :  { %v1044_v4 = vrot.slane %v1036_v22, 3  ;;  %v3414_v57 = vmul.f32 %v3336_v40, %v2821_v2  ;;  %v3418_v58 = vmul.f32 %v4501_v7, %v3336_v40  ;;  %v1088_v32 = vmul.f32 %v3310_v11, %v4502_v55 }
 0x12a   :  { %v1089_v38 = vmul.f32 %v3313_v60, %v4503_v5  ;;  %v3426_v15 = vmul.f32 %v4504_v54, %v3336_v40  ;;  %v3430_v35 = vmul.f32 %v3375_v42, %v4505_v30  ;;  %v907_v2 = vadd.f32 %v899_v34, %v729_v14  ;;  %v4513_v30 = vld [vmem:[#allocation88_spill] sm:$0xff] }
 0x12b   :  { %v1052_v20 = vadd.f32 %v1044_v4, %v874_v10  ;;  %v1112_v51 = vmul.f32 %v4506_v61, %v1099_v50  ;;  %v1113_v19 = vmul.f32 0.0, %v1099_v50  ;;  %v1144_v59 = vmul.f32 0.0, %v1131_v43 }
 0x12c   :  { %v1145_v11 = vmul.f32 %v4507_v0, %v1131_v43  ;;  %v678_v60 = vmul.f32 %v3375_v42, %v2729_v52  ;;  %v856_v31 = vmul.f32 %v2868_v41, %v3375_v42  ;;  %v1077_v25 = vrot.slane %v1069_v62, 3 }
 0x12d   :  { %v1103_v24 = vrot.slane %v1052_v20, %v4499_v27  ;;  %v1120_v14 = vadd.f32 %v1112_v51, %v1088_v32  ;;  %v1121_v22 = vadd.f32 %v1113_v19, %v1089_v38  ;;  %v3441_v49 = vstv %s2100_s15  ;;  %v4511_v32 = vld [vmem:[#allocation97_spill] sm:$0xff]  ;;  %v4512_v38 = vld [vmem:[#allocation107_spill] sm:$0xff]  ;;  %v4514_v20 = vld [vmem:[#allocation98_spill] sm:$0xff] }
 0x12e   :  { %4509 = vst [vmem:[#allocation72_spill] sm:$0xff] %v3441_v49  ;;  %v710_v48 = vmul.f32 %v3237_v56, %v3396_v44  ;;  %v1085_v50 = vadd.f32 %v1077_v25, %v907_v2  ;;  %v1090_v43 = vmul.f32 %v3316_v17, %v4502_v55  ;;  %v1091_v10 = vmul.f32 %v3319_v53, %v4503_v5  ;;  %v4515_v51 = vld [vmem:[#allocation108_spill] sm:$0xff] }
 0x12f   :  { %v525_v41 = vmul.f32 %v3045_v1, %v3434_v3  ;;  %v3451_v45 = vadd.f32 %v1144_v59, %v1120_v14  ;;  %v3453_v34 = vadd.f32 %v1145_v11, %v1121_v22  ;;  %v3455_v4 = vstv %s2102_s2  ;;  %v4516_v59 = vld [vmem:[#allocation110_spill] sm:$0xff]  ;;  %v4518_v22 = vld [vmem:[#allocation96_spill] sm:$0xff] }
 0x130   :  { %4510 = vst [vmem:[#allocation91_spill] sm:$0xff] %v3455_v4  ;;  %v546_v62 = vmul.f32 %v3396_v44, %v4482_v28  ;;  %v1114_v56 = vmul.f32 %v4506_v61, %v1103_v24  ;;  %v705_v17 = vmul.f32 %v3063_v16, %v3434_v3  ;;  %v883_v53 = vmul.f32 %v3347_v36, %v3434_v3  ;;  %v4517_v16 = vld [vmem:[#allocation86_spill] sm:$0xff] }
 0x131   :  { %v1061_v1 = vmul.f32 %v3358_v33, %v3434_v3  ;;  %v1115_v7 = vmul.f32 0.0, %v1103_v24  ;;  %v681_v54 = vadd.f32 %v4512_v38, %v4511_v32  ;;  %v714_v2 = vadd.f32 %v710_v48, %v4513_v30  ;;  %v4519_v24 = vld [vmem:[#allocation106_spill] sm:$0xff] }
 0x132   :  { %v859_v28 = vadd.f32 %v4515_v51, %v4514_v20  ;;  %v1135_v19 = vrot.slane %v1085_v50, %v4499_v27  ;;  %v551_v11 = vadd.f32 %v4516_v59, %v525_v41  ;;  %v882_v25 = vmul.f32 %v3347_v36, %v4517_v16  ;;  %v4521_v20 = vld [vmem:[#allocation87_spill] sm:$0xff] }
 0x133   :  { %v888_v14 = vmul.f32 %v3281_v21, %v3396_v44  ;;  %v493_v3 = vadd.f32 %v4519_v24, %v4518_v22  ;;  %v550_v32 = vadd.f32 %v546_v62, %v4520_v26  ;;  %v689_v38 = vrot.slane %v681_v54, 1  ;;  %v4522_v51 = vld [vmem:[#allocation95_spill] sm:$0xff] }
 0x134   :  { %v722_v48 = vrot.slane %v714_v2, 1  ;;  %v867_v30 = vrot.slane %v859_v28, 2  ;;  %v1027_v50 = vmul.f32 %v3352_v39, %v4521_v20  ;;  %v1033_v41 = vmul.f32 %v3355_v18, %v4522_v51  ;;  %v4523_v26 = vld [vmem:[#allocation111_spill] sm:$0xff] }
 0x135   :  { %v892_v47 = vadd.f32 %v888_v14, %v882_v25  ;;  %v697_v59 = vadd.f32 %v689_v38, %v493_v3  ;;  %v1060_v21 = vmul.f32 %v3358_v33, %v4517_v16  ;;  %v1066_v22 = vmul.f32 %v3284_v6, %v3396_v44 }
 0x136   :  { %v730_v36 = vadd.f32 %v722_v48, %v550_v32  ;;  %v1122_v24 = vadd.f32 %v1114_v56, %v1090_v43  ;;  %v715_v62 = vadd.f32 %v4523_v26, %v705_v17  ;;  %v1037_v2 = vadd.f32 %v1033_v41, %v1027_v50 }
 0x137   :  { %v900_v54 = vrot.slane %v892_v47, 2  ;;  %v1123_v28 = vadd.f32 %v1115_v7, %v1091_v10  ;;  %v1146_v25 = vmul.f32 0.0, %v1135_v19  ;;  %v875_v14 = vadd.f32 %v867_v30, %v697_v59  ;;  %v4524_v7 = vld [vmem:[#allocation113_spill] sm:$0xff] }
 0x138   :  { %v1070_v13 = vadd.f32 %v1066_v22, %v1060_v21  ;;  %v1147_v23 = vmul.f32 %v4507_v0, %v1135_v19  ;;  %v1045_v3 = vrot.slane %v1037_v2, 3  ;;  %v1092_v32 = vmul.f32 %v3326_v37, %v4502_v55  ;;  %v4526_v2 = vld [vmem:[#allocation48_spill] sm:$0xff] }
 0x139   :  { %v908_v51 = vadd.f32 %v900_v54, %v730_v36  ;;  %v1093_v6 = vmul.f32 %v3369_v12, %v4503_v5  ;;  %v494_v43 = vadd.f32 %v3430_v35, %v3414_v57  ;;  %v682_v47 = vadd.f32 %v678_v60, %v3418_v58 }
 0x13a   :  { %v1078_v33 = vrot.slane %v1070_v13, 3  ;;  %v1053_v10 = vadd.f32 %v1045_v3, %v875_v14  ;;  %v723_v56 = vrot.slane %v715_v62, 1  ;;  %v860_v17 = vadd.f32 %v856_v31, %v3426_v15  ;;  %v4525_v15 = vld [vmem:[#allocation114_spill] sm:$0xff] }
 0x13b   :  { %v893_v19 = vadd.f32 %v4524_v7, %v883_v53  ;;  %v690_v48 = vrot.slane %v682_v47, 1  ;;  %v1028_v37 = vmul.f32 %v3352_v39, %v3336_v40  ;;  %v1034_v13 = vmul.f32 %v3355_v18, %v3375_v42 }
 0x13c   :  { %v1086_v38 = vadd.f32 %v1078_v33, %v908_v51  ;;  %v1107_v12 = vrot.slane %v1053_v10, %v4499_v27  ;;  %v731_v30 = vadd.f32 %v723_v56, %v551_v11  ;;  %v868_v57 = vrot.slane %v860_v17, 2 }
 0x13d   :  { %v901_v35 = vrot.slane %v893_v19, 2  ;;  %v698_v60 = vadd.f32 %v690_v48, %v494_v43  ;;  %v1038_v50 = vadd.f32 %v1034_v13, %v1028_v37  ;;  %v1071_v31 = vadd.f32 %v4525_v15, %v1061_v1 }
 0x13e   :  { %v1139_v58 = vrot.slane %v1086_v38, %v4499_v27  ;;  %v1154_v53 = vadd.f32 %v1146_v25, %v1122_v24  ;;  %v1116_v51 = vmul.f32 %v4506_v61, %v1107_v12  ;;  %v1117_v41 = vmul.f32 0.0, %v1107_v12  ;;  %v4527_v24 = vld [vmem:[#allocation66_spill] sm:$0xff]  ;;  %v4529_v38 = vld [vmem:[#allocation67_spill] sm:$0xff]  ;;  %v4531_v12 = vld [vmem:[#allocation116_spill] sm:$0xff] }
 0x13f   :  { %v909_v59 = vadd.f32 %v901_v35, %v731_v30  ;;  %v876_v18 = vadd.f32 %v868_v57, %v698_v60  ;;  %v1046_v21 = vrot.slane %v1038_v50, 3  ;;  %v1155_v11 = vadd.f32 %v1147_v23, %v1123_v28  ;;  %v4532_v30 = vld [vmem:[#allocation117_spill] sm:$0xff] }
 0x140   :  { %v1148_v39 = vmul.f32 0.0, %v1139_v58  ;;  %v1149_v36 = vmul.f32 %v4507_v0, %v1139_v58  ;;  %v1124_v22 = vadd.f32 %v1116_v51, %v1092_v32  ;;  %v1125_v26 = vadd.f32 %v1117_v41, %v1093_v6 }
 0x141   :  { %v1079_v62 = vrot.slane %v1071_v31, 3  ;;  %v1178_v54 = vmul.f32 %v3371_v8, %v2729_v52  ;;  %v1179_v1 = vmul.f32 %v3371_v8, %v4526_v2  ;;  %v1180_v25 = vmul.f32 %v3394_v9, %v4527_v24 }
 0x142   :  { %v1054_v14 = vadd.f32 %v1046_v21, %v876_v18  ;;  %v1156_v3 = vadd.f32 %v1148_v39, %v1124_v22  ;;  %v1157_v33 = vadd.f32 %v1149_v36, %v1125_v26  ;;  %v3514_v43 = vstv %s2104_s19  ;;  %v4535_v36 = vld [vmem:[#allocation77_spill] sm:$0xff] }
 0x143   :  { %4528 = vst [vmem:[#allocation56_spill] sm:$0xff] %v3514_v43  ;;  %v1087_v47 = vadd.f32 %v1079_v62, %v909_v59  ;;  %v1200_v23 = vmul.f32 %v3441_v49, %v3451_v45  ;;  %v1201_v28 = vmul.f32 %v3441_v49, %v3453_v34  ;;  %v1202_v52 = vmul.f32 %v3455_v4, %v1154_v53  ;;  %v4534_v59 = vld [vmem:[#allocation76_spill] sm:$0xff] }
 0x144   :  { %v1111_v32 = vrot.slane %v1054_v14, %v4499_v27  ;;  %v1203_v6 = vmul.f32 %v3455_v4, %v1155_v11  ;;  %v1094_v10 = vmul.f32 %v3403_v46, %v4502_v55  ;;  %v1095_v56 = vmul.f32 %v3408_v29, %v4503_v5  ;;  %v2126_v14 = vld [vmem:[%s4145_s0] sm:$0xff] }
 0x145   :  { %v1143_v17 = vrot.slane %v1087_v47, %v4499_v27  ;;  %v1204_v7 = vmul.f32 %v3514_v43, %v1156_v3  ;;  %v1205_v45 = vmul.f32 %v3514_v43, %v1157_v33  ;;  %v1181_v48 = vmul.f32 %v3394_v9, %v4529_v38  ;;  %v2127_v33 = vld [vmem:[%s4145_s0 + $0x8] sm:$0xff]  ;;  %v4596_v43 = vld [vmem:[#allocation45_spill] sm:$0xff]  ;;  %v4599_v9 = vld [vmem:[#allocation42_spill] sm:$0xff]  ;;  %s2155_s0 = smov [#allocation2]  }
 0x146   :  { %v1118_v34 = vmul.f32 %v4506_v61, %v1111_v32  ;;  %v1119_v19 = vmul.f32 0.0, %v1111_v32  ;;  %v3534_v37 = vstv %s3410_s4  ;;  %v1208_v29 = vadd.f32 %v1200_v23, %v4531_v12  ;;  %s1958_s25 = sshll.u32 %s2155_s0, 4  ;;  %s1959_s25 = int_to_ptr.vmem [resolvable:$true] %s1958_s25 }
 0x147   :  { %4530 = vst [vmem:[#allocation79_spill] sm:$0xff] %v3534_v37  ;;  %v1150_v13 = vmul.f32 0.0, %v1143_v17  ;;  %v1151_v46 = vmul.f32 %v4507_v0, %v1143_v17  ;;  %v1209_v57 = vadd.f32 %v1201_v28, %v4532_v30  ;;  %v1210_v60 = vadd.f32 %v1202_v52, %v1178_v54  ;;  %v4539_v17 = vld [vmem:[#allocation11_spill] sm:$0xff]  ;;  %s2128_s26 = scalar_lea.vmem %s1959_s25, 256  ;;  %p2133_p1 = scmp.lt.s32.totalorder %s1959_s25, %s1959_s25 }
 0x148   :  { %v1126_v35 = vadd.f32 %v1118_v34, %v1094_v10  ;;  %v1127_v58 = vadd.f32 %v1119_v19, %v1095_v56  ;;  %v1211_v50 = vadd.f32 %v1203_v6, %v1179_v1  ;;  %v3539_v15 = vstv %s2106_s20  ;;  %v4538_v6 = vld [vmem:[#allocation8_spill] sm:$0xff]  ;;  %v4542_v30 = vld [vmem:[#allocation7_spill] sm:$0xff]  ;;  %p2129_p0 = scmp.ne.s32.totalorder %s1959_s25, %s2128_s26  ;;  %p2134_p2 = scmp.lt.s32.totalorder %s2128_s26, %s2128_s26 }
 0x149   :  { %4533 = vst [vmem:[#allocation65_spill] sm:$0xff] %v3539_v15  ;;  %v1212_v31 = vadd.f32 %v1204_v7, %v1180_v25  ;;  %v1213_v53 = vadd.f32 %v1205_v45, %v1181_v48  ;;  %v1182_v39 = vmul.f32 %v3534_v37, %v4534_v59  ;;  %v1183_v18 = vmul.f32 %v3534_v37, %v4535_v36  ;;  %v4546_v36 = vld [vmem:[#allocation15_spill] sm:$0xff] }
 0x14a   :  { %v1158_v51 = vadd.f32 %v1150_v13, %v1126_v35  ;;  %v1159_v41 = vadd.f32 %v1151_v46, %v1127_v58  ;;  %v1216_v21 = vadd.f32 %v1210_v60, %v1208_v29  ;;  %v1219_v11 = vadd.f32 %v1211_v50, %v1209_v57  ;;  %v4541_v46 = vld [vmem:[#allocation6_spill] sm:$0xff]  ;;  %v4543_v58 = vld [vmem:[#allocation9_spill] sm:$0xff]  ;;  %p2135_p3 = por %p2134_p2, %p2133_p1 }
 0x14c   :  { %v1206_v22 = vmul.f32 %v3539_v15, %v1158_v51  ;;  %v1207_v26 = vmul.f32 %v3539_v15, %v1159_v41  ;;  %v1217_v62 = vadd.f32 %v1216_v21, %v1212_v31  ;;  %v1220_v54 = vadd.f32 %v1219_v11, %v1213_v53  ;;  %v4544_v31 = vld [vmem:[#allocation13_spill] sm:$0xff]  ;;  %v4545_v41 = vld [vmem:[#allocation14_spill] sm:$0xff]  ;;  %p2136_p4 = pnand %p2135_p3, %p2129_p0 }
 0x14e   :  { %v1214_v2 = vadd.f32 %v1206_v22, %v1182_v39  ;;  %v1215_v1 = vadd.f32 %v1207_v26, %v1183_v18 }
 0x150   :  { %v1218_v24 = vadd.f32 %v1217_v62, %v1214_v2  ;;  %v1221_v25 = vadd.f32 %v1220_v54, %v1215_v1 }
 0x152   :  { %v3550_v3 = vadd.f32 %v2126_v14, %v1218_v24  ;;  %v3555_v47 = vadd.f32 %v2127_v33, %v1221_v25  ;;  %v4547_v25 = vld [vmem:[#allocation16_spill] sm:$0xff] }
 0x154   :  { %4536 = vst [vmem:[#allocation97_spill] sm:$0xff] %v3550_v3  ;;  %4537 = vst [vmem:[#allocation107_spill] sm:$0xff] %v3555_v47  ;;  %v1224_v23 = vrot.slane %v3550_v3, 7  ;;  %v1225_v28 = vrot.slane %v3555_v47, 7  ;;  %v1228_v52 = vrot.slane %v3550_v3, 1  ;;  %v1229_v32 = vrot.slane %v3555_v47, 1 }
 0x155   :  { %v1240_v10 = vmul.f32 %v3550_v3, %v4538_v6  ;;  %v1241_v56 = vmul.f32 %v3555_v47, %v4538_v6  ;;  %v1242_v7 = vmul.f32 %v3550_v3, %v4539_v17  ;;  %v1243_v45 = vmul.f32 %v3555_v47, %v4539_v17 }
 0x156   :  { %v1226_v19 = vsel %vm81_vm0, %v1224_v23, %v1225_v28  ;;  %v1227_v38 = vsel %vm81_vm0, %v1225_v28, %v1224_v23  ;;  %v1230_v48 = vsel %vm86_vm2, %v1228_v52, %v1229_v32  ;;  %v1231_v13 = vsel %vm86_vm2, %v1229_v32, %v1228_v52  ;;  %v4548_v23 = vld [vmem:[#allocation17_spill] sm:$0xff]  ;;  %v4549_v32 = vld [vmem:[#allocation18_spill] sm:$0xff] }
 0x157   :  { %v1232_v12 = vmul.f32 %v1227_v38, %v4541_v46  ;;  %v1233_v29 = vmul.f32 %v1226_v19, %v4541_v46  ;;  %v1234_v57 = vmul.f32 %v1227_v38, %v4542_v30  ;;  %v1235_v35 = vmul.f32 %v1226_v19, %v4542_v30 }
 0x158   :  { %v1236_v60 = vmul.f32 %v1227_v38, %v4543_v58  ;;  %v1237_v50 = vmul.f32 %v1226_v19, %v4543_v58  ;;  %v1238_v53 = vmul.f32 %v1227_v38, %v4544_v31  ;;  %v1239_v51 = vmul.f32 %v1226_v19, %v4544_v31  ;;  %v4553_v31 = vld [vmem:[#allocation26_spill] sm:$0xff] }
 0x159   :  { %v1244_v59 = vmul.f32 %v3550_v3, %v4545_v41  ;;  %v1245_v39 = vmul.f32 %v3555_v47, %v4545_v41  ;;  %v1246_v18 = vmul.f32 %v3550_v3, %v4546_v36  ;;  %v1247_v21 = vmul.f32 %v3555_v47, %v4546_v36 }
 0x15a   :  { %v1248_v11 = vadd.f32 %v1240_v10, %v1232_v12  ;;  %v1249_v22 = vadd.f32 %v1241_v56, %v1233_v29  ;;  %v1250_v26 = vadd.f32 %v1242_v7, %v1234_v57  ;;  %v1251_v62 = vadd.f32 %v1243_v45, %v1235_v35  ;;  %v4550_v10 = vld [vmem:[#allocation19_spill] sm:$0xff] }
 0x15b   :  { %v1252_v54 = vadd.f32 %v1244_v59, %v1236_v60  ;;  %v1253_v2 = vadd.f32 %v1245_v39, %v1237_v50  ;;  %v1254_v1 = vadd.f32 %v1246_v18, %v1238_v53  ;;  %v1255_v24 = vadd.f32 %v1247_v21, %v1239_v51  ;;  %v4551_v35 = vld [vmem:[#allocation23_spill] sm:$0xff]  ;;  %v4552_v60 = vld [vmem:[#allocation22_spill] sm:$0xff] }
 0x15c   :  { %v1256_v14 = vmul.f32 %v1230_v48, %v4547_v25  ;;  %v1257_v33 = vmul.f32 %v1231_v13, %v4547_v25  ;;  %v1258_v28 = vmul.f32 %v1230_v48, %v4548_v23  ;;  %v1259_v52 = vmul.f32 %v1231_v13, %v4548_v23 }
 0x15d   :  { %v1260_v6 = vmul.f32 %v1230_v48, %v4549_v32  ;;  %v1261_v17 = vmul.f32 %v1231_v13, %v4549_v32  ;;  %v1262_v56 = vmul.f32 %v1230_v48, %v4550_v10  ;;  %v1263_v7 = vmul.f32 %v1231_v13, %v4550_v10  ;;  %v4554_v48 = vld [vmem:[#allocation37_spill] sm:$0xff] }
 0x15e   :  { %v1264_v45 = vadd.f32 %v1256_v14, %v1248_v11  ;;  %v1265_v19 = vadd.f32 %v1257_v33, %v1249_v22  ;;  %v1266_v38 = vadd.f32 %v1258_v28, %v1250_v26  ;;  %v1267_v46 = vadd.f32 %v1259_v52, %v1251_v62  ;;  %v4555_v22 = vld [vmem:[#allocation33_spill] sm:$0xff] }
 0x15f   :  { %v1268_v12 = vadd.f32 %v1260_v6, %v1252_v54  ;;  %v1269_v29 = vadd.f32 %v1261_v17, %v1253_v2  ;;  %v1270_v30 = vadd.f32 %v1262_v56, %v1254_v1  ;;  %v1271_v57 = vadd.f32 %v1263_v7, %v1255_v24  ;;  %v4556_v62 = vld [vmem:[#allocation25_spill] sm:$0xff]  ;;  %v4557_v2 = vld [vmem:[#allocation58_spill] sm:$0xff] }
 0x160   :  { %v1272_v58 = vmul.f32 %v3550_v3, %v4551_v35  ;;  %v1273_v50 = vmul.f32 %v3550_v3, %v4552_v60  ;;  %v1274_v53 = vmul.f32 %v3550_v3, %v4553_v31  ;;  %v1275_v13 = vmul.f32 %v3550_v3, %v4554_v48  ;;  %v4558_v24 = vld [vmem:[#allocation49_spill] sm:$0xff] }
 0x161   :  { %v1293_v51 = vrot.slane %v3555_v47, 6  ;;  %v1315_v41 = vmul.f32 %v1264_v45, %v4502_v55  ;;  %v1316_v59 = vmul.f32 %v1265_v19, %v4503_v5  ;;  %v1317_v39 = vmul.f32 %v1266_v38, %v4502_v55  ;;  %v4577_v47 = vld [vmem:[#allocation39_spill] sm:$0xff] }
 0x162   :  { %v1280_v36 = vrot.slane %v1272_v58, 1  ;;  %v1281_v18 = vrot.slane %v1273_v50, 1  ;;  %v1282_v21 = vrot.slane %v1274_v53, 1  ;;  %v1283_v11 = vrot.slane %v1275_v13, 1 }
 0x163   :  { %v1295_v26 = vmul.f32 %v1293_v51, %v4555_v22  ;;  %v1296_v54 = vmul.f32 %v1293_v51, %v4556_v62  ;;  %v1297_v1 = vmul.f32 %v1293_v51, %v4557_v2  ;;  %v1298_v25 = vmul.f32 %v1293_v51, %v4558_v24 }
 0x164   :  { %v1288_v14 = vadd.f32 %v1280_v36, %v1272_v58  ;;  %v1289_v33 = vadd.f32 %v1281_v18, %v1273_v50  ;;  %v1290_v23 = vadd.f32 %v1282_v21, %v1274_v53  ;;  %v1291_v28 = vadd.f32 %v1283_v11, %v1275_v13 }
 0x165   :  { %v1303_v52 = vrot.slane %v1295_v26, 1  ;;  %v1304_v32 = vrot.slane %v1296_v54, 1  ;;  %v1305_v6 = vrot.slane %v1297_v1, 1  ;;  %v1306_v17 = vrot.slane %v1298_v25, 1 }
 0x166   :  { %v1318_v10 = vmul.f32 %v1267_v46, %v4503_v5  ;;  %v1319_v56 = vmul.f32 %v1268_v12, %v4502_v55  ;;  %v1320_v7 = vmul.f32 %v1269_v29, %v4503_v5  ;;  %v1321_v45 = vmul.f32 %v1270_v30, %v4502_v55  ;;  %v4603_v55 = vld [vmem:[#allocation50_spill] sm:$0xff] }
 0x167   :  { %v1311_v19 = vadd.f32 %v1303_v52, %v1295_v26  ;;  %v1312_v38 = vadd.f32 %v1304_v32, %v1296_v54  ;;  %v1313_v35 = vadd.f32 %v1305_v6, %v1297_v1  ;;  %v1314_v60 = vadd.f32 %v1306_v17, %v1298_v25 }
 0x168   :  { %v1322_v58 = vmul.f32 %v1271_v57, %v4503_v5  ;;  %v1326_v50 = vrot.slane %v1288_v14, %v4499_v27  ;;  %v1330_v31 = vrot.slane %v1289_v33, %v4499_v27  ;;  %v1334_v53 = vrot.slane %v1290_v23, %v4499_v27 }
 0x169   :  { %v1338_v46 = vrot.slane %v1291_v28, %v4499_v27  ;;  %v1358_v12 = vrot.slane %v1311_v19, %v4499_v27  ;;  %v1362_v29 = vrot.slane %v1312_v38, %v4499_v27  ;;  %v1366_v30 = vrot.slane %v1313_v35, %v4499_v27 }
 0x16a   :  { %v1339_v48 = vmul.f32 %v4506_v61, %v1326_v50  ;;  %v1340_v13 = vmul.f32 0.0, %v1326_v50  ;;  %v1341_v51 = vmul.f32 %v4506_v61, %v1330_v31  ;;  %v1342_v57 = vmul.f32 0.0, %v1330_v31  ;;  %v4567_v31 = vld [vmem:[#allocation31_spill] sm:$0xff] }
 0x16b   :  { %v1343_v36 = vmul.f32 %v4506_v61, %v1334_v53  ;;  %v1344_v18 = vmul.f32 0.0, %v1334_v53  ;;  %v1345_v21 = vmul.f32 %v4506_v61, %v1338_v46  ;;  %v1346_v11 = vmul.f32 0.0, %v1338_v46 }
 0x16c   :  { %v1347_v22 = vadd.f32 %v1339_v48, %v1315_v41  ;;  %v1348_v26 = vadd.f32 %v1340_v13, %v1316_v59  ;;  %v1349_v62 = vadd.f32 %v1341_v51, %v1317_v39  ;;  %v1350_v54 = vadd.f32 %v1342_v57, %v1318_v10 }
 0x16d   :  { %v1351_v2 = vadd.f32 %v1343_v36, %v1319_v56  ;;  %v1352_v1 = vadd.f32 %v1344_v18, %v1320_v7  ;;  %v1353_v24 = vadd.f32 %v1345_v21, %v1321_v45  ;;  %v1354_v25 = vadd.f32 %v1346_v11, %v1322_v58  ;;  %v4569_v36 = vld [vmem:[#allocation27_spill] sm:$0xff]  ;;  %v4570_v11 = vld [vmem:[#allocation28_spill] sm:$0xff] }
 0x16e   :  { %v1370_v14 = vrot.slane %v1314_v60, %v4499_v27  ;;  %v1371_v33 = vmul.f32 0.0, %v1358_v12  ;;  %v1372_v23 = vmul.f32 %v4507_v0, %v1358_v12  ;;  %v1373_v28 = vmul.f32 0.0, %v1362_v29 }
 0x16f   :  { %v1374_v52 = vmul.f32 %v4507_v0, %v1362_v29  ;;  %v1375_v32 = vmul.f32 0.0, %v1366_v30  ;;  %v1376_v6 = vmul.f32 %v4507_v0, %v1366_v30  ;;  %v4568_v30 = vld [vmem:[#allocation32_spill] sm:$0xff] }
 0x170   :  { %v1377_v17 = vmul.f32 0.0, %v1370_v14  ;;  %v1378_v41 = vmul.f32 %v4507_v0, %v1370_v14  ;;  %v3638_v59 = vadd.f32 %v1371_v33, %v1347_v22  ;;  %v3640_v39 = vadd.f32 %v1372_v23, %v1348_v26  ;;  %v4573_v14 = vld [vmem:[#allocation34_spill] sm:$0xff]  ;;  %v4601_v0 = vld [vmem:[#allocation44_spill] sm:$0xff] }
 0x171   :  { %v3642_v10 = vadd.f32 %v1373_v28, %v1349_v62  ;;  %v3644_v56 = vadd.f32 %v1374_v52, %v1350_v54  ;;  %v3646_v7 = vadd.f32 %v1375_v32, %v1351_v2  ;;  %v3648_v45 = vadd.f32 %v1376_v6, %v1352_v1  ;;  %v4571_v62 = vld [vmem:[#allocation29_spill] sm:$0xff]  ;;  %v4572_v1 = vld [vmem:[#allocation30_spill] sm:$0xff]  ;;  %v4574_v28 = vld [vmem:[#allocation35_spill] sm:$0xff] }
 0x172   :  { %4559 = vst [vmem:[#allocation88_spill] sm:$0xff] %v3638_v59  ;;  %4560 = vst [vmem:[#allocation98_spill] sm:$0xff] %v3640_v39  ;;  %v3650_v19 = vadd.f32 %v1377_v17, %v1353_v24  ;;  %v3652_v38 = vadd.f32 %v1378_v41, %v1354_v25  ;;  %v1387_v35 = vrot.slane %v3638_v59, 7  ;;  %v3656_v60 = vrot.slane %v3640_v39, 7 }
 0x173   :  { %4561 = vst [vmem:[#allocation108_spill] sm:$0xff] %v3642_v10  ;;  %4562 = vst [vmem:[#allocation110_spill] sm:$0xff] %v3644_v56  ;;  %v1391_v58 = vrot.slane %v3638_v59, 1  ;;  %v1392_v50 = vrot.slane %v3640_v39, 1  ;;  %v1403_v53 = vmul.f32 %v3638_v59, %v4567_v31  ;;  %v1404_v46 = vmul.f32 %v3640_v39, %v4567_v31 }
 0x174   :  { %4563 = vst [vmem:[#allocation86_spill] sm:$0xff] %v3646_v7  ;;  %4564 = vst [vmem:[#allocation96_spill] sm:$0xff] %v3648_v45  ;;  %v1389_v12 = vsel %vm81_vm0, %v1387_v35, %v3656_v60  ;;  %v1390_v29 = vsel %vm81_vm0, %v3656_v60, %v1387_v35  ;;  %v1405_v48 = vmul.f32 %v3638_v59, %v4568_v30 }
 0x175   :  { %4565 = vst [vmem:[#allocation106_spill] sm:$0xff] %v3650_v19  ;;  %4566 = vst [vmem:[#allocation64_spill] sm:$0xff] %v3652_v38  ;;  %v1406_v13 = vmul.f32 %v3640_v39, %v4568_v30  ;;  %v1393_v51 = vsel %vm86_vm2, %v1391_v58, %v1392_v50  ;;  %v1394_v57 = vsel %vm86_vm2, %v1392_v50, %v1391_v58  ;;  %v4575_v30 = vld [vmem:[#allocation36_spill] sm:$0xff] }
 0x176   :  { %v1395_v18 = vmul.f32 %v1390_v29, %v4569_v36  ;;  %v1396_v21 = vmul.f32 %v1389_v12, %v4569_v36  ;;  %v1397_v22 = vmul.f32 %v1390_v29, %v4570_v11  ;;  %v1398_v26 = vmul.f32 %v1389_v12, %v4570_v11 }
 0x177   :  { %v1399_v54 = vmul.f32 %v1390_v29, %v4571_v62  ;;  %v1400_v2 = vmul.f32 %v1389_v12, %v4571_v62  ;;  %v1401_v24 = vmul.f32 %v1390_v29, %v4572_v1  ;;  %v1402_v25 = vmul.f32 %v1389_v12, %v4572_v1  ;;  %v4576_v62 = vld [vmem:[#allocation38_spill] sm:$0xff] }
 0x178   :  { %v1407_v33 = vmul.f32 %v3638_v59, %v4573_v14  ;;  %v1408_v23 = vmul.f32 %v3640_v39, %v4573_v14  ;;  %v1409_v52 = vmul.f32 %v3638_v59, %v4574_v28  ;;  %v1410_v32 = vmul.f32 %v3640_v39, %v4574_v28 }
 0x179   :  { %v1411_v6 = vadd.f32 %v1403_v53, %v1395_v18  ;;  %v1412_v17 = vadd.f32 %v1404_v46, %v1396_v21  ;;  %v1413_v41 = vadd.f32 %v1405_v48, %v1397_v22  ;;  %v1414_v35 = vadd.f32 %v1406_v13, %v1398_v26  ;;  %v4578_v53 = vld [vmem:[#allocation40_spill] sm:$0xff] }
 0x17a   :  { %v1415_v50 = vadd.f32 %v1407_v33, %v1399_v54  ;;  %v1416_v31 = vadd.f32 %v1408_v23, %v1400_v2  ;;  %v1417_v29 = vadd.f32 %v1409_v52, %v1401_v24  ;;  %v1418_v12 = vadd.f32 %v1410_v32, %v1402_v25  ;;  %v4581_v52 = vld [vmem:[#allocation94_spill] sm:$0xff] }
 0x17b   :  { %v1419_v36 = vmul.f32 %v1393_v51, %v4575_v30  ;;  %v1420_v11 = vmul.f32 %v1394_v57, %v4575_v30  ;;  %v1421_v1 = vmul.f32 %v1393_v51, %v4576_v62  ;;  %v1422_v14 = vmul.f32 %v1394_v57, %v4576_v62  ;;  %v4585_v30 = vld [vmem:[#allocation101_spill] sm:$0xff] }
 0x17c   :  { %v1423_v3 = vmul.f32 %v1393_v51, %v4577_v47  ;;  %v1424_v28 = vmul.f32 %v1394_v57, %v4577_v47  ;;  %v1425_v46 = vmul.f32 %v1393_v51, %v4578_v53  ;;  %v1426_v48 = vmul.f32 %v1394_v57, %v4578_v53  ;;  %v4579_v47 = vld [vmem:[#allocation73_spill] sm:$0xff] }
 0x17d   :  { %v3702_v13 = vadd.f32 %v1419_v36, %v1411_v6  ;;  %v3704_v18 = vadd.f32 %v1420_v11, %v1412_v17  ;;  %v3706_v21 = vadd.f32 %v1421_v1, %v1413_v41  ;;  %v3708_v22 = vadd.f32 %v1422_v14, %v1414_v35  ;;  %v4582_v6 = vld [vmem:[#allocation95_spill] sm:$0xff] }
 0x17e   :  { %v3710_v26 = vadd.f32 %v1423_v3, %v1415_v50  ;;  %v3712_v54 = vadd.f32 %v1424_v28, %v1416_v31  ;;  %v3714_v2 = vadd.f32 %v1425_v46, %v1417_v29  ;;  %v3716_v24 = vadd.f32 %v1426_v48, %v1418_v12  ;;  %v4580_v3 = vld [vmem:[#allocation82_spill] sm:$0xff]  ;;  %v4583_v50 = vld [vmem:[#allocation109_spill] sm:$0xff]  ;;  %v4589_v28 = vld [vmem:[#allocation104_spill] sm:$0xff] }
 0x17f   :  { %v1443_v51 = vmul.f32 %v3638_v59, %v4579_v47  ;;  %v1444_v57 = vmul.f32 %v3638_v59, %v2871_v63  ;;  %v1445_v25 = vmul.f32 %v3638_v59, %v4521_v20  ;;  %v1446_v33 = vmul.f32 %v3638_v59, %v3336_v40  ;;  %v4590_v48 = vld [vmem:[#allocation74_spill] sm:$0xff] }
 0x180   :  { %v1450_v23 = vmul.f32 %v1391_v58, %v4580_v3  ;;  %v1451_v32 = vmul.f32 %v1391_v58, %v4581_v52  ;;  %v1452_v17 = vmul.f32 %v1391_v58, %v4582_v6  ;;  %v1453_v41 = vmul.f32 %v1391_v58, %v3375_v42  ;;  %v4588_v58 = vld [vmem:[#allocation83_spill] sm:$0xff] }
 0x181   :  { %v1463_v35 = vrot.slane %v3640_v39, 6  ;;  %v1471_v31 = vmul.f32 %v3656_v60, %v4583_v50  ;;  %v1472_v36 = vmul.f32 %v3656_v60, %v4585_v30  ;;  %v1473_v11 = vmul.f32 %v3656_v60, %v3396_v44  ;;  %v4600_v39 = vld [vmem:[#allocation43_spill] sm:$0xff] }
 0x182   :  { %v3733_v29 = vadd.f32 %v1450_v23, %v1443_v51  ;;  %v3735_v12 = vadd.f32 %v1451_v32, %v1444_v57  ;;  %v3741_v62 = vadd.f32 %v1452_v17, %v1445_v25  ;;  %v3743_v1 = vadd.f32 %v1453_v41, %v1446_v33  ;;  %v4591_v57 = vld [vmem:[#allocation63_spill] sm:$0xff] }
 0x183   :  { %v1465_v14 = vmul.f32 %v1463_v35, %v4588_v58  ;;  %v1466_v53 = vmul.f32 %v1463_v35, %v4589_v28  ;;  %v1467_v46 = vmul.f32 %v1463_v35, %v4517_v16  ;;  %v1468_v51 = vmul.f32 %v1463_v35, %v4590_v48 }
 0x184   :  { %4584 = vst [vmem:[#allocation87_spill] sm:$0xff] %v3735_v12  ;;  %4586 = vst [vmem:[#allocation111_spill] sm:$0xff] %v3741_v62  ;;  %v1474_v23 = vmul.f32 %v3656_v60, %v4591_v57  ;;  %v3752_v32 = vrot.slane %v3642_v10, 7  ;;  %v1484_v33 = vrot.slane %v3644_v56, 7  ;;  %v1487_v17 = vrot.slane %v3642_v10, 1  ;;  %v4606_v12 = vld [vmem:[#allocation53_spill] sm:$0xff] }
 0x185   :  { %4587 = vst [vmem:[#allocation113_spill] sm:$0xff] %v3743_v1  ;;  %v3754_v37 = vadd.f32 %v1471_v31, %v1465_v14  ;;  %v3756_v25 = vadd.f32 %v1472_v36, %v1466_v53  ;;  %v3760_v41 = vadd.f32 %v1473_v11, %v1467_v46  ;;  %v1488_v35 = vrot.slane %v3644_v56, 1  ;;  %v4597_v11 = vld [vmem:[#allocation46_spill] sm:$0xff]  ;;  %v4605_v1 = vld [vmem:[#allocation52_spill] sm:$0xff] }
 0x186   :  { %v3762_v15 = vadd.f32 %v1474_v23, %v1468_v51  ;;  %v1499_v60 = vmul.f32 %v3642_v10, %v4596_v43  ;;  %v1485_v31 = vsel %vm81_vm0, %v3752_v32, %v1484_v33  ;;  %v1486_v36 = vsel %vm81_vm0, %v1484_v33, %v3752_v32  ;;  %v4598_v23 = vld [vmem:[#allocation41_spill] sm:$0xff] }
 0x187   :  { %4592 = vst [vmem:[#allocation114_spill] sm:$0xff] %v3754_v37  ;;  %4593 = vst [vmem:[#allocation48_spill] sm:$0xff] %v3756_v25  ;;  %v1500_v14 = vmul.f32 %v3644_v56, %v4596_v43  ;;  %v1501_v53 = vmul.f32 %v3642_v10, %v4597_v11  ;;  %v1489_v46 = vsel %vm86_vm2, %v1487_v17, %v1488_v35  ;;  %v4604_v25 = vld [vmem:[#allocation51_spill] sm:$0xff] }
 0x188   :  { %4594 = vst [vmem:[#allocation66_spill] sm:$0xff] %v3760_v41  ;;  %4595 = vst [vmem:[#allocation67_spill] sm:$0xff] %v3762_v15  ;;  %v1490_v51 = vsel %vm86_vm2, %v1488_v35, %v1487_v17  ;;  %v1491_v4 = vmul.f32 %v1486_v36, %v4598_v23  ;;  %v1492_v49 = vmul.f32 %v1485_v31, %v4598_v23  ;;  %v4602_v17 = vld [vmem:[#allocation47_spill] sm:$0xff] }
 0x189   :  { %v1493_v8 = vmul.f32 %v1486_v36, %v4599_v9  ;;  %v1494_v33 = vmul.f32 %v1485_v31, %v4599_v9  ;;  %v1495_v59 = vmul.f32 %v1486_v36, %v4600_v39  ;;  %v1496_v43 = vmul.f32 %v1485_v31, %v4600_v39 }
 0x18a   :  { %v1497_v61 = vmul.f32 %v1486_v36, %v4601_v0  ;;  %v1498_v27 = vmul.f32 %v1485_v31, %v4601_v0  ;;  %v1502_v5 = vmul.f32 %v3644_v56, %v4597_v11  ;;  %v1503_v35 = vmul.f32 %v3642_v10, %v4602_v17 }
 0x18b   :  { %v1504_v23 = vmul.f32 %v3644_v56, %v4602_v17  ;;  %v1505_v9 = vmul.f32 %v3642_v10, %v4603_v55  ;;  %v1506_v38 = vmul.f32 %v3644_v56, %v4603_v55  ;;  %v1507_v39 = vadd.f32 %v1499_v60, %v1491_v4  ;;  %v4607_v4 = vld [vmem:[#allocation54_spill] sm:$0xff] }
 0x18c   :  { %v1508_v19 = vadd.f32 %v1500_v14, %v1492_v49  ;;  %v1509_v36 = vadd.f32 %v1501_v53, %v1493_v8  ;;  %v1510_v15 = vadd.f32 %v1502_v5, %v1494_v33  ;;  %v1511_v0 = vadd.f32 %v1503_v35, %v1495_v59 }
 0x18d   :  { %v1512_v31 = vadd.f32 %v1504_v23, %v1496_v43  ;;  %v1513_v41 = vadd.f32 %v1505_v9, %v1497_v61  ;;  %v1514_v11 = vadd.f32 %v1506_v38, %v1498_v27  ;;  %v1515_v37 = vmul.f32 %v1489_v46, %v4604_v25 }
 0x18e   :  { %v1516_v34 = vmul.f32 %v1490_v51, %v4604_v25  ;;  %v1517_v17 = vmul.f32 %v1489_v46, %v4605_v1  ;;  %v1518_v62 = vmul.f32 %v1490_v51, %v4605_v1  ;;  %v1519_v57 = vmul.f32 %v1489_v46, %v4606_v12 }
 0x18f   :  { %v1520_v55 = vmul.f32 %v1490_v51, %v4606_v12  ;;  %v1521_v49 = vmul.f32 %v1489_v46, %v4607_v4  ;;  %v1522_v8 = vmul.f32 %v1490_v51, %v4607_v4  ;;  %v1523_v5 = vadd.f32 %v1515_v37, %v1507_v39 }
 0x190   :  { %v1524_v59 = vadd.f32 %v1516_v34, %v1508_v19  ;;  %v1525_v61 = vadd.f32 %v1517_v17, %v1509_v36  ;;  %v1526_v27 = vadd.f32 %v1518_v62, %v1510_v15  ;;  %v1527_v38 = vadd.f32 %v1519_v57, %v1511_v0 }
 0x191   :  { %v1528_v60 = vadd.f32 %v1520_v55, %v1512_v31  ;;  %v1529_v14 = vadd.f32 %v1521_v49, %v1513_v41  ;;  %v1530_v25 = vadd.f32 %v1522_v8, %v1514_v11  ;;  %v3808_v53 = vadd.f32 %v1523_v5, %v3702_v13  ;;  %v4608_v5 = vld [vmem:[#allocation63_spill] sm:$0xff] }
 0x192   :  { %v3811_v1 = vadd.f32 %v1524_v59, %v3704_v18  ;;  %v3814_v12 = vadd.f32 %v1525_v61, %v3706_v21  ;;  %v3817_v46 = vadd.f32 %v1526_v27, %v3708_v22  ;;  %v3820_v37 = vadd.f32 %v1527_v38, %v3710_v26  ;;  %v4609_v61 = vld [vmem:[#allocation87_spill] sm:$0xff] }
 0x193   :  { %v3823_v15 = vadd.f32 %v1528_v60, %v3712_v54  ;;  %v3826_v34 = vadd.f32 %v1529_v14, %v3714_v2  ;;  %v3829_v19 = vadd.f32 %v1530_v25, %v3716_v24  ;;  %v1542_v13 = vmul.f32 %v3752_v32, %v4579_v47  ;;  %v4610_v38 = vld [vmem:[#allocation111_spill] sm:$0xff]  ;;  %v4612_v14 = vld [vmem:[#allocation113_spill] sm:$0xff] }
 0x194   :  { %v1543_v18 = vmul.f32 %v3752_v32, %v2871_v63  ;;  %v1544_v21 = vmul.f32 %v3752_v32, %v4521_v20  ;;  %v1545_v22 = vmul.f32 %v3752_v32, %v3336_v40  ;;  %v1546_v26 = vmul.f32 %v3642_v10, %v4580_v3 }
 0x195   :  { %v1547_v54 = vmul.f32 %v3642_v10, %v4581_v52  ;;  %v1548_v2 = vmul.f32 %v3642_v10, %v4582_v6  ;;  %v1549_v24 = vmul.f32 %v3642_v10, %v3375_v42  ;;  %v1571_v62 = vrot.slane %v3644_v56, 5 }
 0x196   :  { %v1550_v57 = vadd.f32 %v1546_v26, %v1542_v13  ;;  %v1577_v41 = vrot.slane %v3644_v56, 6  ;;  %v3850_v51 = vrot.slane %v3646_v7, 7  ;;  %v1604_v32 = vrot.slane %v3648_v45, 7 }
 0x197   :  { %v1551_v33 = vadd.f32 %v1547_v54, %v1543_v18  ;;  %v1552_v43 = vadd.f32 %v1548_v2, %v1544_v21  ;;  %v1553_v35 = vadd.f32 %v1549_v24, %v1545_v22  ;;  %v1573_v23 = vmul.f32 %v1571_v62, %v4588_v58  ;;  %v4631_v22 = vld [vmem:[#allocation80_spill] sm:$0xff] }
 0x198   :  { %v1558_v9 = vrot.slane %v1550_v57, 1  ;;  %v1574_v39 = vmul.f32 %v1571_v62, %v4589_v28  ;;  %v1575_v36 = vmul.f32 %v1571_v62, %v4517_v16  ;;  %v1576_v0 = vmul.f32 %v1571_v62, %v4590_v48 }
 0x199   :  { %v1559_v31 = vrot.slane %v1551_v33, 1  ;;  %v1560_v11 = vrot.slane %v1552_v43, 1  ;;  %v1561_v17 = vrot.slane %v1553_v35, 1  ;;  %v1579_v55 = vmul.f32 %v1577_v41, %v4583_v50  ;;  %v4615_v43 = vld [vmem:[#allocation55_spill] sm:$0xff] }
 0x19a   :  { %v3859_v4 = vadd.f32 %v1558_v9, %v3733_v29  ;;  %v1580_v49 = vmul.f32 %v1577_v41, %v4585_v30  ;;  %v1581_v8 = vmul.f32 %v1577_v41, %v3396_v44  ;;  %v1582_v59 = vmul.f32 %v1577_v41, %v4608_v5 }
 0x19b   :  { %v3865_v27 = vadd.f32 %v1559_v31, %v4609_v61  ;;  %v3868_v60 = vadd.f32 %v1560_v11, %v4610_v38  ;;  %v3871_v25 = vadd.f32 %v1561_v17, %v4612_v14  ;;  %v1583_v13 = vadd.f32 %v1579_v55, %v1573_v23  ;;  %v4616_v23 = vld [vmem:[#allocation114_spill] sm:$0xff]  ;;  %v4622_v55 = vld [vmem:[#allocation67_spill] sm:$0xff] }
 0x19c   :  { %v1584_v18 = vadd.f32 %v1580_v49, %v1574_v39  ;;  %v1585_v21 = vadd.f32 %v1581_v8, %v1575_v36  ;;  %v1586_v29 = vadd.f32 %v1582_v59, %v1576_v0  ;;  %v1605_v26 = vsel %vm81_vm0, %v3850_v51, %v1604_v32  ;;  %v4618_v0 = vld [vmem:[#allocation48_spill] sm:$0xff]  ;;  %v4620_v11 = vld [vmem:[#allocation66_spill] sm:$0xff]  ;;  %v4624_v8 = vld [vmem:[#allocation57_spill] sm:$0xff] }
 0x19d   :  { %4611 = vst [vmem:[#allocation116_spill] sm:$0xff] %v3868_v60  ;;  %4613 = vst [vmem:[#allocation117_spill] sm:$0xff] %v3871_v25  ;;  %v1591_v54 = vrot.slane %v1583_v13, 1  ;;  %v1606_v2 = vsel %vm81_vm0, %v1604_v32, %v3850_v51  ;;  %v1607_v24 = vrot.slane %v3646_v7, 1  ;;  %v1608_v62 = vrot.slane %v3648_v45, 1  ;;  %v4625_v38 = vld [vmem:[#allocation59_spill] sm:$0xff] }
 0x19e   :  { %v1592_v57 = vrot.slane %v1584_v18, 1  ;;  %v1593_v41 = vrot.slane %v1585_v21, 1  ;;  %v1594_v33 = vrot.slane %v1586_v29, 1  ;;  %v1611_v35 = vmul.f32 %v1606_v2, %v4615_v43  ;;  %v4626_v18 = vld [vmem:[#allocation60_spill] sm:$0xff] }
 0x19f   :  { %v3883_v9 = vadd.f32 %v1591_v54, %v4616_v23  ;;  %v1609_v39 = vsel %vm86_vm2, %v1607_v24, %v1608_v62  ;;  %v1610_v36 = vsel %vm86_vm2, %v1608_v62, %v1607_v24  ;;  %v1612_v32 = vmul.f32 %v1605_v26, %v4615_v43  ;;  %v4627_v54 = vld [vmem:[#allocation61_spill] sm:$0xff]  ;;  %v4629_v43 = vld [vmem:[#allocation70_spill] sm:$0xff]  ;;  %v4633_v25 = vld [vmem:[#allocation84_spill] sm:$0xff] }
 0x1a0   :  { %v3891_v31 = vadd.f32 %v1592_v57, %v4618_v0  ;;  %v3894_v17 = vadd.f32 %v1593_v41, %v4620_v11  ;;  %v3897_v49 = vadd.f32 %v1594_v33, %v4622_v55  ;;  %v1613_v59 = vmul.f32 %v1606_v2, %v4624_v8  ;;  %v4628_v57 = vld [vmem:[#allocation62_spill] sm:$0xff]  ;;  %v4630_v0 = vld [vmem:[#allocation71_spill] sm:$0xff] }
 0x1a1   :  { %4617 = vst [vmem:[#allocation76_spill] sm:$0xff] %v3883_v9  ;;  %v1614_v61 = vmul.f32 %v1605_v26, %v4624_v8  ;;  %v1615_v14 = vmul.f32 %v1606_v2, %v4625_v38  ;;  %v1616_v13 = vmul.f32 %v1605_v26, %v4625_v38  ;;  %v1617_v21 = vmul.f32 %v1606_v2, %v4626_v18 }
 0x1a2   :  { %4619 = vst [vmem:[#allocation77_spill] sm:$0xff] %v3891_v31  ;;  %4621 = vst [vmem:[#allocation8_spill] sm:$0xff] %v3894_v17  ;;  %v1618_v29 = vmul.f32 %v1605_v26, %v4626_v18  ;;  %v1619_v24 = vmul.f32 %v3646_v7, %v4627_v54  ;;  %v1620_v62 = vmul.f32 %v3648_v45, %v4627_v54  ;;  %v4632_v31 = vld [vmem:[#allocation81_spill] sm:$0xff] }
 0x1a3   :  { %4623 = vst [vmem:[#allocation11_spill] sm:$0xff] %v3897_v49  ;;  %v1621_v41 = vmul.f32 %v3646_v7, %v4628_v57  ;;  %v1622_v33 = vmul.f32 %v3648_v45, %v4628_v57  ;;  %v1623_v23 = vmul.f32 %v3646_v7, %v4629_v43  ;;  %v1624_v2 = vmul.f32 %v3648_v45, %v4629_v43 }
 0x1a4   :  { %v1625_v26 = vmul.f32 %v3646_v7, %v4630_v0  ;;  %v1626_v11 = vmul.f32 %v3648_v45, %v4630_v0  ;;  %v1627_v55 = vadd.f32 %v1619_v24, %v1611_v35  ;;  %v1628_v8 = vadd.f32 %v1620_v62, %v1612_v32  ;;  %v4634_v35 = vld [vmem:[#allocation85_spill] sm:$0xff] }
 0x1a5   :  { %v1629_v38 = vadd.f32 %v1621_v41, %v1613_v59  ;;  %v1630_v18 = vadd.f32 %v1622_v33, %v1614_v61  ;;  %v1631_v54 = vadd.f32 %v1623_v23, %v1615_v14  ;;  %v1632_v56 = vadd.f32 %v1624_v2, %v1616_v13 }
 0x1a6   :  { %v1633_v10 = vadd.f32 %v1625_v26, %v1617_v21  ;;  %v1634_v57 = vadd.f32 %v1626_v11, %v1618_v29  ;;  %v1635_v49 = vmul.f32 %v1609_v39, %v4631_v22  ;;  %v1636_v17 = vmul.f32 %v1610_v36, %v4631_v22 }
 0x1a7   :  { %v1637_v43 = vmul.f32 %v1609_v39, %v4632_v31  ;;  %v1638_v9 = vmul.f32 %v1610_v36, %v4632_v31  ;;  %v1639_v60 = vmul.f32 %v1609_v39, %v4633_v25  ;;  %v1640_v0 = vmul.f32 %v1610_v36, %v4633_v25 }
 0x1a8   :  { %v1641_v32 = vmul.f32 %v1609_v39, %v4634_v35  ;;  %v1642_v59 = vmul.f32 %v1610_v36, %v4634_v35  ;;  %v1643_v61 = vadd.f32 %v1635_v49, %v1627_v55  ;;  %v1644_v14 = vadd.f32 %v1636_v17, %v1628_v8 }
 0x1a9   :  { %v1645_v13 = vadd.f32 %v1637_v43, %v1629_v38  ;;  %v1646_v21 = vadd.f32 %v1638_v9, %v1630_v18  ;;  %v1647_v29 = vadd.f32 %v1639_v60, %v1631_v54  ;;  %v1648_v24 = vadd.f32 %v1640_v0, %v1632_v56 }
 0x1aa   :  { %v1649_v62 = vadd.f32 %v1641_v32, %v1633_v10  ;;  %v1650_v22 = vadd.f32 %v1642_v59, %v1634_v57  ;;  %v3930_v41 = vadd.f32 %v1643_v61, %v3808_v53  ;;  %v3933_v31 = vadd.f32 %v1644_v14, %v3811_v1 }
 0x1ab   :  { %v3936_v25 = vadd.f32 %v1645_v13, %v3814_v12  ;;  %v3939_v39 = vadd.f32 %v1646_v21, %v3817_v46  ;;  %v3942_v36 = vadd.f32 %v1647_v29, %v3820_v37  ;;  %v3945_v60 = vadd.f32 %v1648_v24, %v3823_v15  ;;  %v4635_v24 = vld [vmem:[#allocation116_spill] sm:$0xff] }
 0x1ac   :  { %v3948_v10 = vadd.f32 %v1649_v62, %v3826_v34  ;;  %v3951_v56 = vadd.f32 %v1650_v22, %v3829_v19  ;;  %v1660_v53 = vrot.slane %v3646_v7, 6  ;;  %v1668_v1 = vmul.f32 %v3850_v51, %v4580_v3  ;;  %v4636_v22 = vld [vmem:[#allocation117_spill] sm:$0xff] }
 0x1ad   :  { %v1669_v12 = vmul.f32 %v3850_v51, %v4581_v52  ;;  %v1670_v46 = vmul.f32 %v3850_v51, %v4582_v6  ;;  %v1671_v37 = vmul.f32 %v3850_v51, %v3375_v42  ;;  %v1693_v15 = vrot.slane %v3648_v45, 4 }
 0x1ae   :  { %v1699_v34 = vrot.slane %v3648_v45, 5  ;;  %v1662_v19 = vmul.f32 %v1660_v53, %v4579_v47  ;;  %v1663_v9 = vmul.f32 %v1660_v53, %v2871_v63  ;;  %v1664_v17 = vmul.f32 %v1660_v53, %v4521_v20  ;;  %v4657_v45 = vld [vmem:[#allocation102_spill] sm:$0xff] }
 0x1af   :  { %v1665_v49 = vmul.f32 %v1660_v53, %v3336_v40  ;;  %v1695_v33 = vmul.f32 %v1693_v15, %v4588_v58  ;;  %v1696_v23 = vmul.f32 %v1693_v15, %v4589_v28  ;;  %v1697_v2 = vmul.f32 %v1693_v15, %v4517_v16 }
 0x1b0   :  { %v1698_v51 = vmul.f32 %v1693_v15, %v4590_v48  ;;  %v1672_v26 = vadd.f32 %v1668_v1, %v1662_v19  ;;  %v1673_v11 = vadd.f32 %v1669_v12, %v1663_v9  ;;  %v1674_v55 = vadd.f32 %v1670_v46, %v1664_v17  ;;  %v4638_v15 = vld [vmem:[#allocation106_spill] sm:$0xff]  ;;  %v4639_v19 = vld [vmem:[#allocation64_spill] sm:$0xff] }
 0x1b1   :  { %v1675_v8 = vadd.f32 %v1671_v37, %v1665_v49  ;;  %v1701_v38 = vmul.f32 %v1699_v34, %v4583_v50  ;;  %v1702_v18 = vmul.f32 %v1699_v34, %v4585_v30  ;;  %v1703_v54 = vmul.f32 %v1699_v34, %v3396_v44 }
 0x1b2   :  { %v1704_v57 = vmul.f32 %v1699_v34, %v4608_v5  ;;  %v1680_v43 = vrot.slane %v1672_v26, 2  ;;  %v1681_v0 = vrot.slane %v1673_v11, 2  ;;  %v1682_v35 = vrot.slane %v1674_v55, 2  ;;  %v4646_v26 = vld [vmem:[#allocation11_spill] sm:$0xff] }
 0x1b3   :  { %v1683_v32 = vrot.slane %v1675_v8, 2  ;;  %v1705_v59 = vadd.f32 %v1701_v38, %v1695_v33  ;;  %v1706_v61 = vadd.f32 %v1702_v18, %v1696_v23  ;;  %v1707_v14 = vadd.f32 %v1703_v54, %v1697_v2  ;;  %v4642_v33 = vld [vmem:[#allocation77_spill] sm:$0xff]  ;;  %v4644_v2 = vld [vmem:[#allocation8_spill] sm:$0xff] }
 0x1b4   :  { %v1708_v13 = vadd.f32 %v1704_v57, %v1698_v51  ;;  %v3977_v21 = vadd.f32 %v1680_v43, %v3859_v4  ;;  %v3980_v29 = vadd.f32 %v1681_v0, %v3865_v27  ;;  %v3983_v62 = vadd.f32 %v1682_v35, %v4635_v24  ;;  %v4640_v27 = vld [vmem:[#allocation76_spill] sm:$0xff]  ;;  %v4650_v35 = vld [vmem:[#allocation89_spill] sm:$0xff] }
 0x1b5   :  { %v3986_v53 = vadd.f32 %v1683_v32, %v4636_v22  ;;  %v1713_v1 = vrot.slane %v1705_v59, 2  ;;  %v1714_v12 = vrot.slane %v1706_v61, 2  ;;  %v1715_v46 = vrot.slane %v1707_v14, 2  ;;  %v4649_v57 = vld [vmem:[#allocation68_spill] sm:$0xff]  ;;  %v4651_v61 = vld [vmem:[#allocation90_spill] sm:$0xff] }
 0x1b6   :  { %v1716_v37 = vrot.slane %v1708_v13, 2  ;;  %v1725_v34 = vrot.slane %v4638_v15, 7  ;;  %v1726_v9 = vrot.slane %v4639_v19, 7  ;;  %v1729_v4 = vrot.slane %v4638_v15, 1  ;;  %v4652_v24 = vld [vmem:[#allocation92_spill] sm:$0xff] }
 0x1b7   :  { %4637 = vst [vmem:[#allocation6_spill] sm:$0xff] %v3986_v53  ;;  %v1730_v17 = vrot.slane %v4639_v19, 1  ;;  %v3993_v49 = vadd.f32 %v1713_v1, %v4640_v27  ;;  %v3996_v23 = vadd.f32 %v1714_v12, %v4642_v33  ;;  %v3999_v51 = vadd.f32 %v1715_v46, %v4644_v2  ;;  %v4653_v12 = vld [vmem:[#allocation69_spill] sm:$0xff]  ;;  %v4656_v2 = vld [vmem:[#allocation100_spill] sm:$0xff] }
 0x1b8   :  { %v4002_v11 = vadd.f32 %v1716_v37, %v4646_v26  ;;  %v1727_v8 = vsel %vm81_vm0, %v1725_v34, %v1726_v9  ;;  %v1728_v38 = vsel %vm81_vm0, %v1726_v9, %v1725_v34  ;;  %v1741_v46 = vmul.f32 %v4638_v15, %v4653_v12  ;;  %v4654_v34 = vld [vmem:[#allocation93_spill] sm:$0xff] }
 0x1b9   :  { %4641 = vst [vmem:[#allocation7_spill] sm:$0xff] %v3993_v49  ;;  %4643 = vst [vmem:[#allocation9_spill] sm:$0xff] %v3996_v23  ;;  %v1731_v18 = vsel %vm86_vm2, %v1729_v4, %v1730_v17  ;;  %v1732_v54 = vsel %vm86_vm2, %v1730_v17, %v1729_v4  ;;  %v1733_v43 = vmul.f32 %v1728_v38, %v4649_v57  ;;  %v4655_v17 = vld [vmem:[#allocation99_spill] sm:$0xff]  ;;  %v4659_v49 = vld [vmem:[#allocation105_spill] sm:$0xff] }
 0x1ba   :  { %4645 = vst [vmem:[#allocation13_spill] sm:$0xff] %v3999_v51  ;;  %4647 = vst [vmem:[#allocation14_spill] sm:$0xff] %v4002_v11  ;;  %v1734_v0 = vmul.f32 %v1727_v8, %v4649_v57  ;;  %v1735_v32 = vmul.f32 %v1728_v38, %v4650_v35  ;;  %v1736_v59 = vmul.f32 %v1727_v8, %v4650_v35  ;;  %v4658_v51 = vld [vmem:[#allocation103_spill] sm:$0xff] }
 0x1bb   :  { %v1737_v14 = vmul.f32 %v1728_v38, %v4651_v61  ;;  %v1738_v13 = vmul.f32 %v1727_v8, %v4651_v61  ;;  %v1739_v22 = vmul.f32 %v1728_v38, %v4652_v24  ;;  %v1740_v1 = vmul.f32 %v1727_v8, %v4652_v24 }
 0x1bc   :  { %v1742_v37 = vmul.f32 %v4639_v19, %v4653_v12  ;;  %v1743_v9 = vmul.f32 %v4638_v15, %v4654_v34  ;;  %v1744_v4 = vmul.f32 %v4639_v19, %v4654_v34  ;;  %v1745_v27 = vmul.f32 %v4638_v15, %v4655_v17 }
 0x1bd   :  { %v1746_v33 = vmul.f32 %v4639_v19, %v4655_v17  ;;  %v1747_v26 = vmul.f32 %v4638_v15, %v4656_v2  ;;  %v1748_v55 = vmul.f32 %v4639_v19, %v4656_v2  ;;  %v1749_v8 = vadd.f32 %v1741_v46, %v1733_v43  ;;  %v4660_v43 = vld [vmem:[#allocation112_spill] sm:$0xff] }
 0x1be   :  { %v1750_v38 = vadd.f32 %v1742_v37, %v1734_v0  ;;  %v1751_v57 = vadd.f32 %v1743_v9, %v1735_v32  ;;  %v1752_v35 = vadd.f32 %v1744_v4, %v1736_v59  ;;  %v1753_v61 = vadd.f32 %v1745_v27, %v1737_v14  ;;  %v4661_v27 = vld [vmem:[#allocation20_spill] sm:$0xff] }
 0x1bf   :  { %v1754_v24 = vadd.f32 %v1746_v33, %v1738_v13  ;;  %v1755_v12 = vadd.f32 %v1747_v26, %v1739_v22  ;;  %v1756_v34 = vadd.f32 %v1748_v55, %v1740_v1  ;;  %v1757_v7 = vmul.f32 %v1731_v18, %v4657_v45 }
 0x1c0   :  { %v1758_v11 = vmul.f32 %v1732_v54, %v4657_v45  ;;  %v1759_v17 = vmul.f32 %v1731_v18, %v4658_v51  ;;  %v1760_v23 = vmul.f32 %v1732_v54, %v4658_v51  ;;  %v1761_v53 = vmul.f32 %v1731_v18, %v4659_v49 }
 0x1c1   :  { %v1762_v2 = vmul.f32 %v1732_v54, %v4659_v49  ;;  %v1763_v0 = vmul.f32 %v1731_v18, %v4660_v43  ;;  %v1764_v32 = vmul.f32 %v1732_v54, %v4660_v43  ;;  %v1765_v59 = vadd.f32 %v1757_v7, %v1749_v8 }
 0x1c2   :  { %v1766_v14 = vadd.f32 %v1758_v11, %v1750_v38  ;;  %v1767_v13 = vadd.f32 %v1759_v17, %v1751_v57  ;;  %v1768_v22 = vadd.f32 %v1760_v23, %v1752_v35  ;;  %v1769_v1 = vadd.f32 %v1761_v53, %v1753_v61 }
 0x1c3   :  { %v1770_v46 = vadd.f32 %v1762_v2, %v1754_v24  ;;  %v1771_v37 = vadd.f32 %v1763_v0, %v1755_v12  ;;  %v1772_v45 = vadd.f32 %v1764_v32, %v1756_v34  ;;  %v1773_v9 = vadd.f32 %v1765_v59, %v3930_v41 }
 0x1c4   :  { %v1774_v51 = vadd.f32 %v1766_v14, %v3933_v31  ;;  %v1775_v4 = vadd.f32 %v1767_v13, %v3936_v25  ;;  %v1776_v49 = vadd.f32 %v1768_v22, %v3939_v39  ;;  %v1777_v18 = vadd.f32 %v1769_v1, %v3942_v36  ;;  %v4662_v39 = vld [vmem:[#allocation21_spill] sm:$0xff]  ;;  %v4663_v14 = vld [vmem:[#allocation6_spill] sm:$0xff] }
 0x1c5   :  { %v1778_v54 = vadd.f32 %v1770_v46, %v3945_v60  ;;  %v1779_v7 = vadd.f32 %v1771_v37, %v3948_v10  ;;  %v1780_v23 = vadd.f32 %v1772_v45, %v3951_v56  ;;  %v1782_v53 = vrot.slane %v4638_v15, 5 }
 0x1c6   :  { %v1788_v11 = vrot.slane %v4638_v15, 6  ;;  %v1815_v41 = vrot.slane %v4639_v19, 3  ;;  %v1821_v31 = vrot.slane %v4639_v19, 4  ;;  %v4057_v25 = vmul.f32 %v1773_v9, %v4661_v27  ;;  %v4664_v9 = vld [vmem:[#allocation7_spill] sm:$0xff] }
 0x1c7   :  { %v4060_v33 = vmul.f32 %v1774_v51, %v4662_v39  ;;  %v4063_v36 = vmul.f32 %v1775_v4, %v4661_v27  ;;  %v4066_v60 = vmul.f32 %v1776_v49, %v4662_v39  ;;  %v1784_v10 = vmul.f32 %v1782_v53, %v4579_v47  ;;  %v4665_v51 = vld [vmem:[#allocation9_spill] sm:$0xff]  ;;  %v4667_v49 = vld [vmem:[#allocation14_spill] sm:$0xff] }
 0x1c8   :  { %v1785_v56 = vmul.f32 %v1782_v53, %v2871_v63  ;;  %v1786_v26 = vmul.f32 %v1782_v53, %v4521_v20  ;;  %v1787_v55 = vmul.f32 %v1782_v53, %v3336_v40  ;;  %v1790_v8 = vmul.f32 %v1788_v11, %v4580_v3  ;;  %v4666_v4 = vld [vmem:[#allocation13_spill] sm:$0xff] }
 0x1c9   :  { %v1791_v38 = vmul.f32 %v1788_v11, %v4581_v52  ;;  %v1792_v57 = vmul.f32 %v1788_v11, %v4582_v6  ;;  %v1793_v35 = vmul.f32 %v1788_v11, %v3375_v42  ;;  %v1817_v61 = vmul.f32 %v1815_v41, %v4588_v58  ;;  %v4668_v11 = vld [vmem:[#allocation24_spill] sm:$0xff] }
 0x1ca   :  { %v1818_v24 = vmul.f32 %v1815_v41, %v4589_v28  ;;  %v1819_v47 = vmul.f32 %v1815_v41, %v4517_v16  ;;  %v1820_v63 = vmul.f32 %v1815_v41, %v4590_v48  ;;  %v1794_v12 = vadd.f32 %v1790_v8, %v1784_v10  ;;  %v4669_v10 = vld [vmem:[#allocation10_spill] sm:$0xff] }
 0x1cb   :  { %v1795_v20 = vadd.f32 %v1791_v38, %v1785_v56  ;;  %v1796_v34 = vadd.f32 %v1792_v57, %v1786_v26  ;;  %v1797_v40 = vadd.f32 %v1793_v35, %v1787_v55  ;;  %v1823_v3 = vmul.f32 %v1821_v31, %v4583_v50 }
 0x1cc   :  { %v1824_v52 = vmul.f32 %v1821_v31, %v4585_v30  ;;  %v1825_v6 = vmul.f32 %v1821_v31, %v3396_v44  ;;  %v1826_v42 = vmul.f32 %v1821_v31, %v4608_v5  ;;  %v1802_v17 = vrot.slane %v1794_v12, 3 }
 0x1cd   :  { %v1803_v58 = vrot.slane %v1795_v20, 3  ;;  %v1804_v2 = vrot.slane %v1796_v34, 3  ;;  %v1805_v28 = vrot.slane %v1797_v40, 3  ;;  %v1827_v43 = vadd.f32 %v1823_v3, %v1817_v61 }
 0x1ce   :  { %v1828_v16 = vadd.f32 %v1824_v52, %v1818_v24  ;;  %v1829_v0 = vadd.f32 %v1825_v6, %v1819_v47  ;;  %v1830_v48 = vadd.f32 %v1826_v42, %v1820_v63  ;;  %v1810_v32 = vadd.f32 %v1802_v17, %v3977_v21  ;;  %v4670_v6 = vld [vmem:[#allocation12_spill] sm:$0xff] }
 0x1cf   :  { %v1811_v59 = vadd.f32 %v1803_v58, %v3980_v29  ;;  %v1812_v50 = vadd.f32 %v1804_v2, %v3983_v62  ;;  %v1813_v30 = vadd.f32 %v1805_v28, %v4663_v14  ;;  %v1835_v13 = vrot.slane %v1827_v43, 3  ;;  %v4672_v14 = vld [vmem:[#allocation88_spill] sm:$0xff] }
 0x1d0   :  { %v1836_v44 = vrot.slane %v1828_v16, 3  ;;  %v1837_v22 = vrot.slane %v1829_v0, 3  ;;  %v1838_v5 = vrot.slane %v1830_v48, 3  ;;  %v1851_v1 = vmul.f32 %v1777_v18, %v4661_v27 }
 0x1d1   :  { %v1852_v46 = vmul.f32 %v1778_v54, %v4662_v39  ;;  %v1853_v37 = vmul.f32 %v1779_v7, %v4661_v27  ;;  %v1854_v45 = vmul.f32 %v1780_v23, %v4662_v39  ;;  %v1843_v21 = vadd.f32 %v1835_v13, %v4664_v9  ;;  %v4673_v13 = vld [vmem:[#allocation98_spill] sm:$0xff] }
 0x1d2   :  { %v1844_v29 = vadd.f32 %v1836_v44, %v4665_v51  ;;  %v1845_v62 = vadd.f32 %v1837_v22, %v4666_v4  ;;  %v1846_v53 = vadd.f32 %v1838_v5, %v4667_v49  ;;  %v1858_v41 = vrot.slane %v1810_v32, %v4668_v11  ;;  %v4674_v22 = vld [vmem:[#allocation78_spill] sm:$0xff]  ;;  %v4675_v5 = vld [vmem:[#allocation108_spill] sm:$0xff] }
 0x1d3   :  { %v1862_v31 = vrot.slane %v1811_v59, %v4668_v11  ;;  %v1866_v18 = vrot.slane %v1812_v50, %v4668_v11  ;;  %v1870_v54 = vrot.slane %v1813_v30, %v4668_v11  ;;  %v1890_v7 = vrot.slane %v1843_v21, %v4668_v11  ;;  %v4671_v50 = vld [vmem:[#allocation115_spill] sm:$0xff]  ;;  %v4678_v9 = vld [vmem:[#allocation86_spill] sm:$0xff]  ;;  %v4679_v51 = vld [vmem:[#allocation96_spill] sm:$0xff] }
 0x1d4   :  { %v1894_v23 = vrot.slane %v1844_v29, %v4668_v11  ;;  %v1898_v27 = vrot.slane %v1845_v62, %v4668_v11  ;;  %v1902_v39 = vrot.slane %v1846_v53, %v4668_v11  ;;  %v1871_v56 = vmul.f32 %v4669_v10, %v1858_v41  ;;  %v4680_v4 = vld [vmem:[#allocation72_spill] sm:$0xff]  ;;  %v4681_v53 = vld [vmem:[#allocation91_spill] sm:$0xff] }
 0x1d5   :  { %v1872_v26 = vmul.f32 0.0, %v1858_v41  ;;  %v1873_v55 = vmul.f32 %v4669_v10, %v1862_v31  ;;  %v1874_v8 = vmul.f32 0.0, %v1862_v31  ;;  %v1875_v38 = vmul.f32 %v4669_v10, %v1866_v18  ;;  %v4682_v31 = vld [vmem:[#allocation56_spill] sm:$0xff] }
 0x1d6   :  { %v1876_v57 = vmul.f32 0.0, %v1866_v18  ;;  %v1877_v35 = vmul.f32 %v4669_v10, %v1870_v54  ;;  %v1878_v61 = vmul.f32 0.0, %v1870_v54  ;;  %v1879_v24 = vadd.f32 %v1871_v56, %v4057_v25 }
 0x1d7   :  { %v1880_v47 = vadd.f32 %v1872_v26, %v4060_v33  ;;  %v1881_v63 = vadd.f32 %v1873_v55, %v4063_v36  ;;  %v1882_v12 = vadd.f32 %v1874_v8, %v4066_v60  ;;  %v1883_v20 = vadd.f32 %v1875_v38, %v1851_v1  ;;  %v4684_v55 = vld [vmem:[#allocation79_spill] sm:$0xff] }
 0x1d8   :  { %v1884_v34 = vadd.f32 %v1876_v57, %v1852_v46  ;;  %v1885_v40 = vadd.f32 %v1877_v35, %v1853_v37  ;;  %v1886_v3 = vadd.f32 %v1878_v61, %v1854_v45  ;;  %v1903_v52 = vmul.f32 0.0, %v1890_v7  ;;  %v4676_v46 = vld [vmem:[#allocation110_spill] sm:$0xff]  ;;  %v4677_v45 = vld [vmem:[#allocation75_spill] sm:$0xff] }
 0x1d9   :  { %v1904_v42 = vmul.f32 %v4670_v6, %v1890_v7  ;;  %v1905_v17 = vmul.f32 0.0, %v1894_v23  ;;  %v1906_v58 = vmul.f32 %v4670_v6, %v1894_v23  ;;  %v1907_v2 = vmul.f32 0.0, %v1898_v27  ;;  %v4683_v7 = vld [vmem:[#allocation65_spill] sm:$0xff] }
 0x1da   :  { %v1908_v28 = vmul.f32 %v4670_v6, %v1898_v27  ;;  %v1909_v25 = vmul.f32 0.0, %v1902_v39  ;;  %v1910_v33 = vmul.f32 %v4670_v6, %v1902_v39  ;;  %v1911_v43 = vadd.f32 %v1903_v52, %v1879_v24  ;;  %v4686_v6 = vld [vmem:[#allocation107_spill] sm:$0xff] }
 0x1db   :  { %v1912_v36 = vadd.f32 %v1904_v42, %v1880_v47  ;;  %v1913_v16 = vadd.f32 %v1905_v17, %v1881_v63  ;;  %v1914_v60 = vadd.f32 %v1906_v58, %v1882_v12  ;;  %v1915_v0 = vadd.f32 %v1907_v2, %v1883_v20 }
 0x1dc   :  { %v1916_v48 = vadd.f32 %v1908_v28, %v1884_v34  ;;  %v1917_v32 = vadd.f32 %v1909_v25, %v1885_v40  ;;  %v1918_v59 = vadd.f32 %v1910_v33, %v1886_v3  ;;  %v1919_v30 = vmul.f32 %v4672_v14, %v4671_v50  ;;  %v4685_v3 = vld [vmem:[#allocation97_spill] sm:$0xff] }
 0x1dd   :  { %v1920_v44 = vmul.f32 %v4673_v13, %v4671_v50  ;;  %v1921_v1 = vmul.f32 %v4675_v5, %v4674_v22  ;;  %v1922_v37 = vmul.f32 %v4676_v46, %v4674_v22  ;;  %v1923_v21 = vmul.f32 %v4678_v9, %v4677_v45 }
 0x1de   :  { %v1924_v29 = vmul.f32 %v4679_v51, %v4677_v45  ;;  %v1927_v62 = vmul.f32 %v1911_v43, %v4680_v4  ;;  %v1928_v49 = vmul.f32 %v1912_v36, %v4680_v4  ;;  %v1929_v11 = vmul.f32 %v1913_v16, %v4681_v53 }
 0x1df   :  { %v1930_v41 = vmul.f32 %v1914_v60, %v4681_v53  ;;  %v1931_v18 = vmul.f32 %v1915_v0, %v4682_v31  ;;  %v1932_v54 = vmul.f32 %v1916_v48, %v4682_v31  ;;  %v1933_v23 = vmul.f32 %v1917_v32, %v4683_v7 }
 0x1e0   :  { %v1934_v27 = vmul.f32 %v1918_v59, %v4683_v7  ;;  %v1935_v39 = vadd.f32 %v1927_v62, %v1919_v30  ;;  %v1936_v10 = vadd.f32 %v1928_v49, %v1920_v44  ;;  %v1937_v56 = vadd.f32 %v1929_v11, %v1921_v1 }
 0x1e1   :  { %v1938_v26 = vadd.f32 %v1930_v41, %v1922_v37  ;;  %v1925_v8 = vmul.f32 %v4638_v15, %v4684_v55  ;;  %v1926_v38 = vmul.f32 %v4639_v19, %v4684_v55  ;;  %v1939_v57 = vadd.f32 %v1931_v18, %v1923_v21 }
 0x1e2   :  { %v1940_v35 = vadd.f32 %v1932_v54, %v1924_v29  ;;  %v1943_v61 = vadd.f32 %v1937_v56, %v1935_v39 }
 0x1e3   :  { %v1946_v24 = vadd.f32 %v1938_v26, %v1936_v10  ;;  %v1941_v47 = vadd.f32 %v1933_v23, %v1925_v8  ;;  %v1942_v63 = vadd.f32 %v1934_v27, %v1926_v38 }
 0x1e4   :  { %v1944_v12 = vadd.f32 %v1943_v61, %v1939_v57 }
 0x1e5   :  { %v1947_v20 = vadd.f32 %v1946_v24, %v1940_v35 }
 0x1e6   :  { %v1945_v34 = vadd.f32 %v1944_v12, %v1941_v47 }
 0x1e7   :  { %v1948_v40 = vadd.f32 %v1947_v20, %v1942_v63 }
 0x1e8   :  { %v1949_v52 = vadd.f32 %v1945_v34, %v4685_v3 }
 0x1e9   :  { %v1950_v42 = vadd.f32 %v1948_v40, %v4686_v6 }
 0x1ea   :  { %1951 = vst [vmem:[#allocation2] sm:$0xff] %v1949_v52 }
 0x1eb   :  { %1952 = vst [vmem:[#allocation2 + $0x8] sm:$0xff] %v1950_v42 }
 0x1ec   :  { %2139 = shalt.err (!%p2136_p4)
}
 0x1ed   :  { %s2156_s5 = smov 128   ;;  %s2157_s6 = smov 8  }
 0x1ee   :  { %1964 = dma.vmem_to_hbm [thread:$0]  %s1959_s25, 256, %s4153_s8, [#allocation3], %s2156_s5, %s2156_s5, %s2157_s6  }
 0x1ef   :  { %2148 = dma.done.wait [#allocation3], 256  }
 0x1f0   :  { %2149 = vsyncadd [#allocation3], 4294967040 }
 0x1f1   :  { %1968 = vsyncpa [#allocation3], 1 }

</bundles_post_ra>
